<compile_context>
chip_gen: v7x
topology: tpu7x:2x2x1
jax: 0.10.0
libtpu: 0.0.40
codegen_flags: <defaults>
</compile_context>

<pallas_src>
import functools

import jax
import jax.numpy as jnp
from jax import lax
from jax.experimental import pallas as pl
from jax.experimental.pallas import tpu as pltpu

_EPS = 1e-5                                         # PyTorch BatchNorm2d default
_TAPS3 = tuple((dy, dx) for dy in range(3) for dx in range(3))


@functools.lru_cache(maxsize=1)
def _vmem_limit_bytes():
    """Generation-aware VMEM limit: ~3/4 of physical (96 MiB v5e/v6e, 48 MiB v7x)."""
    cap = 64 * 1024 * 1024
    try:
        info = pltpu.get_tpu_info()
        cap = int(getattr(info, "vmem_capacity_bytes", cap))
    except Exception:
        pass
    return max(32 * 1024 * 1024, min(cap * 3 // 4, 112 * 1024 * 1024))


def _compiler_params(n_axes=1):
    return pltpu.CompilerParams(
        dimension_semantics=("parallel",) * n_axes,
        vmem_limit_bytes=_vmem_limit_bytes())


def _apply_act(x, act):
    if act == "leaky_relu":
        return jnp.where(x >= 0.0, x, 0.2 * x)
    if act == "relu":
        return jnp.maximum(x, 0.0)
    if act == "tanh":
        return jnp.tanh(x)
    return x


# -----------------------------------------------------------------------------
# Kernel 1: fc  (plain tiled matmul + bias)
# -----------------------------------------------------------------------------
def _fc_kernel(z_ref, w_ref, b_ref, o_ref):
    o_ref[...] = (jnp.dot(z_ref[...], w_ref[...],
                          preferred_element_type=jnp.float32)
                  + b_ref[...]).astype(o_ref.dtype)


def fc_forward(z, w, b, *, out_dtype=jnp.bfloat16, tile_b=512):
    B, L = z.shape
    D = w.shape[1]
    tb = B if B <= tile_b else tile_b
    return pl.pallas_call(
        _fc_kernel,
        grid=(pl.cdiv(B, tb),),
        in_specs=[pl.BlockSpec((tb, L), lambda i: (i, 0)),
                  pl.BlockSpec((L, D), lambda i: (0, 0)),
                  pl.BlockSpec((1, D), lambda i: (0, 0))],
        out_specs=pl.BlockSpec((tb, D), lambda i: (i, 0)),
        out_shape=jax.ShapeDtypeStruct((B, D), out_dtype),
        compiler_params=_compiler_params(1),
    )(z, w, b)


# -----------------------------------------------------------------------------
# Kernel 2 (generic conv pass): one grid step = one image.
#   - input block = the whole zero-padded NHWC image (VMEM resident)
#   - optional fused BatchNorm+activation applied to the *input* block
#     (this is the previous layer's "BN pass 2", fused into the consumer; the
#      1-pixel padding frame is re-zeroed exactly afterwards)
#   - 9 in-kernel tap slices, each a bf16 matmul accumulated in f32
#   - optional bias, optional per-image BN partial (sum, sumsq) outputs,
#     optional output activation, optional channels-major (lane-dense) output
# -----------------------------------------------------------------------------
def _make_conv_kernel(H, W, Cin, Cout, *, has_bias, bn_act, out_act,
                      emit_stats, channels_major):
    def kernel(*refs):
        i = 0
        x_ref = refs[i]; i += 1
        w_ref = refs[i]; i += 1
        b_ref = None
        if has_bias:
            b_ref = refs[i]; i += 1
        m_ref = v_ref = None
        if bn_act is not None:
            m_ref, v_ref = refs[i], refs[i + 1]; i += 2
        o_ref = refs[i]; i += 1
        sum_ref = sq_ref = None
        if emit_stats:
            sum_ref, sq_ref = refs[i], refs[i + 1]

        x = x_ref[...]                                   # (H+2, W+2, Cin) bf16
        if bn_act is not None:
            # Fused BN "pass 2": normalize + activate the producer's raw output
            # here, then zero the padding frame exactly (act(bn(0)) != 0).
            xf = _apply_act((x.astype(jnp.float32) - m_ref[...]) * v_ref[...],
                            bn_act)
            row = lax.broadcasted_iota(jnp.int32, xf.shape, 0)
            col = lax.broadcasted_iota(jnp.int32, xf.shape, 1)
            inside = (row >= 1) & (row <= H) & (col >= 1) & (col <= W)
            x = jnp.where(inside, xf, 0.0).astype(jnp.bfloat16)

        if channels_major:
            acc = jnp.zeros((Cout, H * W), jnp.float32)
        else:
            acc = jnp.zeros((H * W, Cout), jnp.float32)

        for t, (dy, dx) in enumerate(_TAPS3):            # unrolled: 9 MXU calls
            xs = x[dy:dy + H, dx:dx + W, :].reshape(H * W, Cin)
            if channels_major:
                acc = acc + lax.dot_general(
                    w_ref[t], xs, (((1,), (1,)), ((), ())),
                    preferred_element_type=jnp.float32)   # (Cout, H*W)
            else:
                acc = acc + jnp.dot(xs, w_ref[t],
                                    preferred_element_type=jnp.float32)

        if has_bias:
            acc = acc + b_ref[...]

        if emit_stats:          # per-image BN partials, taken from the f32 acc
            sum_ref[...] = jnp.sum(acc, axis=0, keepdims=True)
            sq_ref[...] = jnp.sum(acc * acc, axis=0, keepdims=True)

        out = _apply_act(acc, out_act)
        if channels_major:
            o_ref[...] = out.astype(o_ref.dtype)                  # (Cout, H*W)
        else:
            o_ref[...] = out.reshape(H, W, Cout).astype(o_ref.dtype)

    return kernel


def _conv_call(xpad, w_taps, *, bias=None, bn=None, bn_act=None, out_act=None,
               emit_stats=False, channels_major=False, out_dtype=jnp.bfloat16):
    assert not (emit_stats and channels_major)
    B, Hp, Wp, Cin = xpad.shape
    H, W = Hp - 2, Wp - 2
    Cout = w_taps.shape[1] if channels_major else w_taps.shape[2]

    kernel = _make_conv_kernel(
        H, W, Cin, Cout,
        has_bias=bias is not None,
        bn_act=bn_act if bn is not None else None,
        out_act=out_act,
        emit_stats=emit_stats,
        channels_major=channels_major)

    in_specs = [pl.BlockSpec((None, Hp, Wp, Cin), lambda b: (b, 0, 0, 0)),
                pl.BlockSpec(w_taps.shape, lambda b: (0, 0, 0))]
    args = [xpad, w_taps]
    if bias is not None:
        in_specs.append(pl.BlockSpec((1, Cout), lambda b: (0, 0)))
        args.append(bias)
    if bn is not None:
        mean, inv_std = bn
        in_specs += [pl.BlockSpec((1, Cin), lambda b: (0, 0)),
                     pl.BlockSpec((1, Cin), lambda b: (0, 0))]
        args += [mean, inv_std]

    if channels_major:
        out_shape = [jax.ShapeDtypeStruct((B, Cout, H * W), out_dtype)]
        out_specs = [pl.BlockSpec((None, Cout, H * W), lambda b: (b, 0, 0))]
    else:
        out_shape = [jax.ShapeDtypeStruct((B, H, W, Cout), out_dtype)]
        out_specs = [pl.BlockSpec((None, H, W, Cout), lambda b: (b, 0, 0, 0))]
    if emit_stats:
        out_shape += [jax.ShapeDtypeStruct((B, 1, Cout), jnp.float32)] * 2
        out_specs += [pl.BlockSpec((None, 1, Cout), lambda b: (b, 0, 0))] * 2

    return pl.pallas_call(
        kernel,
        grid=(B,),
        in_specs=in_specs,
        out_specs=tuple(out_specs),
        out_shape=tuple(out_shape),
        compiler_params=_compiler_params(1),
    )(*args)


# -----------------------------------------------------------------------------
# Weight packing (tiny, trace-time glue) and BN finalize
# -----------------------------------------------------------------------------
def _pack_conv_w_taps(w):
    # torch Conv2d weight (Cout, Cin, 3, 3) -> (9, Cin, Cout), taps row-major
    cout, cin, kh, kw = w.shape
    return jnp.transpose(w, (2, 3, 1, 0)).reshape(kh * kw, cin, cout)


def _pack_convt2_fused_w(w):
    # ConvTranspose2d(Cin, ngf, 4, s2, p1): 4-phase sub-pixel decomposition,
    # all phases fused onto the shared 3x3 halo.  Tap (dy,dx), phase (py,px):
    # contributes W[:, :, 3-(py+2a), 3-(px+2b)] with a=dy-py, b=dx-px in {0,1};
    # other tap/phase combos are structural zeros.  Result: (9, Cin, 4*ngf).
    cin, ngf = w.shape[0], w.shape[1]
    blocks = []
    for dy in range(3):
        for dx in range(3):
            cols = []
            for py in range(2):
                for px in range(2):
                    a, b = dy - py, dx - px
                    if 0 <= a <= 1 and 0 <= b <= 1:
                        cols.append(w[:, :, 3 - (py + 2 * a), 3 - (px + 2 * b)])
                    else:
                        cols.append(jnp.zeros((cin, ngf), w.dtype))
            blocks.append(jnp.concatenate(cols, axis=1))         # (Cin, 4*ngf)
    return jnp.stack(blocks, axis=0)                             # (9, Cin, 4*ngf)


def _pack_convt3_w_taps_cm(w):
    # torch ConvTranspose2d (Cin, Cout, 3, 3), s1 p1 == correlation with the
    # spatially flipped kernel over the zero-padded input.  Packed channels-
    # major for the (Cout, K) @ (K, N) lane-dense output: (9, Cout, Cin).
    cin, cout, kh, kw = w.shape
    wf = w[:, :, ::-1, ::-1]
    return jnp.transpose(wf, (2, 3, 1, 0)).reshape(kh * kw, cout, cin)


def _finalize_bn(psum, psq, count, *, phase_fold=1):
    # psum / psq: (B, 1, C') per-image partials emitted by the producer kernel.
    s = jnp.sum(psum, axis=(0, 1))
    q = jnp.sum(psq, axis=(0, 1))
    if phase_fold > 1:                      # fold fused sub-pixel phases -> C
        s = jnp.sum(s.reshape(phase_fold, -1), axis=0)
        q = jnp.sum(q.reshape(phase_fold, -1), axis=0)
    mean = s / count
    var = jnp.maximum(q / count - mean * mean, 0.0)   # clamp E[x^2]-E[x]^2 >= 0
    inv_std = lax.rsqrt(var + _EPS)
    return (mean.reshape(1, -1).astype(jnp.float32),
            inv_std.reshape(1, -1).astype(jnp.float32))


# -----------------------------------------------------------------------------
# Parameters (deterministic synthetic init) and forward pass
# -----------------------------------------------------------------------------
def init_dcgan_generator_params(key, latent_dim, img_shape, ngf):
    channels, img_h, img_w = img_shape
    init_size = img_h // 4
    c1 = ngf * 2
    d = c1 * init_size * init_size
    keys = jax.random.split(key, 6)
    nrm = lambda k, s: 0.02 * jax.random.normal(k, s, jnp.float32)
    return dict(
        fc_w=nrm(keys[0], (latent_dim, d)),            # stored as (in, out)
        fc_b=nrm(keys[1], (d,)),
        conv1_w=nrm(keys[2], (c1, c1, 3, 3)),          # Conv2d  (Cout,Cin,kH,kW)
        conv1_b=nrm(keys[3], (c1,)),
        convt2_w=nrm(keys[4], (c1, ngf, 4, 4)),        # ConvT2d (Cin,Cout,kH,kW)
        convt3_w=nrm(keys[5], (ngf, channels, 3, 3)),  # ConvT2d (Cin,Cout,kH,kW)
    )


def dcgan_generator_forward(params, z, img_shape, ngf):
    channels, img_h, img_w = img_shape
    init = img_h // 4
    c1 = ngf * 2
    B, latent = z.shape
    cdt = jnp.bfloat16          # MXU operand dtype; accumulation stays f32

    # --- fc: Linear(latent -> c1*init^2).  Weight columns are pre-permuted so
    #     the kernel output is already in (h, w, c) order (no activation
    #     transpose needed to go NCHW-view -> NHWC).
    d = c1 * init * init
    w_fc = (params["fc_w"].reshape(latent, c1, init, init)
            .transpose(0, 2, 3, 1).reshape(latent, d)).astype(cdt)
    b_fc = (params["fc_b"].reshape(c1, init, init)
            .transpose(1, 2, 0).reshape(1, d)).astype(jnp.float32)
    x = fc_forward(z.astype(cdt), w_fc, b_fc)                   # (B, d) bf16
    x = x.reshape(B, init, init, c1)

    # --- Upsample(x2, nearest) + zero pad(1): layout glue on the smallest act.
    x = jnp.repeat(jnp.repeat(x, 2, axis=1), 2, axis=2)
    h1 = 2 * init
    xpad = jnp.pad(x, ((0, 0), (1, 1), (1, 1), (0, 0)))

    # --- Conv2d(c1, c1, 3, p=1) + bias: raw y1 (bf16) + BN1 partial stats.
    w1 = _pack_conv_w_taps(params["conv1_w"]).astype(cdt)       # (9, c1, c1)
    b1 = params["conv1_b"].reshape(1, c1).astype(jnp.float32)
    y1, s1, q1 = _conv_call(xpad, w1, bias=b1, emit_stats=True)
    mean1, inv1 = _finalize_bn(s1, q1, B * h1 * h1)

    # --- ConvTranspose2d(c1, ngf, 4, s=2, p=1): 4 phases fused (Cout = 4*ngf);
    #     BN1 + LeakyReLU(0.2) applied to the input block inside the kernel;
    #     BN2 partial stats emitted from the f32 accumulator.
    y1pad = jnp.pad(y1, ((0, 0), (1, 1), (1, 1), (0, 0)))
    w2 = _pack_convt2_fused_w(params["convt2_w"]).astype(cdt)   # (9, c1, 4*ngf)
    y2, s2, q2 = _conv_call(y1pad, w2, bn=(mean1, inv1), bn_act="leaky_relu",
                            emit_stats=True)                    # (B,h1,h1,4*ngf)
    h2 = 2 * h1
    mean2, inv2 = _finalize_bn(s2, q2, B * h2 * h2, phase_fold=4)

    # --- sub-pixel interleave (depth-to-space) + pad: layout-only glue.
    y2 = (y2.reshape(B, h1, h1, 2, 2, ngf)
          .transpose(0, 1, 3, 2, 4, 5).reshape(B, h2, h2, ngf))
    y2pad = jnp.pad(y2, ((0, 0), (1, 1), (1, 1), (0, 0)))

    # --- ConvTranspose2d(ngf, channels, 3, s=1, p=1) + Tanh; BN2 + ReLU fused
    #     on the input; channels-major (C, H*W) output = lane-dense stores and
    #     already NCHW-ordered.
    w3 = _pack_convt3_w_taps_cm(params["convt3_w"]).astype(cdt)  # (9, ch, ngf)
    (img,) = _conv_call(y2pad, w3, bn=(mean2, inv2), bn_act="relu",
                        out_act="tanh", channels_major=True,
                        out_dtype=jnp.float32)                   # (B, ch, h2*h2)
    return img.reshape(B, channels, h2, h2)


if __name__ == "__main__":
    key = jax.random.PRNGKey(0)
    batch = 2
    latent_dim = 32
    img_shape = (3, 16, 16)   # (channels, H, W); init_size = 4
    ngf = 8                   # small generator width for the demo

    params = init_dcgan_generator_params(key, latent_dim, img_shape, ngf)
    z = jax.random.normal(jax.random.fold_in(key, 123),
                          (batch, latent_dim), jnp.float32)

    fwd = jax.jit(functools.partial(dcgan_generator_forward,
                                    img_shape=img_shape, ngf=ngf))
    img = jax.block_until_ready(fwd(params, z))

    assert img.shape == (batch,) + img_shape, img.shape
    assert bool(jnp.all(jnp.isfinite(img)))
    assert bool(jnp.all(jnp.abs(img) <= 1.0 + 1e-6))   # tanh range
    print("KERNEL_OK")
</pallas_src>

<mosaic_0001>
module attributes {stable_mosaic.version = 11 : i64} {
  func.func @_fc_kernel(%arg0: i32, %arg1: memref<2x32xbf16, #tpu.memory_space<vmem>>, %arg2: memref<32x256xbf16, #tpu.memory_space<vmem>>, %arg3: memref<1x256xf32, #tpu.memory_space<vmem>>, %arg4: memref<2x256xbf16, #tpu.memory_space<vmem>>) attributes {dimension_semantics = [#tpu.dimension_semantics<parallel>], iteration_bounds = array<i64: 1>, scalar_prefetch = 0 : i64, scratch_operands = 0 : i64, tpu.core_type = #tpu.core_type<tc>, window_params = [{transform_indices = @transform_0, window_bounds = array<i64: 2, 32>}, {pipeline_mode = #tpu.pipeline_mode<synchronous>, transform_indices = @transform_1, window_bounds = array<i64: 32, 256>}, {pipeline_mode = #tpu.pipeline_mode<synchronous>, transform_indices = @transform_2, window_bounds = array<i64: 1, 256>}, {transform_indices = @transform_3, window_bounds = array<i64: 2, 256>}]} {
    %c0 = arith.constant 0 : index
    %c0_0 = arith.constant 0 : index
    %0 = vector.load %arg1[%c0, %c0_0] : memref<2x32xbf16, #tpu.memory_space<vmem>>, vector<2x32xbf16>
    %c0_1 = arith.constant 0 : index
    %c0_2 = arith.constant 0 : index
    %1 = vector.load %arg2[%c0_1, %c0_2] : memref<32x256xbf16, #tpu.memory_space<vmem>>, vector<32x256xbf16>
    %cst = arith.constant dense<0.000000e+00> : vector<2x256xf32>
    %2 = tpu.matmul %0, %1, %cst {dimension_numbers = #tpu.dot_dimension_numbers<[1], [0], [0], [1], [0, 0, 1, 1], [], []>} : vector<2x32xbf16>, vector<32x256xbf16>, vector<2x256xf32> -> vector<2x256xf32>
    %c0_3 = arith.constant 0 : index
    %c0_4 = arith.constant 0 : index
    %3 = vector.load %arg3[%c0_3, %c0_4] : memref<1x256xf32, #tpu.memory_space<vmem>>, vector<1x256xf32>
    %4 = vector.broadcast %3 : vector<1x256xf32> to vector<2x256xf32>
    %5 = arith.addf %2, %4 : vector<2x256xf32>
    %6 = arith.truncf %5 : vector<2x256xf32> to vector<2x256xbf16>
    %c0_5 = arith.constant 0 : index
    %c0_6 = arith.constant 0 : index
    %7 = vector.load %arg4[%c0_5, %c0_6] : memref<2x256xbf16, #tpu.memory_space<vmem>>, vector<2x256xbf16>
    tpu.vector_store %arg4[%c0_5, %c0_6], %6 {strides = array<i32>} : memref<2x256xbf16, #tpu.memory_space<vmem>>, vector<2x256xbf16>,
    return
  }
  func.func @transform_0(%arg0: i32) -> (i32, i32) {
    %c0_i32 = arith.constant 0 : i32
    %c0_i32_0 = arith.constant 0 : i32
    return %arg0, %c0_i32 : i32, i32
  }
  func.func @transform_1(%arg0: i32) -> (i32, i32) {
    %c0_i32 = arith.constant 0 : i32
    %c0_i32_0 = arith.constant 0 : i32
    %c0_i32_1 = arith.constant 0 : i32
    return %c0_i32, %c0_i32_0 : i32, i32
  }
  func.func @transform_2(%arg0: i32) -> (i32, i32) {
    %c0_i32 = arith.constant 0 : i32
    %c0_i32_0 = arith.constant 0 : i32
    %c0_i32_1 = arith.constant 0 : i32
    return %c0_i32, %c0_i32_0 : i32, i32
  }
  func.func @transform_3(%arg0: i32) -> (i32, i32) {
    %c0_i32 = arith.constant 0 : i32
    %c0_i32_0 = arith.constant 0 : i32
    return %arg0, %c0_i32 : i32, i32
  }
}

module attributes {stable_mosaic.version = 11 : i64} {
  func.func @kernel(%arg0: i32, %arg1: memref<1x10x10x16xbf16, #tpu.memory_space<vmem>>, %arg2: memref<9x16x16xbf16, #tpu.memory_space<vmem>>, %arg3: memref<1x16xf32, #tpu.memory_space<vmem>>, %arg4: memref<1x8x8x16xbf16, #tpu.memory_space<vmem>>, %arg5: memref<1x1x16xf32, #tpu.memory_space<vmem>>, %arg6: memref<1x1x16xf32, #tpu.memory_space<vmem>>) attributes {dimension_semantics = [#tpu.dimension_semantics<parallel>], iteration_bounds = array<i64: 2>, scalar_prefetch = 0 : i64, scratch_operands = 0 : i64, tpu.core_type = #tpu.core_type<tc>, window_params = [{transform_indices = @transform_0, window_bounds = array<i64: 1, 10, 10, 16>}, {pipeline_mode = #tpu.pipeline_mode<synchronous>, transform_indices = @transform_1, window_bounds = array<i64: 9, 16, 16>}, {pipeline_mode = #tpu.pipeline_mode<synchronous>, transform_indices = @transform_2, window_bounds = array<i64: 1, 16>}, {transform_indices = @transform_3, window_bounds = array<i64: 1, 8, 8, 16>}, {transform_indices = @transform_4, window_bounds = array<i64: 1, 1, 16>}, {transform_indices = @transform_5, window_bounds = array<i64: 1, 1, 16>}]} {
    %c0 = arith.constant 0 : index
    %c0_0 = arith.constant 0 : index
    %c0_1 = arith.constant 0 : index
    %c0_2 = arith.constant 0 : index
    %0 = vector.load %arg1[%c0, %c0_0, %c0_1, %c0_2] : memref<1x10x10x16xbf16, #tpu.memory_space<vmem>>, vector<1x10x10x16xbf16>
    %1 = vector.shape_cast %0 : vector<1x10x10x16xbf16> to vector<10x10x16xbf16>
    %cst = arith.constant 0.000000e+00 : f32
    %2 = vector.broadcast %cst : f32 to vector<64x16xf32>
    %3 = vector.extract_strided_slice %1 {offsets = [0, 0, 0], sizes = [8, 8, 16], strides = [1, 1, 1]} : vector<10x10x16xbf16> to vector<8x8x16xbf16>
    %4 = vector.shape_cast %3 : vector<8x8x16xbf16> to vector<64x16xbf16>
    %c0_3 = arith.constant 0 : index
    %c0_4 = arith.constant 0 : index
    %c0_5 = arith.constant 0 : index
    %5 = vector.load %arg2[%c0_3, %c0_4, %c0_5] : memref<9x16x16xbf16, #tpu.memory_space<vmem>>, vector<1x16x16xbf16>
    %6 = vector.shape_cast %5 : vector<1x16x16xbf16> to vector<16x16xbf16>
    %cst_6 = arith.constant dense<0.000000e+00> : vector<64x16xf32>
    %7 = tpu.matmul %4, %6, %cst_6 {dimension_numbers = #tpu.dot_dimension_numbers<[1], [0], [0], [1], [0, 0, 1, 1], [], []>} : vector<64x16xbf16>, vector<16x16xbf16>, vector<64x16xf32> -> vector<64x16xf32>
    %8 = arith.addf %2, %7 : vector<64x16xf32>
    %9 = vector.extract_strided_slice %1 {offsets = [0, 1, 0], sizes = [8, 8, 16], strides = [1, 1, 1]} : vector<10x10x16xbf16> to vector<8x8x16xbf16>
    %10 = vector.shape_cast %9 : vector<8x8x16xbf16> to vector<64x16xbf16>
    %c1 = arith.constant 1 : index
    %c0_7 = arith.constant 0 : index
    %c0_8 = arith.constant 0 : index
    %11 = vector.load %arg2[%c1, %c0_7, %c0_8] : memref<9x16x16xbf16, #tpu.memory_space<vmem>>, vector<1x16x16xbf16>
    %12 = vector.shape_cast %11 : vector<1x16x16xbf16> to vector<16x16xbf16>
    %cst_9 = arith.constant dense<0.000000e+00> : vector<64x16xf32>
    %13 = tpu.matmul %10, %12, %cst_9 {dimension_numbers = #tpu.dot_dimension_numbers<[1], [0], [0], [1], [0, 0, 1, 1], [], []>} : vector<64x16xbf16>, vector<16x16xbf16>, vector<64x16xf32> -> vector<64x16xf32>
    %14 = arith.addf %8, %13 : vector<64x16xf32>
    %15 = vector.extract_strided_slice %1 {offsets = [0, 2, 0], sizes = [8, 8, 16], strides = [1, 1, 1]} : vector<10x10x16xbf16> to vector<8x8x16xbf16>
    %16 = vector.shape_cast %15 : vector<8x8x16xbf16> to vector<64x16xbf16>
    %c2 = arith.constant 2 : index
    %c0_10 = arith.constant 0 : index
    %c0_11 = arith.constant 0 : index
    %17 = vector.load %arg2[%c2, %c0_10, %c0_11] : memref<9x16x16xbf16, #tpu.memory_space<vmem>>, vector<1x16x16xbf16>
    %18 = vector.shape_cast %17 : vector<1x16x16xbf16> to vector<16x16xbf16>
    %cst_12 = arith.constant dense<0.000000e+00> : vector<64x16xf32>
    %19 = tpu.matmul %16, %18, %cst_12 {dimension_numbers = #tpu.dot_dimension_numbers<[1], [0], [0], [1], [0, 0, 1, 1], [], []>} : vector<64x16xbf16>, vector<16x16xbf16>, vector<64x16xf32> -> vector<64x16xf32>
    %20 = arith.addf %14, %19 : vector<64x16xf32>
    %21 = vector.extract_strided_slice %1 {offsets = [1, 0, 0], sizes = [8, 8, 16], strides = [1, 1, 1]} : vector<10x10x16xbf16> to vector<8x8x16xbf16>
    %22 = vector.shape_cast %21 : vector<8x8x16xbf16> to vector<64x16xbf16>
    %c3 = arith.constant 3 : index
    %c0_13 = arith.constant 0 : index
    %c0_14 = arith.constant 0 : index
    %23 = vector.load %arg2[%c3, %c0_13, %c0_14] : memref<9x16x16xbf16, #tpu.memory_space<vmem>>, vector<1x16x16xbf16>
    %24 = vector.shape_cast %23 : vector<1x16x16xbf16> to vector<16x16xbf16>
    %cst_15 = arith.constant dense<0.000000e+00> : vector<64x16xf32>
    %25 = tpu.matmul %22, %24, %cst_15 {dimension_numbers = #tpu.dot_dimension_numbers<[1], [0], [0], [1], [0, 0, 1, 1], [], []>} : vector<64x16xbf16>, vector<16x16xbf16>, vector<64x16xf32> -> vector<64x16xf32>
    %26 = arith.addf %20, %25 : vector<64x16xf32>
    %27 = vector.extract_strided_slice %1 {offsets = [1, 1, 0], sizes = [8, 8, 16], strides = [1, 1, 1]} : vector<10x10x16xbf16> to vector<8x8x16xbf16>
    %28 = vector.shape_cast %27 : vector<8x8x16xbf16> to vector<64x16xbf16>
    %c4 = arith.constant 4 : index
    %c0_16 = arith.constant 0 : index
    %c0_17 = arith.constant 0 : index
    %29 = vector.load %arg2[%c4, %c0_16, %c0_17] : memref<9x16x16xbf16, #tpu.memory_space<vmem>>, vector<1x16x16xbf16>
    %30 = vector.shape_cast %29 : vector<1x16x16xbf16> to vector<16x16xbf16>
    %cst_18 = arith.constant dense<0.000000e+00> : vector<64x16xf32>
    %31 = tpu.matmul %28, %30, %cst_18 {dimension_numbers = #tpu.dot_dimension_numbers<[1], [0], [0], [1], [0, 0, 1, 1], [], []>} : vector<64x16xbf16>, vector<16x16xbf16>, vector<64x16xf32> -> vector<64x16xf32>
    %32 = arith.addf %26, %31 : vector<64x16xf32>
    %33 = vector.extract_strided_slice %1 {offsets = [1, 2, 0], sizes = [8, 8, 16], strides = [1, 1, 1]} : vector<10x10x16xbf16> to vector<8x8x16xbf16>
    %34 = vector.shape_cast %33 : vector<8x8x16xbf16> to vector<64x16xbf16>
    %c5 = arith.constant 5 : index
    %c0_19 = arith.constant 0 : index
    %c0_20 = arith.constant 0 : index
    %35 = vector.load %arg2[%c5, %c0_19, %c0_20] : memref<9x16x16xbf16, #tpu.memory_space<vmem>>, vector<1x16x16xbf16>
    %36 = vector.shape_cast %35 : vector<1x16x16xbf16> to vector<16x16xbf16>
    %cst_21 = arith.constant dense<0.000000e+00> : vector<64x16xf32>
    %37 = tpu.matmul %34, %36, %cst_21 {dimension_numbers = #tpu.dot_dimension_numbers<[1], [0], [0], [1], [0, 0, 1, 1], [], []>} : vector<64x16xbf16>, vector<16x16xbf16>, vector<64x16xf32> -> vector<64x16xf32>
    %38 = arith.addf %32, %37 : vector<64x16xf32>
    %39 = vector.extract_strided_slice %1 {offsets = [2, 0, 0], sizes = [8, 8, 16], strides = [1, 1, 1]} : vector<10x10x16xbf16> to vector<8x8x16xbf16>
    %40 = vector.shape_cast %39 : vector<8x8x16xbf16> to vector<64x16xbf16>
    %c6 = arith.constant 6 : index
    %c0_22 = arith.constant 0 : index
    %c0_23 = arith.constant 0 : index
    %41 = vector.load %arg2[%c6, %c0_22, %c0_23] : memref<9x16x16xbf16, #tpu.memory_space<vmem>>, vector<1x16x16xbf16>
    %42 = vector.shape_cast %41 : vector<1x16x16xbf16> to vector<16x16xbf16>
    %cst_24 = arith.constant dense<0.000000e+00> : vector<64x16xf32>
    %43 = tpu.matmul %40, %42, %cst_24 {dimension_numbers = #tpu.dot_dimension_numbers<[1], [0], [0], [1], [0, 0, 1, 1], [], []>} : vector<64x16xbf16>, vector<16x16xbf16>, vector<64x16xf32> -> vector<64x16xf32>
    %44 = arith.addf %38, %43 : vector<64x16xf32>
    %45 = vector.extract_strided_slice %1 {offsets = [2, 1, 0], sizes = [8, 8, 16], strides = [1, 1, 1]} : vector<10x10x16xbf16> to vector<8x8x16xbf16>
    %46 = vector.shape_cast %45 : vector<8x8x16xbf16> to vector<64x16xbf16>
    %c7 = arith.constant 7 : index
    %c0_25 = arith.constant 0 : index
    %c0_26 = arith.constant 0 : index
    %47 = vector.load %arg2[%c7, %c0_25, %c0_26] : memref<9x16x16xbf16, #tpu.memory_space<vmem>>, vector<1x16x16xbf16>
    %48 = vector.shape_cast %47 : vector<1x16x16xbf16> to vector<16x16xbf16>
    %cst_27 = arith.constant dense<0.000000e+00> : vector<64x16xf32>
    %49 = tpu.matmul %46, %48, %cst_27 {dimension_numbers = #tpu.dot_dimension_numbers<[1], [0], [0], [1], [0, 0, 1, 1], [], []>} : vector<64x16xbf16>, vector<16x16xbf16>, vector<64x16xf32> -> vector<64x16xf32>
    %50 = arith.addf %44, %49 : vector<64x16xf32>
    %51 = vector.extract_strided_slice %1 {offsets = [2, 2, 0], sizes = [8, 8, 16], strides = [1, 1, 1]} : vector<10x10x16xbf16> to vector<8x8x16xbf16>
    %52 = vector.shape_cast %51 : vector<8x8x16xbf16> to vector<64x16xbf16>
    %c8 = arith.constant 8 : index
    %c0_28 = arith.constant 0 : index
    %c0_29 = arith.constant 0 : index
    %53 = vector.load %arg2[%c8, %c0_28, %c0_29] : memref<9x16x16xbf16, #tpu.memory_space<vmem>>, vector<1x16x16xbf16>
    %54 = vector.shape_cast %53 : vector<1x16x16xbf16> to vector<16x16xbf16>
    %cst_30 = arith.constant dense<0.000000e+00> : vector<64x16xf32>
    %55 = tpu.matmul %52, %54, %cst_30 {dimension_numbers = #tpu.dot_dimension_numbers<[1], [0], [0], [1], [0, 0, 1, 1], [], []>} : vector<64x16xbf16>, vector<16x16xbf16>, vector<64x16xf32> -> vector<64x16xf32>
    %56 = arith.addf %50, %55 : vector<64x16xf32>
    %c0_31 = arith.constant 0 : index
    %c0_32 = arith.constant 0 : index
    %57 = vector.load %arg3[%c0_31, %c0_32] : memref<1x16xf32, #tpu.memory_space<vmem>>, vector<1x16xf32>
    %58 = vector.broadcast %57 : vector<1x16xf32> to vector<64x16xf32>
    %59 = arith.addf %56, %58 : vector<64x16xf32>
    %cst_33 = arith.constant dense<0.000000e+00> : vector<16xf32>
    %60 = vector.multi_reduction <add>, %59, %cst_33 [0] : vector<64x16xf32> to vector<16xf32>
    %61 = vector.shape_cast %60 : vector<16xf32> to vector<1x16xf32>
    %c0_34 = arith.constant 0 : index
    %c0_35 = arith.constant 0 : index
    %c0_36 = arith.constant 0 : index
    %62 = vector.load %arg5[%c0_34, %c0_35, %c0_36] : memref<1x1x16xf32, #tpu.memory_space<vmem>>, vector<1x1x16xf32>
    %63 = vector.shape_cast %62 : vector<1x1x16xf32> to vector<1x16xf32>
    %64 = vector.shape_cast %61 : vector<1x16xf32> to vector<1x1x16xf32>
    tpu.vector_store %arg5[%c0_34, %c0_35, %c0_36], %64 {strides = array<i32>} : memref<1x1x16xf32, #tpu.memory_space<vmem>>, vector<1x1x16xf32>,
    %65 = arith.mulf %59, %59 : vector<64x16xf32>
    %cst_37 = arith.constant dense<0.000000e+00> : vector<16xf32>
    %66 = vector.multi_reduction <add>, %65, %cst_37 [0] : vector<64x16xf32> to vector<16xf32>
    %67 = vector.shape_cast %66 : vector<16xf32> to vector<1x16xf32>
    %c0_38 = arith.constant 0 : index
    %c0_39 = arith.constant 0 : index
    %c0_40 = arith.constant 0 : index
    %68 = vector.load %arg6[%c0_38, %c0_39, %c0_40] : memref<1x1x16xf32, #tpu.memory_space<vmem>>, vector<1x1x16xf32>
    %69 = vector.shape_cast %68 : vector<1x1x16xf32> to vector<1x16xf32>
    %70 = vector.shape_cast %67 : vector<1x16xf32> to vector<1x1x16xf32>
    tpu.vector_store %arg6[%c0_38, %c0_39, %c0_40], %70 {strides = array<i32>} : memref<1x1x16xf32, #tpu.memory_space<vmem>>, vector<1x1x16xf32>,
    %71 = vector.shape_cast %59 : vector<64x16xf32> to vector<8x8x16xf32>
    %72 = arith.truncf %71 : vector<8x8x16xf32> to vector<8x8x16xbf16>
    %c0_41 = arith.constant 0 : index
    %c0_42 = arith.constant 0 : index
    %c0_43 = arith.constant 0 : index
    %c0_44 = arith.constant 0 : index
    %73 = vector.load %arg4[%c0_41, %c0_42, %c0_43, %c0_44] : memref<1x8x8x16xbf16, #tpu.memory_space<vmem>>, vector<1x8x8x16xbf16>
    %74 = vector.shape_cast %73 : vector<1x8x8x16xbf16> to vector<8x8x16xbf16>
    %75 = vector.shape_cast %72 : vector<8x8x16xbf16> to vector<1x8x8x16xbf16>
    tpu.vector_store %arg4[%c0_41, %c0_42, %c0_43, %c0_44], %75 {strides = array<i32>} : memref<1x8x8x16xbf16, #tpu.memory_space<vmem>>, vector<1x8x8x16xbf16>,
    return
  }
  func.func @transform_0(%arg0: i32) -> (i32, i32, i32, i32) {
    %c0_i32 = arith.constant 0 : i32
    %c0_i32_0 = arith.constant 0 : i32
    %c0_i32_1 = arith.constant 0 : i32
    %c0_i32_2 = arith.constant 0 : i32
    return %arg0, %c0_i32, %c0_i32_0, %c0_i32_1 : i32, i32, i32, i32
  }
  func.func @transform_1(%arg0: i32) -> (i32, i32, i32) {
    %c0_i32 = arith.constant 0 : i32
    %c0_i32_0 = arith.constant 0 : i32
    %c0_i32_1 = arith.constant 0 : i32
    %c0_i32_2 = arith.constant 0 : i32
    return %c0_i32, %c0_i32_0, %c0_i32_1 : i32, i32, i32
  }
  func.func @transform_2(%arg0: i32) -> (i32, i32) {
    %c0_i32 = arith.constant 0 : i32
    %c0_i32_0 = arith.constant 0 : i32
    %c0_i32_1 = arith.constant 0 : i32
    return %c0_i32, %c0_i32_0 : i32, i32
  }
  func.func @transform_3(%arg0: i32) -> (i32, i32, i32, i32) {
    %c0_i32 = arith.constant 0 : i32
    %c0_i32_0 = arith.constant 0 : i32
    %c0_i32_1 = arith.constant 0 : i32
    %c0_i32_2 = arith.constant 0 : i32
    return %arg0, %c0_i32, %c0_i32_0, %c0_i32_1 : i32, i32, i32, i32
  }
  func.func @transform_4(%arg0: i32) -> (i32, i32, i32) {
    %c0_i32 = arith.constant 0 : i32
    %c0_i32_0 = arith.constant 0 : i32
    %c0_i32_1 = arith.constant 0 : i32
    return %arg0, %c0_i32, %c0_i32_0 : i32, i32, i32
  }
  func.func @transform_5(%arg0: i32) -> (i32, i32, i32) {
    %c0_i32 = arith.constant 0 : i32
    %c0_i32_0 = arith.constant 0 : i32
    %c0_i32_1 = arith.constant 0 : i32
    return %arg0, %c0_i32, %c0_i32_0 : i32, i32, i32
  }
}

module attributes {stable_mosaic.version = 11 : i64} {
  func.func @kernel(%arg0: i32, %arg1: memref<1x10x10x16xbf16, #tpu.memory_space<vmem>>, %arg2: memref<9x16x32xbf16, #tpu.memory_space<vmem>>, %arg3: memref<1x16xf32, #tpu.memory_space<vmem>>, %arg4: memref<1x16xf32, #tpu.memory_space<vmem>>, %arg5: memref<1x8x8x32xbf16, #tpu.memory_space<vmem>>, %arg6: memref<1x1x32xf32, #tpu.memory_space<vmem>>, %arg7: memref<1x1x32xf32, #tpu.memory_space<vmem>>) attributes {dimension_semantics = [#tpu.dimension_semantics<parallel>], iteration_bounds = array<i64: 2>, scalar_prefetch = 0 : i64, scratch_operands = 0 : i64, tpu.core_type = #tpu.core_type<tc>, window_params = [{transform_indices = @transform_0, window_bounds = array<i64: 1, 10, 10, 16>}, {pipeline_mode = #tpu.pipeline_mode<synchronous>, transform_indices = @transform_1, window_bounds = array<i64: 9, 16, 32>}, {pipeline_mode = #tpu.pipeline_mode<synchronous>, transform_indices = @transform_2, window_bounds = array<i64: 1, 16>}, {pipeline_mode = #tpu.pipeline_mode<synchronous>, transform_indices = @transform_3, window_bounds = array<i64: 1, 16>}, {transform_indices = @transform_4, window_bounds = array<i64: 1, 8, 8, 32>}, {transform_indices = @transform_5, window_bounds = array<i64: 1, 1, 32>}, {transform_indices = @transform_6, window_bounds = array<i64: 1, 1, 32>}]} {
    %c0 = arith.constant 0 : index
    %c0_0 = arith.constant 0 : index
    %c0_1 = arith.constant 0 : index
    %c0_2 = arith.constant 0 : index
    %0 = vector.load %arg1[%c0, %c0_0, %c0_1, %c0_2] : memref<1x10x10x16xbf16, #tpu.memory_space<vmem>>, vector<1x10x10x16xbf16>
    %1 = vector.shape_cast %0 : vector<1x10x10x16xbf16> to vector<10x10x16xbf16>
    %2 = arith.extf %1 : vector<10x10x16xbf16> to vector<10x10x16xf32>
    %c0_3 = arith.constant 0 : index
    %c0_4 = arith.constant 0 : index
    %3 = vector.load %arg3[%c0_3, %c0_4] : memref<1x16xf32, #tpu.memory_space<vmem>>, vector<1x16xf32>
    %4 = vector.shape_cast %3 : vector<1x16xf32> to vector<1x1x16xf32>
    %5 = vector.broadcast %4 : vector<1x1x16xf32> to vector<10x10x16xf32>
    %6 = arith.subf %2, %5 : vector<10x10x16xf32>
    %c0_5 = arith.constant 0 : index
    %c0_6 = arith.constant 0 : index
    %7 = vector.load %arg4[%c0_5, %c0_6] : memref<1x16xf32, #tpu.memory_space<vmem>>, vector<1x16xf32>
    %8 = vector.shape_cast %7 : vector<1x16xf32> to vector<1x1x16xf32>
    %9 = vector.broadcast %8 : vector<1x1x16xf32> to vector<10x10x16xf32>
    %10 = arith.mulf %6, %9 : vector<10x10x16xf32>
    %cst = arith.constant 0.000000e+00 : f32
    %11 = vector.broadcast %cst : f32 to vector<10x10x16xf32>
    %12 = arith.cmpf oge, %10, %11 : vector<10x10x16xf32>
    %cst_7 = arith.constant 2.000000e-01 : f32
    %13 = vector.broadcast %cst_7 : f32 to vector<10x10x16xf32>
    %14 = arith.mulf %13, %10 : vector<10x10x16xf32>
    %15 = arith.select %12, %10, %14 : vector<10x10x16xi1>, vector<10x10x16xf32>
    %16 = tpu.iota {dimensions = array<i32: 0>} : vector<10x10x16xi32>
    %17 = tpu.iota {dimensions = array<i32: 1>} : vector<10x10x16xi32>
    %c1_i32 = arith.constant 1 : i32
    %18 = vector.broadcast %c1_i32 : i32 to vector<10x10x16xi32>
    %19 = arith.cmpi sge, %16, %18 : vector<10x10x16xi32>
    %c8_i32 = arith.constant 8 : i32
    %20 = vector.broadcast %c8_i32 : i32 to vector<10x10x16xi32>
    %21 = arith.cmpi sle, %16, %20 : vector<10x10x16xi32>
    %22 = arith.andi %19, %21 : vector<10x10x16xi1>
    %c1_i32_8 = arith.constant 1 : i32
    %23 = vector.broadcast %c1_i32_8 : i32 to vector<10x10x16xi32>
    %24 = arith.cmpi sge, %17, %23 : vector<10x10x16xi32>
    %25 = arith.andi %22, %24 : vector<10x10x16xi1>
    %c8_i32_9 = arith.constant 8 : i32
    %26 = vector.broadcast %c8_i32_9 : i32 to vector<10x10x16xi32>
    %27 = arith.cmpi sle, %17, %26 : vector<10x10x16xi32>
    %28 = arith.andi %25, %27 : vector<10x10x16xi1>
    %cst_10 = arith.constant 0.000000e+00 : f32
    %29 = vector.broadcast %cst_10 : f32 to vector<10x10x16xf32>
    %30 = arith.select %28, %15, %29 : vector<10x10x16xi1>, vector<10x10x16xf32>
    %31 = arith.truncf %30 : vector<10x10x16xf32> to vector<10x10x16xbf16>
    %cst_11 = arith.constant 0.000000e+00 : f32
    %32 = vector.broadcast %cst_11 : f32 to vector<64x32xf32>
    %33 = vector.extract_strided_slice %31 {offsets = [0, 0, 0], sizes = [8, 8, 16], strides = [1, 1, 1]} : vector<10x10x16xbf16> to vector<8x8x16xbf16>
    %34 = vector.shape_cast %33 : vector<8x8x16xbf16> to vector<64x16xbf16>
    %c0_12 = arith.constant 0 : index
    %c0_13 = arith.constant 0 : index
    %c0_14 = arith.constant 0 : index
    %35 = vector.load %arg2[%c0_12, %c0_13, %c0_14] : memref<9x16x32xbf16, #tpu.memory_space<vmem>>, vector<1x16x32xbf16>
    %36 = vector.shape_cast %35 : vector<1x16x32xbf16> to vector<16x32xbf16>
    %cst_15 = arith.constant dense<0.000000e+00> : vector<64x32xf32>
    %37 = tpu.matmul %34, %36, %cst_15 {dimension_numbers = #tpu.dot_dimension_numbers<[1], [0], [0], [1], [0, 0, 1, 1], [], []>} : vector<64x16xbf16>, vector<16x32xbf16>, vector<64x32xf32> -> vector<64x32xf32>
    %38 = arith.addf %32, %37 : vector<64x32xf32>
    %39 = vector.extract_strided_slice %31 {offsets = [0, 1, 0], sizes = [8, 8, 16], strides = [1, 1, 1]} : vector<10x10x16xbf16> to vector<8x8x16xbf16>
    %40 = vector.shape_cast %39 : vector<8x8x16xbf16> to vector<64x16xbf16>
    %c1 = arith.constant 1 : index
    %c0_16 = arith.constant 0 : index
    %c0_17 = arith.constant 0 : index
    %41 = vector.load %arg2[%c1, %c0_16, %c0_17] : memref<9x16x32xbf16, #tpu.memory_space<vmem>>, vector<1x16x32xbf16>
    %42 = vector.shape_cast %41 : vector<1x16x32xbf16> to vector<16x32xbf16>
    %cst_18 = arith.constant dense<0.000000e+00> : vector<64x32xf32>
    %43 = tpu.matmul %40, %42, %cst_18 {dimension_numbers = #tpu.dot_dimension_numbers<[1], [0], [0], [1], [0, 0, 1, 1], [], []>} : vector<64x16xbf16>, vector<16x32xbf16>, vector<64x32xf32> -> vector<64x32xf32>
    %44 = arith.addf %38, %43 : vector<64x32xf32>
    %45 = vector.extract_strided_slice %31 {offsets = [0, 2, 0], sizes = [8, 8, 16], strides = [1, 1, 1]} : vector<10x10x16xbf16> to vector<8x8x16xbf16>
    %46 = vector.shape_cast %45 : vector<8x8x16xbf16> to vector<64x16xbf16>
    %c2 = arith.constant 2 : index
    %c0_19 = arith.constant 0 : index
    %c0_20 = arith.constant 0 : index
    %47 = vector.load %arg2[%c2, %c0_19, %c0_20] : memref<9x16x32xbf16, #tpu.memory_space<vmem>>, vector<1x16x32xbf16>
    %48 = vector.shape_cast %47 : vector<1x16x32xbf16> to vector<16x32xbf16>
    %cst_21 = arith.constant dense<0.000000e+00> : vector<64x32xf32>
    %49 = tpu.matmul %46, %48, %cst_21 {dimension_numbers = #tpu.dot_dimension_numbers<[1], [0], [0], [1], [0, 0, 1, 1], [], []>} : vector<64x16xbf16>, vector<16x32xbf16>, vector<64x32xf32> -> vector<64x32xf32>
    %50 = arith.addf %44, %49 : vector<64x32xf32>
    %51 = vector.extract_strided_slice %31 {offsets = [1, 0, 0], sizes = [8, 8, 16], strides = [1, 1, 1]} : vector<10x10x16xbf16> to vector<8x8x16xbf16>
    %52 = vector.shape_cast %51 : vector<8x8x16xbf16> to vector<64x16xbf16>
    %c3 = arith.constant 3 : index
    %c0_22 = arith.constant 0 : index
    %c0_23 = arith.constant 0 : index
    %53 = vector.load %arg2[%c3, %c0_22, %c0_23] : memref<9x16x32xbf16, #tpu.memory_space<vmem>>, vector<1x16x32xbf16>
    %54 = vector.shape_cast %53 : vector<1x16x32xbf16> to vector<16x32xbf16>
    %cst_24 = arith.constant dense<0.000000e+00> : vector<64x32xf32>
    %55 = tpu.matmul %52, %54, %cst_24 {dimension_numbers = #tpu.dot_dimension_numbers<[1], [0], [0], [1], [0, 0, 1, 1], [], []>} : vector<64x16xbf16>, vector<16x32xbf16>, vector<64x32xf32> -> vector<64x32xf32>
    %56 = arith.addf %50, %55 : vector<64x32xf32>
    %57 = vector.extract_strided_slice %31 {offsets = [1, 1, 0], sizes = [8, 8, 16], strides = [1, 1, 1]} : vector<10x10x16xbf16> to vector<8x8x16xbf16>
    %58 = vector.shape_cast %57 : vector<8x8x16xbf16> to vector<64x16xbf16>
    %c4 = arith.constant 4 : index
    %c0_25 = arith.constant 0 : index
    %c0_26 = arith.constant 0 : index
    %59 = vector.load %arg2[%c4, %c0_25, %c0_26] : memref<9x16x32xbf16, #tpu.memory_space<vmem>>, vector<1x16x32xbf16>
    %60 = vector.shape_cast %59 : vector<1x16x32xbf16> to vector<16x32xbf16>
    %cst_27 = arith.constant dense<0.000000e+00> : vector<64x32xf32>
    %61 = tpu.matmul %58, %60, %cst_27 {dimension_numbers = #tpu.dot_dimension_numbers<[1], [0], [0], [1], [0, 0, 1, 1], [], []>} : vector<64x16xbf16>, vector<16x32xbf16>, vector<64x32xf32> -> vector<64x32xf32>
    %62 = arith.addf %56, %61 : vector<64x32xf32>
    %63 = vector.extract_strided_slice %31 {offsets = [1, 2, 0], sizes = [8, 8, 16], strides = [1, 1, 1]} : vector<10x10x16xbf16> to vector<8x8x16xbf16>
    %64 = vector.shape_cast %63 : vector<8x8x16xbf16> to vector<64x16xbf16>
    %c5 = arith.constant 5 : index
    %c0_28 = arith.constant 0 : index
    %c0_29 = arith.constant 0 : index
    %65 = vector.load %arg2[%c5, %c0_28, %c0_29] : memref<9x16x32xbf16, #tpu.memory_space<vmem>>, vector<1x16x32xbf16>
    %66 = vector.shape_cast %65 : vector<1x16x32xbf16> to vector<16x32xbf16>
    %cst_30 = arith.constant dense<0.000000e+00> : vector<64x32xf32>
    %67 = tpu.matmul %64, %66, %cst_30 {dimension_numbers = #tpu.dot_dimension_numbers<[1], [0], [0], [1], [0, 0, 1, 1], [], []>} : vector<64x16xbf16>, vector<16x32xbf16>, vector<64x32xf32> -> vector<64x32xf32>
    %68 = arith.addf %62, %67 : vector<64x32xf32>
    %69 = vector.extract_strided_slice %31 {offsets = [2, 0, 0], sizes = [8, 8, 16], strides = [1, 1, 1]} : vector<10x10x16xbf16> to vector<8x8x16xbf16>
    %70 = vector.shape_cast %69 : vector<8x8x16xbf16> to vector<64x16xbf16>
    %c6 = arith.constant 6 : index
    %c0_31 = arith.constant 0 : index
    %c0_32 = arith.constant 0 : index
    %71 = vector.load %arg2[%c6, %c0_31, %c0_32] : memref<9x16x32xbf16, #tpu.memory_space<vmem>>, vector<1x16x32xbf16>
    %72 = vector.shape_cast %71 : vector<1x16x32xbf16> to vector<16x32xbf16>
    %cst_33 = arith.constant dense<0.000000e+00> : vector<64x32xf32>
    %73 = tpu.matmul %70, %72, %cst_33 {dimension_numbers = #tpu.dot_dimension_numbers<[1], [0], [0], [1], [0, 0, 1, 1], [], []>} : vector<64x16xbf16>, vector<16x32xbf16>, vector<64x32xf32> -> vector<64x32xf32>
    %74 = arith.addf %68, %73 : vector<64x32xf32>
    %75 = vector.extract_strided_slice %31 {offsets = [2, 1, 0], sizes = [8, 8, 16], strides = [1, 1, 1]} : vector<10x10x16xbf16> to vector<8x8x16xbf16>
    %76 = vector.shape_cast %75 : vector<8x8x16xbf16> to vector<64x16xbf16>
    %c7 = arith.constant 7 : index
    %c0_34 = arith.constant 0 : index
    %c0_35 = arith.constant 0 : index
    %77 = vector.load %arg2[%c7, %c0_34, %c0_35] : memref<9x16x32xbf16, #tpu.memory_space<vmem>>, vector<1x16x32xbf16>
    %78 = vector.shape_cast %77 : vector<1x16x32xbf16> to vector<16x32xbf16>
    %cst_36 = arith.constant dense<0.000000e+00> : vector<64x32xf32>
    %79 = tpu.matmul %76, %78, %cst_36 {dimension_numbers = #tpu.dot_dimension_numbers<[1], [0], [0], [1], [0, 0, 1, 1], [], []>} : vector<64x16xbf16>, vector<16x32xbf16>, vector<64x32xf32> -> vector<64x32xf32>
    %80 = arith.addf %74, %79 : vector<64x32xf32>
    %81 = vector.extract_strided_slice %31 {offsets = [2, 2, 0], sizes = [8, 8, 16], strides = [1, 1, 1]} : vector<10x10x16xbf16> to vector<8x8x16xbf16>
    %82 = vector.shape_cast %81 : vector<8x8x16xbf16> to vector<64x16xbf16>
    %c8 = arith.constant 8 : index
    %c0_37 = arith.constant 0 : index
    %c0_38 = arith.constant 0 : index
    %83 = vector.load %arg2[%c8, %c0_37, %c0_38] : memref<9x16x32xbf16, #tpu.memory_space<vmem>>, vector<1x16x32xbf16>
    %84 = vector.shape_cast %83 : vector<1x16x32xbf16> to vector<16x32xbf16>
    %cst_39 = arith.constant dense<0.000000e+00> : vector<64x32xf32>
    %85 = tpu.matmul %82, %84, %cst_39 {dimension_numbers = #tpu.dot_dimension_numbers<[1], [0], [0], [1], [0, 0, 1, 1], [], []>} : vector<64x16xbf16>, vector<16x32xbf16>, vector<64x32xf32> -> vector<64x32xf32>
    %86 = arith.addf %80, %85 : vector<64x32xf32>
    %cst_40 = arith.constant dense<0.000000e+00> : vector<32xf32>
    %87 = vector.multi_reduction <add>, %86, %cst_40 [0] : vector<64x32xf32> to vector<32xf32>
    %88 = vector.shape_cast %87 : vector<32xf32> to vector<1x32xf32>
    %c0_41 = arith.constant 0 : index
    %c0_42 = arith.constant 0 : index
    %c0_43 = arith.constant 0 : index
    %89 = vector.load %arg6[%c0_41, %c0_42, %c0_43] : memref<1x1x32xf32, #tpu.memory_space<vmem>>, vector<1x1x32xf32>
    %90 = vector.shape_cast %89 : vector<1x1x32xf32> to vector<1x32xf32>
    %91 = vector.shape_cast %88 : vector<1x32xf32> to vector<1x1x32xf32>
    tpu.vector_store %arg6[%c0_41, %c0_42, %c0_43], %91 {strides = array<i32>} : memref<1x1x32xf32, #tpu.memory_space<vmem>>, vector<1x1x32xf32>,
    %92 = arith.mulf %86, %86 : vector<64x32xf32>
    %cst_44 = arith.constant dense<0.000000e+00> : vector<32xf32>
    %93 = vector.multi_reduction <add>, %92, %cst_44 [0] : vector<64x32xf32> to vector<32xf32>
    %94 = vector.shape_cast %93 : vector<32xf32> to vector<1x32xf32>
    %c0_45 = arith.constant 0 : index
    %c0_46 = arith.constant 0 : index
    %c0_47 = arith.constant 0 : index
    %95 = vector.load %arg7[%c0_45, %c0_46, %c0_47] : memref<1x1x32xf32, #tpu.memory_space<vmem>>, vector<1x1x32xf32>
    %96 = vector.shape_cast %95 : vector<1x1x32xf32> to vector<1x32xf32>
    %97 = vector.shape_cast %94 : vector<1x32xf32> to vector<1x1x32xf32>
    tpu.vector_store %arg7[%c0_45, %c0_46, %c0_47], %97 {strides = array<i32>} : memref<1x1x32xf32, #tpu.memory_space<vmem>>, vector<1x1x32xf32>,
    %98 = vector.shape_cast %86 : vector<64x32xf32> to vector<8x8x32xf32>
    %99 = arith.truncf %98 : vector<8x8x32xf32> to vector<8x8x32xbf16>
    %c0_48 = arith.constant 0 : index
    %c0_49 = arith.constant 0 : index
    %c0_50 = arith.constant 0 : index
    %c0_51 = arith.constant 0 : index
    %100 = vector.load %arg5[%c0_48, %c0_49, %c0_50, %c0_51] : memref<1x8x8x32xbf16, #tpu.memory_space<vmem>>, vector<1x8x8x32xbf16>
    %101 = vector.shape_cast %100 : vector<1x8x8x32xbf16> to vector<8x8x32xbf16>
    %102 = vector.shape_cast %99 : vector<8x8x32xbf16> to vector<1x8x8x32xbf16>
    tpu.vector_store %arg5[%c0_48, %c0_49, %c0_50, %c0_51], %102 {strides = array<i32>} : memref<1x8x8x32xbf16, #tpu.memory_space<vmem>>, vector<1x8x8x32xbf16>,
    return
  }
  func.func @transform_0(%arg0: i32) -> (i32, i32, i32, i32) {
    %c0_i32 = arith.constant 0 : i32
    %c0_i32_0 = arith.constant 0 : i32
    %c0_i32_1 = arith.constant 0 : i32
    %c0_i32_2 = arith.constant 0 : i32
    return %arg0, %c0_i32, %c0_i32_0, %c0_i32_1 : i32, i32, i32, i32
  }
  func.func @transform_1(%arg0: i32) -> (i32, i32, i32) {
    %c0_i32 = arith.constant 0 : i32
    %c0_i32_0 = arith.constant 0 : i32
    %c0_i32_1 = arith.constant 0 : i32
    %c0_i32_2 = arith.constant 0 : i32
    return %c0_i32, %c0_i32_0, %c0_i32_1 : i32, i32, i32
  }
  func.func @transform_2(%arg0: i32) -> (i32, i32) {
    %c0_i32 = arith.constant 0 : i32
    %c0_i32_0 = arith.constant 0 : i32
    %c0_i32_1 = arith.constant 0 : i32
    return %c0_i32, %c0_i32_0 : i32, i32
  }
  func.func @transform_3(%arg0: i32) -> (i32, i32) {
    %c0_i32 = arith.constant 0 : i32
    %c0_i32_0 = arith.constant 0 : i32
    %c0_i32_1 = arith.constant 0 : i32
    return %c0_i32, %c0_i32_0 : i32, i32
  }
  func.func @transform_4(%arg0: i32) -> (i32, i32, i32, i32) {
    %c0_i32 = arith.constant 0 : i32
    %c0_i32_0 = arith.constant 0 : i32
    %c0_i32_1 = arith.constant 0 : i32
    %c0_i32_2 = arith.constant 0 : i32
    return %arg0, %c0_i32, %c0_i32_0, %c0_i32_1 : i32, i32, i32, i32
  }
  func.func @transform_5(%arg0: i32) -> (i32, i32, i32) {
    %c0_i32 = arith.constant 0 : i32
    %c0_i32_0 = arith.constant 0 : i32
    %c0_i32_1 = arith.constant 0 : i32
    return %arg0, %c0_i32, %c0_i32_0 : i32, i32, i32
  }
  func.func @transform_6(%arg0: i32) -> (i32, i32, i32) {
    %c0_i32 = arith.constant 0 : i32
    %c0_i32_0 = arith.constant 0 : i32
    %c0_i32_1 = arith.constant 0 : i32
    return %arg0, %c0_i32, %c0_i32_0 : i32, i32, i32
  }
}

module attributes {stable_mosaic.version = 11 : i64} {
  func.func @kernel(%arg0: i32, %arg1: memref<1x18x18x8xbf16, #tpu.memory_space<vmem>>, %arg2: memref<9x3x8xbf16, #tpu.memory_space<vmem>>, %arg3: memref<1x8xf32, #tpu.memory_space<vmem>>, %arg4: memref<1x8xf32, #tpu.memory_space<vmem>>, %arg5: memref<1x3x256xf32, #tpu.memory_space<vmem>>) attributes {dimension_semantics = [#tpu.dimension_semantics<parallel>], iteration_bounds = array<i64: 2>, scalar_prefetch = 0 : i64, scratch_operands = 0 : i64, tpu.core_type = #tpu.core_type<tc>, window_params = [{transform_indices = @transform_0, window_bounds = array<i64: 1, 18, 18, 8>}, {pipeline_mode = #tpu.pipeline_mode<synchronous>, transform_indices = @transform_1, window_bounds = array<i64: 9, 3, 8>}, {pipeline_mode = #tpu.pipeline_mode<synchronous>, transform_indices = @transform_2, window_bounds = array<i64: 1, 8>}, {pipeline_mode = #tpu.pipeline_mode<synchronous>, transform_indices = @transform_3, window_bounds = array<i64: 1, 8>}, {transform_indices = @transform_4, window_bounds = array<i64: 1, 3, 256>}]} {
    %c0 = arith.constant 0 : index
    %c0_0 = arith.constant 0 : index
    %c0_1 = arith.constant 0 : index
    %c0_2 = arith.constant 0 : index
    %0 = vector.load %arg1[%c0, %c0_0, %c0_1, %c0_2] : memref<1x18x18x8xbf16, #tpu.memory_space<vmem>>, vector<1x18x18x8xbf16>
    %1 = vector.shape_cast %0 : vector<1x18x18x8xbf16> to vector<18x18x8xbf16>
    %2 = arith.extf %1 : vector<18x18x8xbf16> to vector<18x18x8xf32>
    %c0_3 = arith.constant 0 : index
    %c0_4 = arith.constant 0 : index
    %3 = vector.load %arg3[%c0_3, %c0_4] : memref<1x8xf32, #tpu.memory_space<vmem>>, vector<1x8xf32>
    %4 = vector.shape_cast %3 : vector<1x8xf32> to vector<1x1x8xf32>
    %5 = vector.broadcast %4 : vector<1x1x8xf32> to vector<18x18x8xf32>
    %6 = arith.subf %2, %5 : vector<18x18x8xf32>
    %c0_5 = arith.constant 0 : index
    %c0_6 = arith.constant 0 : index
    %7 = vector.load %arg4[%c0_5, %c0_6] : memref<1x8xf32, #tpu.memory_space<vmem>>, vector<1x8xf32>
    %8 = vector.shape_cast %7 : vector<1x8xf32> to vector<1x1x8xf32>
    %9 = vector.broadcast %8 : vector<1x1x8xf32> to vector<18x18x8xf32>
    %10 = arith.mulf %6, %9 : vector<18x18x8xf32>
    %cst = arith.constant 0.000000e+00 : f32
    %11 = vector.broadcast %cst : f32 to vector<18x18x8xf32>
    %12 = arith.maximumf %10, %11 : vector<18x18x8xf32>
    %13 = tpu.iota {dimensions = array<i32: 0>} : vector<18x18x8xi32>
    %14 = tpu.iota {dimensions = array<i32: 1>} : vector<18x18x8xi32>
    %c1_i32 = arith.constant 1 : i32
    %15 = vector.broadcast %c1_i32 : i32 to vector<18x18x8xi32>
    %16 = arith.cmpi sge, %13, %15 : vector<18x18x8xi32>
    %c16_i32 = arith.constant 16 : i32
    %17 = vector.broadcast %c16_i32 : i32 to vector<18x18x8xi32>
    %18 = arith.cmpi sle, %13, %17 : vector<18x18x8xi32>
    %19 = arith.andi %16, %18 : vector<18x18x8xi1>
    %c1_i32_7 = arith.constant 1 : i32
    %20 = vector.broadcast %c1_i32_7 : i32 to vector<18x18x8xi32>
    %21 = arith.cmpi sge, %14, %20 : vector<18x18x8xi32>
    %22 = arith.andi %19, %21 : vector<18x18x8xi1>
    %c16_i32_8 = arith.constant 16 : i32
    %23 = vector.broadcast %c16_i32_8 : i32 to vector<18x18x8xi32>
    %24 = arith.cmpi sle, %14, %23 : vector<18x18x8xi32>
    %25 = arith.andi %22, %24 : vector<18x18x8xi1>
    %cst_9 = arith.constant 0.000000e+00 : f32
    %26 = vector.broadcast %cst_9 : f32 to vector<18x18x8xf32>
    %27 = arith.select %25, %12, %26 : vector<18x18x8xi1>, vector<18x18x8xf32>
    %28 = arith.truncf %27 : vector<18x18x8xf32> to vector<18x18x8xbf16>
    %cst_10 = arith.constant 0.000000e+00 : f32
    %29 = vector.broadcast %cst_10 : f32 to vector<3x256xf32>
    %30 = vector.extract_strided_slice %28 {offsets = [0, 0, 0], sizes = [16, 16, 8], strides = [1, 1, 1]} : vector<18x18x8xbf16> to vector<16x16x8xbf16>
    %31 = vector.shape_cast %30 : vector<16x16x8xbf16> to vector<256x8xbf16>
    %c0_11 = arith.constant 0 : index
    %c0_12 = arith.constant 0 : index
    %c0_13 = arith.constant 0 : index
    %32 = vector.load %arg2[%c0_11, %c0_12, %c0_13] : memref<9x3x8xbf16, #tpu.memory_space<vmem>>, vector<1x3x8xbf16>
    %33 = vector.shape_cast %32 : vector<1x3x8xbf16> to vector<3x8xbf16>
    %cst_14 = arith.constant dense<0.000000e+00> : vector<3x256xf32>
    %34 = tpu.matmul %33, %31, %cst_14 {dimension_numbers = #tpu.dot_dimension_numbers<[1], [1], [0], [0], [0, 0, 1, 0], [], []>} : vector<3x8xbf16>, vector<256x8xbf16>, vector<3x256xf32> -> vector<3x256xf32>
    %35 = arith.addf %29, %34 : vector<3x256xf32>
    %36 = vector.extract_strided_slice %28 {offsets = [0, 1, 0], sizes = [16, 16, 8], strides = [1, 1, 1]} : vector<18x18x8xbf16> to vector<16x16x8xbf16>
    %37 = vector.shape_cast %36 : vector<16x16x8xbf16> to vector<256x8xbf16>
    %c1 = arith.constant 1 : index
    %c0_15 = arith.constant 0 : index
    %c0_16 = arith.constant 0 : index
    %38 = vector.load %arg2[%c1, %c0_15, %c0_16] : memref<9x3x8xbf16, #tpu.memory_space<vmem>>, vector<1x3x8xbf16>
    %39 = vector.shape_cast %38 : vector<1x3x8xbf16> to vector<3x8xbf16>
    %cst_17 = arith.constant dense<0.000000e+00> : vector<3x256xf32>
    %40 = tpu.matmul %39, %37, %cst_17 {dimension_numbers = #tpu.dot_dimension_numbers<[1], [1], [0], [0], [0, 0, 1, 0], [], []>} : vector<3x8xbf16>, vector<256x8xbf16>, vector<3x256xf32> -> vector<3x256xf32>
    %41 = arith.addf %35, %40 : vector<3x256xf32>
    %42 = vector.extract_strided_slice %28 {offsets = [0, 2, 0], sizes = [16, 16, 8], strides = [1, 1, 1]} : vector<18x18x8xbf16> to vector<16x16x8xbf16>
    %43 = vector.shape_cast %42 : vector<16x16x8xbf16> to vector<256x8xbf16>
    %c2 = arith.constant 2 : index
    %c0_18 = arith.constant 0 : index
    %c0_19 = arith.constant 0 : index
    %44 = vector.load %arg2[%c2, %c0_18, %c0_19] : memref<9x3x8xbf16, #tpu.memory_space<vmem>>, vector<1x3x8xbf16>
    %45 = vector.shape_cast %44 : vector<1x3x8xbf16> to vector<3x8xbf16>
    %cst_20 = arith.constant dense<0.000000e+00> : vector<3x256xf32>
    %46 = tpu.matmul %45, %43, %cst_20 {dimension_numbers = #tpu.dot_dimension_numbers<[1], [1], [0], [0], [0, 0, 1, 0], [], []>} : vector<3x8xbf16>, vector<256x8xbf16>, vector<3x256xf32> -> vector<3x256xf32>
    %47 = arith.addf %41, %46 : vector<3x256xf32>
    %48 = vector.extract_strided_slice %28 {offsets = [1, 0, 0], sizes = [16, 16, 8], strides = [1, 1, 1]} : vector<18x18x8xbf16> to vector<16x16x8xbf16>
    %49 = vector.shape_cast %48 : vector<16x16x8xbf16> to vector<256x8xbf16>
    %c3 = arith.constant 3 : index
    %c0_21 = arith.constant 0 : index
    %c0_22 = arith.constant 0 : index
    %50 = vector.load %arg2[%c3, %c0_21, %c0_22] : memref<9x3x8xbf16, #tpu.memory_space<vmem>>, vector<1x3x8xbf16>
    %51 = vector.shape_cast %50 : vector<1x3x8xbf16> to vector<3x8xbf16>
    %cst_23 = arith.constant dense<0.000000e+00> : vector<3x256xf32>
    %52 = tpu.matmul %51, %49, %cst_23 {dimension_numbers = #tpu.dot_dimension_numbers<[1], [1], [0], [0], [0, 0, 1, 0], [], []>} : vector<3x8xbf16>, vector<256x8xbf16>, vector<3x256xf32> -> vector<3x256xf32>
    %53 = arith.addf %47, %52 : vector<3x256xf32>
    %54 = vector.extract_strided_slice %28 {offsets = [1, 1, 0], sizes = [16, 16, 8], strides = [1, 1, 1]} : vector<18x18x8xbf16> to vector<16x16x8xbf16>
    %55 = vector.shape_cast %54 : vector<16x16x8xbf16> to vector<256x8xbf16>
    %c4 = arith.constant 4 : index
    %c0_24 = arith.constant 0 : index
    %c0_25 = arith.constant 0 : index
    %56 = vector.load %arg2[%c4, %c0_24, %c0_25] : memref<9x3x8xbf16, #tpu.memory_space<vmem>>, vector<1x3x8xbf16>
    %57 = vector.shape_cast %56 : vector<1x3x8xbf16> to vector<3x8xbf16>
    %cst_26 = arith.constant dense<0.000000e+00> : vector<3x256xf32>
    %58 = tpu.matmul %57, %55, %cst_26 {dimension_numbers = #tpu.dot_dimension_numbers<[1], [1], [0], [0], [0, 0, 1, 0], [], []>} : vector<3x8xbf16>, vector<256x8xbf16>, vector<3x256xf32> -> vector<3x256xf32>
    %59 = arith.addf %53, %58 : vector<3x256xf32>
    %60 = vector.extract_strided_slice %28 {offsets = [1, 2, 0], sizes = [16, 16, 8], strides = [1, 1, 1]} : vector<18x18x8xbf16> to vector<16x16x8xbf16>
    %61 = vector.shape_cast %60 : vector<16x16x8xbf16> to vector<256x8xbf16>
    %c5 = arith.constant 5 : index
    %c0_27 = arith.constant 0 : index
    %c0_28 = arith.constant 0 : index
    %62 = vector.load %arg2[%c5, %c0_27, %c0_28] : memref<9x3x8xbf16, #tpu.memory_space<vmem>>, vector<1x3x8xbf16>
    %63 = vector.shape_cast %62 : vector<1x3x8xbf16> to vector<3x8xbf16>
    %cst_29 = arith.constant dense<0.000000e+00> : vector<3x256xf32>
    %64 = tpu.matmul %63, %61, %cst_29 {dimension_numbers = #tpu.dot_dimension_numbers<[1], [1], [0], [0], [0, 0, 1, 0], [], []>} : vector<3x8xbf16>, vector<256x8xbf16>, vector<3x256xf32> -> vector<3x256xf32>
    %65 = arith.addf %59, %64 : vector<3x256xf32>
    %66 = vector.extract_strided_slice %28 {offsets = [2, 0, 0], sizes = [16, 16, 8], strides = [1, 1, 1]} : vector<18x18x8xbf16> to vector<16x16x8xbf16>
    %67 = vector.shape_cast %66 : vector<16x16x8xbf16> to vector<256x8xbf16>
    %c6 = arith.constant 6 : index
    %c0_30 = arith.constant 0 : index
    %c0_31 = arith.constant 0 : index
    %68 = vector.load %arg2[%c6, %c0_30, %c0_31] : memref<9x3x8xbf16, #tpu.memory_space<vmem>>, vector<1x3x8xbf16>
    %69 = vector.shape_cast %68 : vector<1x3x8xbf16> to vector<3x8xbf16>
    %cst_32 = arith.constant dense<0.000000e+00> : vector<3x256xf32>
    %70 = tpu.matmul %69, %67, %cst_32 {dimension_numbers = #tpu.dot_dimension_numbers<[1], [1], [0], [0], [0, 0, 1, 0], [], []>} : vector<3x8xbf16>, vector<256x8xbf16>, vector<3x256xf32> -> vector<3x256xf32>
    %71 = arith.addf %65, %70 : vector<3x256xf32>
    %72 = vector.extract_strided_slice %28 {offsets = [2, 1, 0], sizes = [16, 16, 8], strides = [1, 1, 1]} : vector<18x18x8xbf16> to vector<16x16x8xbf16>
    %73 = vector.shape_cast %72 : vector<16x16x8xbf16> to vector<256x8xbf16>
    %c7 = arith.constant 7 : index
    %c0_33 = arith.constant 0 : index
    %c0_34 = arith.constant 0 : index
    %74 = vector.load %arg2[%c7, %c0_33, %c0_34] : memref<9x3x8xbf16, #tpu.memory_space<vmem>>, vector<1x3x8xbf16>
    %75 = vector.shape_cast %74 : vector<1x3x8xbf16> to vector<3x8xbf16>
    %cst_35 = arith.constant dense<0.000000e+00> : vector<3x256xf32>
    %76 = tpu.matmul %75, %73, %cst_35 {dimension_numbers = #tpu.dot_dimension_numbers<[1], [1], [0], [0], [0, 0, 1, 0], [], []>} : vector<3x8xbf16>, vector<256x8xbf16>, vector<3x256xf32> -> vector<3x256xf32>
    %77 = arith.addf %71, %76 : vector<3x256xf32>
    %78 = vector.extract_strided_slice %28 {offsets = [2, 2, 0], sizes = [16, 16, 8], strides = [1, 1, 1]} : vector<18x18x8xbf16> to vector<16x16x8xbf16>
    %79 = vector.shape_cast %78 : vector<16x16x8xbf16> to vector<256x8xbf16>
    %c8 = arith.constant 8 : index
    %c0_36 = arith.constant 0 : index
    %c0_37 = arith.constant 0 : index
    %80 = vector.load %arg2[%c8, %c0_36, %c0_37] : memref<9x3x8xbf16, #tpu.memory_space<vmem>>, vector<1x3x8xbf16>
    %81 = vector.shape_cast %80 : vector<1x3x8xbf16> to vector<3x8xbf16>
    %cst_38 = arith.constant dense<0.000000e+00> : vector<3x256xf32>
    %82 = tpu.matmul %81, %79, %cst_38 {dimension_numbers = #tpu.dot_dimension_numbers<[1], [1], [0], [0], [0, 0, 1, 0], [], []>} : vector<3x8xbf16>, vector<256x8xbf16>, vector<3x256xf32> -> vector<3x256xf32>
    %83 = arith.addf %77, %82 : vector<3x256xf32>
    %84 = math.tanh %83 : vector<3x256xf32>
    %c0_39 = arith.constant 0 : index
    %c0_40 = arith.constant 0 : index
    %c0_41 = arith.constant 0 : index
    %85 = vector.load %arg5[%c0_39, %c0_40, %c0_41] : memref<1x3x256xf32, #tpu.memory_space<vmem>>, vector<1x3x256xf32>
    %86 = vector.shape_cast %85 : vector<1x3x256xf32> to vector<3x256xf32>
    %87 = vector.shape_cast %84 : vector<3x256xf32> to vector<1x3x256xf32>
    tpu.vector_store %arg5[%c0_39, %c0_40, %c0_41], %87 {strides = array<i32>} : memref<1x3x256xf32, #tpu.memory_space<vmem>>, vector<1x3x256xf32>,
    return
  }
  func.func @transform_0(%arg0: i32) -> (i32, i32, i32, i32) {
    %c0_i32 = arith.constant 0 : i32
    %c0_i32_0 = arith.constant 0 : i32
    %c0_i32_1 = arith.constant 0 : i32
    %c0_i32_2 = arith.constant 0 : i32
    return %arg0, %c0_i32, %c0_i32_0, %c0_i32_1 : i32, i32, i32, i32
  }
  func.func @transform_1(%arg0: i32) -> (i32, i32, i32) {
    %c0_i32 = arith.constant 0 : i32
    %c0_i32_0 = arith.constant 0 : i32
    %c0_i32_1 = arith.constant 0 : i32
    %c0_i32_2 = arith.constant 0 : i32
    return %c0_i32, %c0_i32_0, %c0_i32_1 : i32, i32, i32
  }
  func.func @transform_2(%arg0: i32) -> (i32, i32) {
    %c0_i32 = arith.constant 0 : i32
    %c0_i32_0 = arith.constant 0 : i32
    %c0_i32_1 = arith.constant 0 : i32
    return %c0_i32, %c0_i32_0 : i32, i32
  }
  func.func @transform_3(%arg0: i32) -> (i32, i32) {
    %c0_i32 = arith.constant 0 : i32
    %c0_i32_0 = arith.constant 0 : i32
    %c0_i32_1 = arith.constant 0 : i32
    return %c0_i32, %c0_i32_0 : i32, i32
  }
  func.func @transform_4(%arg0: i32) -> (i32, i32, i32) {
    %c0_i32 = arith.constant 0 : i32
    %c0_i32_0 = arith.constant 0 : i32
    %c0_i32_1 = arith.constant 0 : i32
    return %arg0, %c0_i32, %c0_i32_0 : i32, i32, i32
  }
}

</mosaic_0001>

<bundles_post_ra>
// kernel: dcgan_generator_forward.4
= control target key start
LH: loop header
LB: loop body
LE: loop exit
PB: predicated region body
PF: predicated region fallthrough
CT: control target
= control target key end

     0   :  { %v137_v1 = vmov 0   ;;  %vm52_vm0 = vcmask 261120   ;;  %v22_v6 = vlaneseq  ;;  %v138_v11 = vmov 1966171168   ;;  %s180_s1 = inlined_call_operand.vmem [shape: bf16[32,256], index: 1, kind: input, shape index: {}]   ;;  %s181_s0 = inlined_call_operand.vmem [shape: bf16[2,32], index: 0, kind: input, shape index: {}]   ;;  %s182_s2 = inlined_call_operand.vmem [shape: f32[1,256], index: 2, kind: input, shape index: {}]   ;;  %s183_s3 = inlined_call_operand.vmem [shape: bf16[2,256], index: 3, kind: output, shape index: {}]  }
   0x1   :  { %v131_v0 = vld [vmem:[%s180_s1 + $0x4] ss:$8 sps:$4 sm:$0xff]   ;;  %88 = vmatprep.mubr.bf16.mxu0 %v137_v1  ;;  %v133_v2 = vld [vmem:[%s180_s1] ss:$8 sps:$4 sm:$0xff]   ;;  %v134_v3 = vld [vmem:[%s180_s1 + $0x14] ss:$8 sps:$4 sm:$0xff]   ;;  %v103_v12 = vunpack.c.l.s4 %v138_v11 }
   0x2   :  { %56 = vmatprep.subr.bf16.mxu0 %v131_v0  ;;  %v136_v4 = vld [vmem:[%s180_s1 + $0x10] ss:$8 sps:$4 sm:$0xff]   ;;  %v15_v5 = vld [vmem:[%s181_s0] sm:$0x1]  ;;  %v23_v7 = vshrl.u32 %v22_v6, 7 }
   0x3   :  { %57 = vmatpush1.bf16.msra.mxu0 %v133_v2  ;;  %v20_v9 = vld [vmem:[%s182_s2] sm:$0x3]  ;;  %v104_v15 = vunpack.c.0.s8 %v103_v12 }
   0x4   :  { %58 = vmatprep.subr.bf16.mxu0 %v134_v3  ;;  %v24_v8 = vsub.s32 0, %v23_v7  ;;  %v28_v10 = vsub.s32 1, %v23_v7 }
   0x5   :  { %v107_v20 = vsub.s32 %v104_v15, %v23_v7 }
   0x6   :  { %v25_v13 = vrot.slane %v20_v9, %v24_v8  ;;  %v29_v14 = vrot.slane %v20_v9, %v28_v10 }
   0x7   :  { %59 = vmatpush1.bf16.msra.mxu0 %v136_v4 }
   0xa   :  { %126 = vmatmul.mubr.msk.bf16.vlgmr.msra.gmra.mrb[0].mxu0 %vm52_vm0, %v15_v5 }
  0xdd   :  { %v90_v16 = vpop.f32.mrb[0].mxu0 }
  0xde   :  { %v91_v17 = vadd.f32 %v90_v16, %v25_v13  ;;  %v92_v18 = vpop.f32.mrb[1].mxu0 }
  0xdf   :  { %v93_v19 = vadd.f32 %v92_v18, %v29_v14  ;;  %v94_v21 = vpop.f32.mrb[2].mxu0 }
  0xe0   :  { %v95_v22 = vpop.f32.mrb[3].mxu0 }
  0xe1   :  { %v127_v23 = vpack.c.bf16 %v93_v19, %v91_v17 }
  0xe3   :  { %v108_v24 = vrot.slane %v127_v23, %v107_v20 }
  0xe5   :  { %128 = vst.sshfl [vmem:[%s183_s3] sm:$0x5 pattern:$0x73625140] %v108_v24 }

// kernel: dcgan_generator_forward.5
= control target key start
LH: loop header
LB: loop body
LE: loop exit
PB: predicated region body
PF: predicated region fallthrough
CT: control target
= control target key end

     0   :  { %s1895_s18 = smov 0   ;;  %s2251_s0 = inlined_call_operand.vmem [shape: bf16[2,10,10,16], index: 0, kind: input, shape index: {}]   ;;  %s2252_s1 = inlined_call_operand.vmem [shape: bf16[9,16,16], index: 1, kind: input, shape index: {}]   ;;  %s2253_s2 = inlined_call_operand.vmem [shape: f32[1,16], index: 2, kind: input, shape index: {}]   ;;  %s2254_s3 = inlined_call_operand.vmem [shape: bf16[2,8,8,16], index: 3, kind: output, shape index: {0}]   ;;  %s2255_s4 = inlined_call_operand.vmem [shape: f32[2,1,16], index: 4, kind: output, shape index: {1}]   ;;  %s2256_s5 = inlined_call_operand.vmem [shape: f32[2,1,16], index: 5, kind: output, shape index: {2}]  }
   0x1 LB: > { %s1519_s19 = sadd.s32 4294967295, %s1863_s18   ;;  %p1523_p0 = scmp.ge.s32.totalorder %s1863_s18, 1  ;;  %s1863_s18 = sphi %s1895_s18, %s16_s18  }
   0x2   : > { %p192_p1 = scmp.lt.s32.totalorder %s1863_s18, 3 }
   0x4   : > { %p193_p2 = pnand %p1523_p0, %p192_p1 }
   0x5   : > { %v1839_v0 = vld [vmem:[%s2252_s1 + $0x8] sm:$0xff] (!%p193_p2)   ;;  %p226_p3 = scmp.lt.s32.totalorder (!%p193_p2), %s1519_s19, 1  ;;  %v1909_v1 = vld [vmem:[%s2252_s1 + $0x20] sm:$0xff] (!%p193_p2)   ;;  %vm265_vm0 = vsmask.f32 (!%p193_p2), 3328  ;;  %vm401_vm2 = vcmask (!%p193_p2), 130048  }
   0x6   : > { %196 = sbr.rel (%p193_p2) target bundleno = 346 (0x15a), region = 32  ;;  %1674 = vmatprep.subr.bf16.mxu1 (!%p193_p2), %v1839_v0  ;;  %v1916_v2 = vld [vmem:[%s2252_s1] sm:$0xff] (!%p193_p2)   ;;  %1714 = vmatprep.subr.bf16.mxu0 (!%p193_p2), %v1909_v1  ;;  %v1925_v3 = vld [vmem:[%s2252_s1 + $0x28] sm:$0xff] (!%p193_p2)   ;;  %vm266_vm1 = vsmask.f32 (!%p193_p2), 7440  ;;  %vm590_vm4 = vcmask (!%p193_p2), 1042432  }
   0x7   : > { %1675 = vmatpush3.bf16.msra.mxu1 (!%p193_p2), %v1839_v0  ;;  %1715 = vmatpush3.bf16.msra.mxu0 (!%p193_p2), %v1909_v1  ;;  %vm1968_vm3 = vmor (!%p193_p2), %vm265_vm0, %vm266_vm1  ;;  %vm591_vm5 = vcmask (!%p193_p2), 1046532   ;;  %vm1405_vm7 = vcmask (!%p193_p2), 125952   ;;  %vm1365_vm8 = vcmask (!%p193_p2), 122880  }
   0x8   : > { %1684 = vmatprep.subr.bf16.mxu1 (!%p193_p2), %v1916_v2  ;;  %1724 = vmatprep.subr.bf16.mxu0 (!%p193_p2), %v1925_v3  ;;  %vm2039_vm6 = vmor (!%p193_p2), %vm590_vm4, %vm591_vm5 }
   0xd   : > { %s2262_s19 = smov (!%p226_p3, %s1519_s19), 1 }
   0xe   : > { %s1830_s26 = smul.u32 80, %s2262_s19  ;;  %s1628_s21 = sshll.u32 %s2262_s19, 5 }
   0xf   : > { %s2206_s24 = scalar_lea.vmem %s2254_s3, %s1628_s21  ;;  %s238_s27 = scalar_lea.vmem %s2255_s4, %s2262_s19 }
  0x10   : > { %s1930_s6 = scalar_lea.vmem %s2251_s0, %s1830_s26  ;;  %s241_s30 = scalar_lea.vmem %s2256_s5, %s2262_s19 }
  0x11   : > { %v1934_v4 = vld [vmem:[%s1930_s6] sm:$0xf]  ;;  %v1937_v5 = vld [vmem:[%s1930_s6 + $0x4] sm:$0x1]  ;;  %v1940_v6 = vld [vmem:[%s1930_s6 + $0x8] sm:$0xf] }
  0x12   : > { %v1943_v7 = vld [vmem:[%s1930_s6 + $0xc] sm:$0x1]  ;;  %v269_v8 = vshrl.u32 %v1934_v4, 16  ;;  %v272_v9 = vshll.u32 %v1934_v4, 16  ;;  %v278_v10 = vshll.u32 %v1937_v5, 16  ;;  %v283_v11 = vshrl.u32 %v1940_v6, 16 }
  0x13   : > { %v286_v12 = vshll.u32 %v1940_v6, 16  ;;  %v292_v13 = vshll.u32 %v1943_v7, 16  ;;  %v1952_v14 = vld [vmem:[%s1930_s6 + $0x10] sm:$0xf]  ;;  %v599_v18 = vrot.slane %v1943_v7, 5  ;;  %v1538_v7 = vcombine.low %v1934_v4, %v1940_v6 }
  0x14   : > { %v271_v15 = vrot.slane %v269_v8, 4  ;;  %v274_v16 = vrot.slane %v272_v9, 5  ;;  %v285_v17 = vrot.slane %v283_v11, 4  ;;  %v1956_v19 = vld [vmem:[%s1930_s6 + $0x14] sm:$0x1]  ;;  %v280_v20 = vrot.slane %v278_v10, 5 }
  0x15   : > { %v288_v21 = vrot.slane %v286_v12, 5  ;;  %v1959_v22 = vld [vmem:[%s1930_s6 + $0x18] sm:$0xf]  ;;  %v1962_v23 = vld [vmem:[%s1930_s6 + $0x1c] sm:$0x1]  ;;  %v294_v25 = vrot.slane %v292_v13, 5 }
  0x16   : > { %v275_v24 = vor.u32 %v274_v16, %v271_v15  ;;  %v297_v26 = vshrl.u32 %v1952_v14, 16  ;;  %v300_v27 = vshll.u32 %v1952_v14, 16  ;;  %v1973_v30 = vld [vmem:[%s1930_s6 + $0x20] sm:$0xf]  ;;  %v306_v31 = vshll.u32 %v1956_v19, 16 }
  0x17   : > { %v289_v29 = vor.u32 %v288_v21, %v285_v17  ;;  %v311_v32 = vshrl.u32 %v1959_v22, 16  ;;  %v314_v33 = vshll.u32 %v1959_v22, 16  ;;  %v1979_v35 = vld [vmem:[%s1930_s6 + $0x24] sm:$0x1]  ;;  %v320_v38 = vshll.u32 %v1962_v23, 16 }
  0x18   : > { %v276_v34 = vrot.slane %v275_v24, 4  ;;  %v299_v36 = vrot.slane %v297_v26, 4  ;;  %v302_v37 = vrot.slane %v300_v27, 5  ;;  %v308_v40 = vrot.slane %v306_v31, 5  ;;  %v1986_v47 = vld [vmem:[%s1930_s6 + $0x28] sm:$0xf] }
  0x19   : > { %v290_v39 = vrot.slane %v289_v29, 4  ;;  %v313_v41 = vrot.slane %v311_v32, 4  ;;  %v316_v42 = vrot.slane %v314_v33, 5  ;;  %v322_v45 = vrot.slane %v320_v38, 5  ;;  %v1993_v52 = vld [vmem:[%s1930_s6 + $0x2c] sm:$0x1] }
  0x1a   : > { %v281_v43 = vsel %vm1968_vm3, %v276_v34, %v280_v20  ;;  %v303_v44 = vor.u32 %v302_v37, %v299_v36  ;;  %v325_v46 = vshrl.u32 %v1973_v30, 16  ;;  %v328_v50 = vshll.u32 %v1973_v30, 16  ;;  %v1996_v53 = vld [vmem:[%s1930_s6 + $0x30] sm:$0xf]  ;;  %v2000_v58 = vld [vmem:[%s1930_s6 + $0x34] sm:$0x1] }
  0x1b   : > { %v295_v48 = vsel %vm1968_vm3, %v290_v39, %v294_v25  ;;  %v317_v49 = vor.u32 %v316_v42, %v313_v41  ;;  %v334_v51 = vshll.u32 %v1979_v35, 16  ;;  %v603_v57 = vrot.slane %v1956_v19, 5  ;;  %v2004_v63 = vld [vmem:[%s1930_s6 + $0x38] sm:$0xf]  ;;  %v2018_v20 = vld [vmem:[%s1930_s6 + $0x3c] sm:$0x1] }
  0x1c   : > { %v1529_v54 = vcombine.low %v281_v43, %v295_v48  ;;  %v304_v55 = vrot.slane %v303_v44, 4  ;;  %v327_v56 = vrot.slane %v325_v46, 4  ;;  %v330_v60 = vrot.slane %v328_v50, 5  ;;  %v2024_v24 = vld [vmem:[%s2252_s1 + $0x10] sm:$0xff]  }
  0x1d   : > { %v318_v59 = vrot.slane %v317_v49, 4  ;;  %v336_v61 = vrot.slane %v334_v51, 5  ;;  %v607_v62 = vrot.slane %v1962_v23, 5  ;;  %v611_v8 = vrot.slane %v1979_v35, 5 }
  0x1e   : > { %1676 = vmatprep.mubr.msk.bf16.mxu1 %vm401_vm2, %v1529_v54  ;;  %v309_v0 = vsel %vm1968_vm3, %v304_v55, %v308_v40  ;;  %v339_v9 = vshrl.u32 %v1986_v47, 16  ;;  %v342_v10 = vshll.u32 %v1986_v47, 16  ;;  %v331_v12 = vor.u32 %v330_v60, %v327_v56 }
  0x1f   : > { %v323_v11 = vsel %vm1968_vm3, %v318_v59, %v322_v45  ;;  %v1579_v13 = vcombine.low %v295_v48, %v309_v0  ;;  %v348_v15 = vshll.u32 %v1993_v52, 16  ;;  %v353_v21 = vshrl.u32 %v1996_v53, 16  ;;  %v1843_v45 = vld [vmem:[%s2252_s1 + $0x30] sm:$0xff]  }
  0x20   : > { %v2015_v16 = vcombine.low %v309_v0, %v323_v11  ;;  %v341_v17 = vrot.slane %v339_v9, 4  ;;  %v344_v19 = vrot.slane %v342_v10, 5  ;;  %v332_v25 = vrot.slane %v331_v12, 4 }
  0x21   : > { %1716 = vmatprep.mubr.msk.bf16.mxu0 %vm401_vm2, %v1579_v13  ;;  %v350_v26 = vrot.slane %v348_v15, 5  ;;  %v356_v27 = vshll.u32 %v1996_v53, 16  ;;  %v362_v29 = vshll.u32 %v2000_v58, 16  ;;  %v355_v32 = vrot.slane %v353_v21, 4  ;;  %v2103_v21 = vld [vmem:[%s1930_s6 + $0x44] sm:$0x1] }
  0x22   : > { %1677 = vmatmul.mubr.msk.bf16.vlgmr.msra.gmra.mrb[0].mxu1 %vm401_vm2, %v2015_v16  ;;  %v345_v31 = vor.u32 %v344_v19, %v341_v17  ;;  %v367_v33 = vshrl.u32 %v2004_v63, 16  ;;  %v370_v34 = vshll.u32 %v2004_v63, 16  ;;  %v337_v36 = vsel %vm1968_vm3, %v332_v25, %v336_v61  ;;  %v2100_v19 = vld [vmem:[%s1930_s6 + $0x40] sm:$0xf] }
  0x23   : > { %1685 = vmatpush3.bf16.msra.mxu1 %v1916_v2  ;;  %v358_v37 = vrot.slane %v356_v27, 5  ;;  %v364_v38 = vrot.slane %v362_v29, 5  ;;  %v376_v39 = vshll.u32 %v2018_v20, 16  ;;  %v1580_v40 = vcombine.low %v323_v11, %v337_v36  ;;  %v1849_v27 = vld [vmem:[%s2252_s1 + $0x38] sm:$0xff]  }
  0x24   : > { %v346_v41 = vrot.slane %v345_v31, 4  ;;  %v369_v42 = vrot.slane %v367_v33, 4  ;;  %v372_v43 = vrot.slane %v370_v34, 5  ;;  %1694 = vmatprep.subr.bf16.mxu1 %v2024_v24  ;;  %v1548_v48 = vrot.slane %v1940_v6, 9 }
  0x25   : > { %v359_v2 = vor.u32 %v358_v37, %v355_v32  ;;  %v378_v46 = vrot.slane %v376_v39, 5  ;;  %v1549_v49 = vrot.slane %v1952_v14, 9  ;;  %1717 = vmatmul.mubr.msk.bf16.vlgmr.msra.gmra.mrb[0].mxu0 %vm401_vm2, %v1580_v40  ;;  %v1550_v54 = vrot.slane %v1959_v22, 9  ;;  %v262_v37 = vld [vmem:[%s1930_s6 + $0x4c] sm:$0x1] }
  0x26   : > { %v2052_v50 = vsel %vm1968_vm3, %v346_v41, %v350_v26  ;;  %v373_v51 = vor.u32 %v372_v43, %v369_v42  ;;  %v1551_v55 = vrot.slane %v1973_v30, 9  ;;  %1725 = vmatpush3.bf16.msra.mxu0 %v1925_v3  ;;  %v600_v60 = vsel %vm2039_vm6, %v1548_v48, %v599_v18 }
  0x27   : > { %v2058_v56 = vcombine.low %v337_v36, %v2052_v50  ;;  %v360_v59 = vrot.slane %v359_v2, 4  ;;  %v604_v61 = vsel %vm2039_vm6, %v1549_v49, %v603_v57  ;;  %1734 = vmatprep.subr.bf16.mxu0 %v1843_v45  ;;  %v1552_v18 = vrot.slane %v1986_v47, 9  ;;  %v261_v36 = vld [vmem:[%s1930_s6 + $0x48] sm:$0xf] }
  0x28   : > { %v374_v0 = vrot.slane %v373_v51, 4  ;;  %v1591_v9 = vcombine.low %v600_v60, %v604_v61  ;;  %v615_v10 = vrot.slane %v1993_v52, 5  ;;  %v1553_v11 = vrot.slane %v1996_v53, 9 }
  0x29   : > { %1680 = vmatprep.mubr.msk.bf16.mxu1 %vm401_vm2, %v2058_v56  ;;  %v2070_v3 = vsel %vm1968_vm3, %v360_v59, %v364_v38  ;;  %v619_v12 = vrot.slane %v2000_v58, 5  ;;  %v608_v15 = vsel %vm2039_vm6, %v1550_v54, %v607_v62  ;;  %v612_v17 = vsel %vm2039_vm6, %v1551_v55, %v611_v8 }
  0x2a   : > { %v2077_v57 = vsel %vm1968_vm3, %v374_v0, %v378_v46  ;;  %1726 = vmatprep.mubr.msk.bf16.mxu0 %vm401_vm2, %v1591_v9  ;;  %v616_v52 = vsel %vm2039_vm6, %v1552_v18, %v615_v10  ;;  %v1592_v23 = vcombine.low %v608_v15, %v612_v17  ;;  %v1554_v35 = vrot.slane %v2004_v63, 9 }
  0x2b   : > { %v2085_v13 = vcombine.low %v2070_v3, %v2077_v57  ;;  %v620_v58 = vsel %vm2039_vm6, %v1553_v11, %v619_v12  ;;  %v623_v8 = vrot.slane %v2018_v20, 5  ;;  %v1588_v25 = vrot.slane %v2100_v19, 9 }
  0x2c   : > { %v1593_v62 = vcombine.low %v616_v52, %v620_v58  ;;  %v947_v26 = vrot.slane %v2103_v21, 5  ;;  %v1539_v29 = vcombine.low %v1952_v14, %v1959_v22  ;;  %v595_v31 = vrot.slane %v1937_v5, 5  ;;  %v1850_v5 = vld [vmem:[%s2252_s1 + $0x18] sm:$0xff]  }
  0x2d   : > { %1681 = vmatmul.mubr.msk.bf16.gmra.mrb[4].mxu1 %vm401_vm2, %v2085_v13  ;;  %v1540_v32 = vcombine.low %v1973_v30, %v1986_v47  ;;  %v624_v20 = vsel %vm2039_vm6, %v1554_v35, %v623_v8  ;;  %v1547_v34 = vrot.slane %v1934_v4, 9  ;;  %v1616_v38 = vrot.slane %v261_v36, 9 }
  0x2e   : > { %1686 = vmatprep.mubr.msk.bf16.mxu1 %vm401_vm2, %v1538_v7  ;;  %v2126_v33 = vsel %vm2039_vm6, %v1588_v25, %v947_v26  ;;  %v1240_v39 = vrot.slane %v262_v37, 5  ;;  %v1541_v42 = vcombine.low %v1996_v53, %v2004_v63  ;;  %v1559_v44 = vcombine.low %v612_v17, %v616_v52 }
  0x2f   : > { %v1594_v40 = vcombine.low %v624_v20, %v2126_v33  ;;  %v596_v41 = vsel %vm2039_vm6, %v1547_v34, %v595_v31  ;;  %v1137_v2 = vshrl.u32 %v261_v36, 16  ;;  %v1140_v46 = vshll.u32 %v261_v36, 16 }
  0x30   : > { %v2140_v4 = vsel %vm2039_vm6, %v1616_v38, %v1240_v39  ;;  %v1557_v43 = vcombine.low %v596_v41, %v600_v60  ;;  %v832_v48 = vshrl.u32 %v2100_v19, 16  ;;  %v835_v49 = vshll.u32 %v2100_v19, 16 }
  0x31   : > { %1727 = vmatmul.mubr.msk.bf16.vlgmr.msra.gmra.mrb[0].mxu0 %vm401_vm2, %v1592_v23  ;;  %v1602_v51 = vcombine.low %v2100_v19, %v261_v36  ;;  %v1139_v59 = vrot.slane %v1137_v2, 4  ;;  %v1142_v60 = vrot.slane %v1140_v46, 5  ;;  %v1568_v0 = vcombine.low %v1940_v6, %v1952_v14 }
  0x32   : > { %1735 = vmatpush3.bf16.msra.mxu0 %v1843_v45  ;;  %1730 = vmatprep.mubr.msk.bf16.mxu0 %vm401_vm2, %v1593_v62  ;;  %v1558_v45 = vcombine.low %v604_v61, %v608_v15  ;;  %v834_v54 = vrot.slane %v832_v48, 4  ;;  %v837_v55 = vrot.slane %v835_v49, 5  ;;  %v1560_v61 = vcombine.low %v620_v58, %v624_v20 }
  0x33   : > { %1744 = vmatprep.subr.bf16.mxu0 %v1849_v27  ;;  %v841_v7 = vshll.u32 %v2103_v21, 16  ;;  %v1143_v18 = vor.u32 %v1142_v60, %v1139_v59  ;;  %v1146_v10 = vshll.u32 %v262_v37, 16  ;;  %v1569_v52 = vcombine.low %v1959_v22, %v1973_v30 }
  0x34   : > { %v838_v9 = vor.u32 %v837_v55, %v834_v54  ;;  %v1570_v6 = vcombine.low %v1986_v47, %v1996_v53  ;;  %v1571_v30 = vcombine.low %v2004_v63, %v2100_v19  ;;  %v1581_v47 = vcombine.low %v2052_v50, %v2070_v3 }
  0x35   : > { %1687 = vmatmul.mubr.msk.bf16.vlgmr.msra.gmra.mrb[0].mxu1 %vm401_vm2, %v1539_v29  ;;  %v843_v12 = vrot.slane %v841_v7, 5  ;;  %v1144_v15 = vrot.slane %v1143_v18, 4  ;;  %v1148_v17 = vrot.slane %v1146_v10, 5  ;;  %v1619_v28 = vcombine.low %v2126_v33, %v2140_v4 }
  0x36   : > { %1695 = vmatpush3.bf16.msra.mxu1 %v2024_v24  ;;  %1690 = vmatprep.mubr.msk.bf16.mxu1 %vm401_vm2, %v1540_v32  ;;  %v1852_v24 = vld [vmem:[%s2252_s1 + $0x40] sm:$0xff]   ;;  %v839_v11 = vrot.slane %v838_v9, 4 }
  0x37   : > { %1704 = vmatprep.subr.bf16.mxu1 %v1850_v5 }
  0x38   : > { %v844_v14 = vsel %vm1968_vm3, %v839_v11, %v843_v12 }
  0x39   : > { %1731 = vmatmul.mubr.msk.bf16.gmra.mrb[4].mxu0 %vm401_vm2, %v1594_v40 }
  0x3a   : > { %1736 = vmatprep.mubr.msk.bf16.mxu0 %vm401_vm2, %v1539_v29 }
  0x3d   : > { %1691 = vmatmul.mubr.msk.bf16.gmra.mrb[4].mxu1 %vm401_vm2, %v1541_v42 }
  0x3e   : > { %1696 = vmatprep.mubr.msk.bf16.mxu1 %vm401_vm2, %v1557_v43 }
  0x41   : > { %1737 = vmatmul.mubr.msk.bf16.vlgmr.msra.gmra.mrb[0].mxu0 %vm401_vm2, %v1540_v32 }
  0x42   : > { %1745 = vmatpush3.bf16.msra.mxu0 %v1849_v27  ;;  %1740 = vmatprep.mubr.msk.bf16.mxu0 %vm401_vm2, %v1541_v42 }
  0x43   : > { %1754 = vmatprep.subr.bf16.mxu0 %v1852_v24 }
  0x45   : > { %1697 = vmatmul.mubr.msk.bf16.vlgmr.msra.gmra.mrb[0].mxu1 %vm401_vm2, %v1558_v45 }
  0x46   : > { %1705 = vmatpush3.bf16.msra.mxu1 %v1850_v5  ;;  %1700 = vmatprep.mubr.msk.bf16.mxu1 %vm401_vm2, %v1559_v44 }
  0x47   : > { %1764 = vmatprep.subr.bf16.mxu1 %v1909_v1 }
  0x49   : > { %1741 = vmatmul.mubr.msk.bf16.gmra.mrb[4].mxu0 %vm401_vm2, %v1602_v51 }
  0x4a   : > { %1746 = vmatprep.mubr.msk.bf16.mxu0 %vm401_vm2, %v2015_v16  ;;  %v1149_v16 = vsel %vm1968_vm3, %v1144_v15, %v1148_v17 }
  0x4b   : > { %v1610_v22 = vcombine.low %v844_v14, %v1149_v16 }
  0x4d   : > { %1701 = vmatmul.mubr.msk.bf16.gmra.mrb[4].mxu1 %vm401_vm2, %v1560_v61 }
  0x4e   : > { %1706 = vmatprep.mubr.msk.bf16.mxu1 %vm401_vm2, %v1568_v0 }
  0x51   : > { %1747 = vmatmul.mubr.msk.bf16.vlgmr.msra.gmra.mrb[0].mxu0 %vm401_vm2, %v2058_v56 }
  0x52   : > { %1755 = vmatpush3.bf16.msra.mxu0 %v1852_v24  ;;  %1750 = vmatprep.mubr.msk.bf16.mxu0 %vm401_vm2, %v2085_v13  ;;  %v1625_v13 = vld [vmem:[%s2253_s2] ss:$0 sm:$0xff] }
  0x55   : > { %1707 = vmatmul.mubr.msk.bf16.vlgmr.msra.gmra.mrb[0].mxu1 %vm401_vm2, %v1569_v52 }
  0x56   : > { %1765 = vmatpush3.bf16.msra.mxu1 %v1909_v1  ;;  %1710 = vmatprep.mubr.msk.bf16.mxu1 %vm401_vm2, %v1570_v6  ;;  %v1582_v1 = vcombine.low %v2077_v57, %v844_v14 }
  0x59   : > { %1751 = vmatmul.mubr.msk.bf16.gmra.mrb[4].mxu0 %vm401_vm2, %v1610_v22 }
  0x5a   : > { %1756 = vmatprep.mubr.msk.bf16.mxu0 %vm401_vm2, %v1558_v45 }
  0x5d   : > { %1711 = vmatmul.mubr.msk.bf16.gmra.mrb[4].mxu1 %vm401_vm2, %v1571_v30 }
  0x5e   : > { %1720 = vmatprep.mubr.msk.bf16.mxu1 %vm401_vm2, %v1581_v47 }
  0x61   : > { %1757 = vmatmul.mubr.msk.bf16.vlgmr.msra.gmra.mrb[0].mxu0 %vm401_vm2, %v1559_v44 }
  0x62   : > { %1760 = vmatprep.mubr.msk.bf16.mxu0 %vm401_vm2, %v1560_v61 }
  0x69   : > { %1721 = vmatmul.mubr.msk.bf16.vlgmr.msra.gmra.mrb[4].mxu1 %vm401_vm2, %v1582_v1  ;;  %1761 = vmatmul.mubr.msk.bf16.gmra.mrb[4].mxu0 %vm401_vm2, %v1619_v28 }
 0x128   : > { %v1708_v53 = vpop.f32.mrb[0].mxu1 }
 0x129   : > { %v792_v63 = vpop.f32.mrb[1].mxu1 }
 0x12a   : > { %v1709_v50 = vpop.f32.mrb[2].mxu1 }
 0x12b   : > { %v795_v56 = vpop.f32.mrb[3].mxu1 }
 0x134   : > { %v1758_v3 = vpop.f32.mrb[0].mxu0 }
 0x135   : > { %v1766_v58 = vadd.f32 %v1758_v3, %v1708_v53  ;;  %v1290_v19 = vpop.f32.mrb[1].mxu0 }
 0x136   : > { %v1767_v57 = vadd.f32 %v1290_v19, %v792_v63  ;;  %v1759_v21 = vpop.f32.mrb[2].mxu0 }
 0x137   : > { %v1338_v23 = vadd.f32 %v1766_v58, %v1625_v13  ;;  %v1768_v35 = vadd.f32 %v1759_v21, %v1709_v50  ;;  %v1293_v62 = vpop.f32.mrb[3].mxu0 }
 0x138   : > { %v1336_v8 = vadd.f32 %v1767_v57, %v1625_v13  ;;  %v1769_v25 = vadd.f32 %v1293_v62, %v795_v56 }
 0x139   : > { %v1399_v26 = vpack.c.bf16 %v1338_v23, %v1338_v23  ;;  %v1339_v27 = vadd.f32 %v1768_v35, %v1625_v13  ;;  %v1369_v20 = vmul.f32 %v1338_v23, %v1338_v23  ;;  %v1347_v45 = vsel %vm401_vm2, %v1338_v23, 0.0 }
 0x13a   : > { %v1367_v29 = vmul.f32 %v1336_v8, %v1336_v8  ;;  %v1397_v31 = vpack.c.bf16 %v1336_v8, %v1336_v8  ;;  %v1337_v32 = vadd.f32 %v1769_v25, %v1625_v13  ;;  %v1344_v5 = vsel %vm401_vm2, %v1336_v8, 0.0 }
 0x13b   : > { %1408 = vst.msk [vmem:[%s2206_s24 + $0x8] sm:$0xf] %vm1405_vm7, %v1399_v26  ;;  %v1400_v33 = vpack.c.bf16 %v1339_v27, %v1339_v27  ;;  %v1370_v4 = vmul.f32 %v1339_v27, %v1339_v27  ;;  %v1378_v61 = vsel %vm401_vm2, %v1369_v20, 0.0  ;;  %v1349_v7 = vsel %vm401_vm2, %v1339_v27, 0.0 }
 0x13c   : > { %v1722_v34 = vpop.f32.mrb[4].mxu1  ;;  %1406 = vst.msk [vmem:[%s2206_s24] sm:$0xf] %vm1405_vm7, %v1397_v31  ;;  %v1345_v36 = vsel %vm401_vm2, %v1337_v32, 0.0  ;;  %v1368_v37 = vmul.f32 %v1337_v32, %v1337_v32  ;;  %v1398_v38 = vpack.c.bf16 %v1337_v32, %v1337_v32  ;;  %v1762_v39 = vpop.f32.mrb[4].mxu0  ;;  %v1375_v44 = vsel %vm401_vm2, %v1367_v29, 0.0 }
 0x13d   : > { %v921_v40 = vpop.f32.mrb[5].mxu1  ;;  %1409 = vst.msk [vmem:[%s2206_s24 + $0xc] sm:$0xf] %vm1405_vm7, %v1400_v33  ;;  %v1346_v41 = vadd.f32 %v1345_v36, %v1344_v5  ;;  %v1770_v42 = vadd.f32 %v1762_v39, %v1722_v34  ;;  %v1306_v43 = vpop.f32.mrb[5].mxu0  ;;  %v1380_v18 = vsel %vm401_vm2, %v1370_v4, 0.0 }
 0x13e   : > { %v1723_v24 = vpop.f32.mrb[6].mxu1  ;;  %v1376_v2 = vsel %vm401_vm2, %v1368_v37, 0.0  ;;  %1407 = vst.msk [vmem:[%s2206_s24 + $0x4] sm:$0xf] %vm1405_vm7, %v1398_v38  ;;  %v1771_v46 = vadd.f32 %v1306_v43, %v921_v40  ;;  %v1763_v48 = vpop.f32.mrb[6].mxu0 }
 0x13f   : > { %v924_v49 = vpop.f32.mrb[7].mxu1  ;;  %v1348_v51 = vadd.f32 %v1347_v45, %v1346_v41  ;;  %v1377_v54 = vadd.f32 %v1376_v2, %v1375_v44  ;;  %v1342_v55 = vadd.f32 %v1770_v42, %v1625_v13  ;;  %v1772_v59 = vadd.f32 %v1763_v48, %v1723_v24  ;;  %v1309_v60 = vpop.f32.mrb[7].mxu0 }
 0x140   : > { %v1340_v0 = vadd.f32 %v1771_v46, %v1625_v13  ;;  %v1773_v9 = vadd.f32 %v1309_v60, %v924_v49 }
 0x141   : > { %v1379_v10 = vadd.f32 %v1378_v61, %v1377_v54  ;;  %v1403_v11 = vpack.c.bf16 %v1342_v55, %v1342_v55  ;;  %v1350_v12 = vadd.f32 %v1349_v7, %v1348_v51  ;;  %v1343_v14 = vadd.f32 %v1772_v59, %v1625_v13 }
 0x142   : > { %v1351_v15 = vsel %vm401_vm2, %v1340_v0, 0.0  ;;  %v1371_v17 = vmul.f32 %v1340_v0, %v1340_v0  ;;  %v1401_v52 = vpack.c.bf16 %v1340_v0, %v1340_v0  ;;  %v1341_v16 = vadd.f32 %v1773_v9, %v1625_v13 }
 0x143   : > { %1412 = vst.msk [vmem:[%s2206_s24 + $0x18] sm:$0xf] %vm1405_vm7, %v1403_v11  ;;  %v1381_v6 = vadd.f32 %v1380_v18, %v1379_v10  ;;  %v1352_v22 = vadd.f32 %v1351_v15, %v1350_v12  ;;  %v1404_v1 = vpack.c.bf16 %v1343_v14, %v1343_v14  ;;  %v1373_v28 = vmul.f32 %v1342_v55, %v1342_v55 }
 0x144   : > { %v1382_v30 = vsel %vm401_vm2, %v1371_v17, 0.0  ;;  %1410 = vst.msk [vmem:[%s2206_s24 + $0x10] sm:$0xf] %vm1405_vm7, %v1401_v52  ;;  %v1353_v53 = vsel %vm401_vm2, %v1341_v16, 0.0  ;;  %v1372_v63 = vmul.f32 %v1341_v16, %v1341_v16  ;;  %v1402_v50 = vpack.c.bf16 %v1341_v16, %v1341_v16 }
 0x145   : > { %v1383_v47 = vadd.f32 %v1382_v30, %v1381_v6  ;;  %1413 = vst.msk [vmem:[%s2206_s24 + $0x1c] sm:$0xf] %vm1405_vm7, %v1404_v1  ;;  %v1354_v56 = vadd.f32 %v1353_v53, %v1352_v22  ;;  %v1355_v3 = vsel %vm401_vm2, %v1342_v55, 0.0  ;;  %v1374_v58 = vmul.f32 %v1343_v14, %v1343_v14 }
 0x146   : > { %v1384_v13 = vsel %vm401_vm2, %v1372_v63, 0.0  ;;  %1411 = vst.msk [vmem:[%s2206_s24 + $0x14] sm:$0xf] %vm1405_vm7, %v1402_v50  ;;  %v1386_v21 = vsel %vm401_vm2, %v1373_v28, 0.0  ;;  %v1357_v23 = vsel %vm401_vm2, %v1343_v14, 0.0 }
 0x147   : > { %v1356_v19 = vadd.f32 %v1355_v3, %v1354_v56  ;;  %v1385_v57 = vadd.f32 %v1384_v13, %v1383_v47  ;;  %v1388_v8 = vsel %vm401_vm2, %v1374_v58, 0.0 }
 0x149   : > { %v1358_v35 = vadd.f32 %v1357_v23, %v1356_v19  ;;  %v1387_v62 = vadd.f32 %v1386_v21, %v1385_v57 }
 0x14b   : > { %v1359_v25 = vrot.slane %v1358_v35, 4  ;;  %v1389_v26 = vadd.f32 %v1388_v8, %v1387_v62 }
 0x14d   : > { %v1360_v27 = vadd.f32 %v1359_v25, %v1358_v35  ;;  %v1390_v29 = vrot.slane %v1389_v26, 4 }
 0x14f   : > { %v1361_v31 = vrot.slane %v1360_v27, 2  ;;  %v1391_v32 = vadd.f32 %v1390_v29, %v1389_v26 }
 0x151   : > { %v1362_v20 = vadd.f32 %v1361_v31, %v1360_v27  ;;  %v1392_v33 = vrot.slane %v1391_v32, 2 }
 0x153   : > { %v1363_v34 = vrot.slane %v1362_v20, 1  ;;  %v1393_v5 = vadd.f32 %v1392_v33, %v1391_v32 }
 0x155   : > { %v1364_v36 = vadd.f32 %v1363_v34, %v1362_v20  ;;  %v1394_v37 = vrot.slane %v1393_v5, 1 }
 0x157   : > { %1366 = vst.msk [vmem:[%s238_s27] sm:$0x1] %vm1365_vm8, %v1364_v36  ;;  %v1395_v38 = vadd.f32 %v1394_v37, %v1393_v5 }
 0x159   : > { %1396 = vst.msk [vmem:[%s241_s30] sm:$0x1] %vm1365_vm8, %v1395_v38 }
 0x15a PF: > { %s16_s18 = sadd.s32 1, %s1863_s18  }
 0x15b   : > { %p13_p4 = scmp.ge.s32.totalorder %s16_s18, 4  }
 0x15d   :  { %15 = sbr.rel (!%p13_p4) target bundleno = 1 (0x1), region = 94 }

// kernel: dcgan_generator_forward.6
= control target key start
LH: loop header
LB: loop body
LE: loop exit
PB: predicated region body
PF: predicated region fallthrough
CT: control target
= control target key end

     0   :  { %s2149_s21 = smov 0   ;;  %s2634_s0 = inlined_call_operand.vmem [shape: bf16[2,10,10,16], index: 0, kind: input, shape index: {}]   ;;  %s2635_s1 = inlined_call_operand.vmem [shape: bf16[9,16,32], index: 1, kind: input, shape index: {}]   ;;  %s2636_s2 = inlined_call_operand.vmem [shape: f32[1,16], index: 2, kind: input, shape index: {}]   ;;  %s2637_s3 = inlined_call_operand.vmem [shape: f32[1,16], index: 3, kind: input, shape index: {}]   ;;  %s2638_s4 = inlined_call_operand.vmem [shape: bf16[2,8,8,32], index: 4, kind: output, shape index: {0}]   ;;  %s2639_s5 = inlined_call_operand.vmem [shape: f32[2,1,32], index: 5, kind: output, shape index: {1}]   ;;  %s2640_s6 = inlined_call_operand.vmem [shape: f32[2,1,32], index: 6, kind: output, shape index: {2}]  }
   0x1 LB: > { %s1731_s22 = sadd.s32 4294967295, %s2111_s21   ;;  %p1735_p0 = scmp.ge.s32.totalorder %s2111_s21, 1  ;;  %s2111_s21 = sphi %s2149_s21, %s17_s21  }
   0x2   : > { %p217_p1 = scmp.lt.s32.totalorder %s2111_s21, 3 }
   0x4   : > { %p218_p2 = pnand %p1735_p0, %p217_p1 }
   0x5   : > { %v2096_v0 = vld [vmem:[%s2635_s1 + $0x8] sm:$0xff] (!%p218_p2)   ;;  %p253_p3 = scmp.lt.s32.totalorder (!%p218_p2), %s1731_s22, 1  ;;  %v424_v1 = vlaneseq (!%p218_p2)  ;;  %v2163_v2 = vld [vmem:[%s2635_s1 + $0x20] sm:$0xff] (!%p218_p2)   ;;  %v2641_v3 = vmov (!%p218_p2), 0.0|0.0   ;;  %vm511_vm1 = vsmask.f32 (!%p218_p2), 3328 }
   0x6   : > { %221 = sbr.rel (%p218_p2) target bundleno = 381 (0x17d), region = 36  ;;  %1930 = vmatprep.subr.bf16.mxu1 (!%p218_p2), %v2096_v0  ;;  %v2169_v4 = vcombine.low (!%p218_p2), %v2641_v3, %v2641_v3  ;;  %v2173_v5 = vcombine.high (!%p218_p2), %v2641_v3, %v2641_v3  ;;  %1970 = vmatprep.subr.bf16.mxu0 (!%p218_p2), %v2163_v2  ;;  %v2181_v7 = vld [vmem:[%s2635_s1] sm:$0xff] (!%p218_p2)   ;;  %v2190_v10 = vld [vmem:[%s2635_s1 + $0x28] sm:$0xff] (!%p218_p2)   ;;  %vm512_vm2 = vsmask.f32 (!%p218_p2), 7440  ;;  %vm647_vm11 = vcmask (!%p218_p2), 130048  }
   0x7   : > { %1931 = vmatpush3.bf16.msra.mxu1 (!%p218_p2), %v2096_v0  ;;  %v2176_v6 = vshrl.u32 (!%p218_p2), %v424_v1, 7  ;;  %1971 = vmatpush3.bf16.msra.mxu0 (!%p218_p2), %v2163_v2  ;;  %v2195_v11 = vld [vmem:[%s2636_s2] ss:$0 sm:$0xff] (!%p218_p2)  ;;  %vm2241_vm10 = vmor (!%p218_p2), %vm511_vm1, %vm512_vm2 }
   0x8   : > { %v515_v8 = vshrl.u32 (!%p218_p2), %v2169_v4, 16  ;;  %v518_v9 = vshll.u32 (!%p218_p2), %v2169_v4, 16  ;;  %1940 = vmatprep.subr.bf16.mxu1 (!%p218_p2), %v2181_v7  ;;  %v524_v15 = vshll.u32 (!%p218_p2), %v2173_v5, 16  ;;  %1980 = vmatprep.subr.bf16.mxu0 (!%p218_p2), %v2190_v10  ;;  %v2220_v27 = vld [vmem:[%s2637_s3] ss:$0 sm:$0xff] (!%p218_p2)  ;;  %v817_v55 = vrot.slane (!%p218_p2), %v2173_v5, 5 }
   0x9   : > { %v2198_v12 = vadd.s32 (!%p218_p2), 8, %v2176_v6  ;;  %vm427_vm0 = vcmp.ge.s32.totalorder (!%p218_p2), %v2176_v6, 1 }
   0xa   : > { %v517_v13 = vrot.slane (!%p218_p2), %v515_v8, 4  ;;  %v520_v14 = vrot.slane (!%p218_p2), %v518_v9, 5  ;;  %v526_v36 = vrot.slane (!%p218_p2), %v524_v15, 5 }
   0xb   : > { %vm434_vm3 = vcmp.le.s32.totalorder (!%p218_p2), %v2198_v12, 8 }
   0xc   : > { %v521_v28 = vor.u32 (!%p218_p2), %v520_v14, %v517_v13 }
   0xd   : > { %s2650_s22 = smov (!%p253_p3, %s1731_s22), 1 }
   0xe   : > { %s2086_s29 = smul.u32 80, %s2650_s22  ;;  %v522_v35 = vrot.slane %v521_v28, 4  ;;  %s1861_s27 = sshll.u32 %s2650_s22, 5 }
   0xf   : > { %s2589_s30 = scalar_lea.vmem %s2638_s4, %s1861_s27  ;;  %s265_s9 = scalar_lea.vmem %s2639_s5, %s2650_s22 }
  0x10   : > { %s2204_s12 = scalar_lea.vmem %s2634_s0, %s2086_s29  ;;  %v2281_v14 = vsel %vm2241_vm10, %v522_v35, %v526_v36 }
  0x11   : > { %v272_v16 = vld [vmem:[%s2204_s12 + $0x8] ss:$48 sps:$4 sm:$0xff]   ;;  %v273_v17 = vld [vmem:[%s2204_s12 + $0xc] sm:$0x1]  ;;  %v285_v18 = vld [vmem:[%s2204_s12 + $0x3c] sm:$0x1] }
  0x12   : > { %v2213_v19 = vld [vmem:[%s2204_s12 + $0x10] ss:$48 sps:$4 sm:$0xff]   ;;  %v287_v20 = vld [vmem:[%s2204_s12 + $0x44] sm:$0x1]  ;;  %v292_v21 = vunpack.c.l.bf16 %v272_v16  ;;  %v293_v22 = vunpack.c.l.bf16 %v273_v17  ;;  %v304_v23 = vunpack.c.h.bf16 %v272_v16  ;;  %v305_v24 = vunpack.c.l.bf16 %v285_v18  ;;  %v275_v59 = vld [vmem:[%s2204_s12 + $0x14] sm:$0x1] }
  0x13   : > { %v306_v25 = vunpack.c.h.bf16 %v2213_v19  ;;  %v307_v26 = vunpack.c.l.bf16 %v287_v20  ;;  %v294_v60 = vunpack.c.l.bf16 %v2213_v19  ;;  %v276_v1 = vld [vmem:[%s2204_s12 + $0x18] ss:$8 sps:$4 sm:$0xff]   ;;  %v277_v8 = vld [vmem:[%s2204_s12 + $0x1c] sm:$0x1]  ;;  %v295_v19 = vunpack.c.l.bf16 %v275_v59 }
  0x14   : > { %v319_v29 = vsub.f32 %v292_v21, %v2195_v11  ;;  %v320_v30 = vsub.f32 %v293_v22, %v2195_v11  ;;  %v331_v31 = vsub.f32 %v304_v23, %v2195_v11  ;;  %v332_v32 = vsub.f32 %v305_v24, %v2195_v11 }
  0x15   : > { %v333_v33 = vsub.f32 %v306_v25, %v2195_v11  ;;  %v334_v34 = vsub.f32 %v307_v26, %v2195_v11  ;;  %v296_v22 = vunpack.c.l.bf16 %v276_v1  ;;  %v297_v23 = vunpack.c.l.bf16 %v277_v8 }
  0x16   : > { %v346_v37 = vmul.f32 %v2220_v27, %v319_v29  ;;  %v347_v38 = vmul.f32 %v2220_v27, %v320_v30  ;;  %v358_v39 = vmul.f32 %v2220_v27, %v331_v31  ;;  %v359_v40 = vmul.f32 %v2220_v27, %v332_v32  ;;  %v279_v29 = vld [vmem:[%s2204_s12 + $0x24] sm:$0x1] }
  0x17   : > { %v360_v41 = vmul.f32 %v2220_v27, %v333_v33  ;;  %v361_v42 = vmul.f32 %v2220_v27, %v334_v34 }
  0x18   : > { %vm366_vm4 = vcmp.ge.f32.partialorder %v346_v37, 0.0  ;;  %vm367_vm5 = vcmp.ge.f32.partialorder %v347_v38, 0.0  ;;  %vm378_vm6 = vcmp.ge.f32.partialorder %v358_v39, 0.0  ;;  %vm379_vm7 = vcmp.ge.f32.partialorder %v359_v40, 0.0 }
  0x19   : > { %vm380_vm8 = vcmp.ge.f32.partialorder %v360_v41, 0.0  ;;  %vm381_vm9 = vcmp.ge.f32.partialorder %v361_v42, 0.0  ;;  %v386_v43 = vmul.f32 0.2, %v346_v37  ;;  %v387_v44 = vmul.f32 0.2, %v347_v38 }
  0x1a   : > { %v398_v45 = vmul.f32 0.2, %v358_v39  ;;  %v399_v46 = vmul.f32 0.2, %v359_v40  ;;  %v400_v47 = vmul.f32 0.2, %v360_v41 }
  0x1b   : > { %v401_v48 = vmul.f32 0.2, %v361_v42  ;;  %v406_v49 = vsel %vm366_vm4, %v346_v37, %v386_v43  ;;  %v407_v50 = vsel %vm367_vm5, %v347_v38, %v387_v44  ;;  %v298_v37 = vunpack.c.h.bf16 %v276_v1 }
  0x1c   : > { %v418_v51 = vsel %vm378_vm6, %v358_v39, %v398_v45  ;;  %v419_v52 = vsel %vm379_vm7, %v359_v40, %v399_v46  ;;  %v420_v53 = vsel %vm380_vm8, %v360_v41, %v400_v47  ;;  %v2237_v54 = vsel %vm427_vm0, %v406_v49, 0.0 }
  0x1d   : > { %v421_v56 = vsel %vm381_vm9, %v361_v42, %v401_v48  ;;  %v2247_v57 = vsel %vm434_vm3, %v407_v50, 0.0  ;;  %v2251_v58 = vsel %vm427_vm0, %v418_v51, 0.0  ;;  %v454_v61 = vsel %vm434_vm3, %v419_v52, 0.0 }
  0x1e   : > { %v2259_v62 = vsel %vm427_vm0, %v420_v53, 0.0  ;;  %v2263_v63 = vpack.c.bf16 %v2237_v54, %v2237_v54  ;;  %v2267_v0 = vpack.c.bf16 %v2247_v57, %v2247_v57  ;;  %v2273_v9 = vsel %vm434_vm3, %v421_v56, 0.0 }
  0x1f   : > { %v2277_v13 = vpack.c.bf16 %v2251_v58, %v2251_v58  ;;  %v2285_v15 = vpack.c.bf16 %v2259_v62, %v2259_v62  ;;  %v2290_v20 = vpack.c.bf16 %v454_v61, %v454_v61  ;;  %v2295_v26 = vpack.c.bf16 %v2273_v9, %v2273_v9 }
  0x20   : > { %v529_v16 = vshrl.u32 %v2263_v63, 16  ;;  %v532_v17 = vshll.u32 %v2263_v63, 16  ;;  %v538_v18 = vshll.u32 %v2267_v0, 16  ;;  %v821_v32 = vrot.slane %v2267_v0, 5 }
  0x21   : > { %v1057_v21 = vshrl.u32 %v2285_v15, 16  ;;  %v1060_v28 = vshll.u32 %v2285_v15, 16  ;;  %v613_v31 = vshrl.u32 %v2277_v13, 16  ;;  %v1066_v36 = vshll.u32 %v2295_v26, 16 }
  0x22   : > { %v531_v24 = vrot.slane %v529_v16, 4  ;;  %v534_v25 = vrot.slane %v532_v17, 5  ;;  %v540_v30 = vrot.slane %v538_v18, 5  ;;  %v616_v38 = vshll.u32 %v2277_v13, 16  ;;  %v2331_v18 = vld [vmem:[%s2204_s12 + $0x28] ss:$8 sps:$4 sm:$0xff]  }
  0x23   : > { %v1059_v33 = vrot.slane %v1057_v21, 4  ;;  %v1062_v35 = vrot.slane %v1060_v28, 5  ;;  %v299_v39 = vunpack.c.l.bf16 %v279_v29  ;;  %v321_v40 = vsub.f32 %v294_v60, %v2195_v11  ;;  %v281_v21 = vld [vmem:[%s2204_s12 + $0x2c] sm:$0x1] }
  0x24   : > { %v535_v34 = vor.u32 %v534_v25, %v531_v24  ;;  %v322_v41 = vsub.f32 %v295_v19, %v2195_v11  ;;  %v1068_v44 = vrot.slane %v1066_v36, 5  ;;  %v323_v45 = vsub.f32 %v296_v22, %v2195_v11 }
  0x25   : > { %v1063_v43 = vor.u32 %v1062_v35, %v1059_v33  ;;  %v622_v46 = vshll.u32 %v2290_v20, 16  ;;  %v324_v47 = vsub.f32 %v297_v23, %v2195_v11  ;;  %v325_v48 = vsub.f32 %v298_v37, %v2195_v11 }
  0x26   : > { %v536_v42 = vrot.slane %v535_v34, 4  ;;  %v326_v49 = vsub.f32 %v299_v39, %v2195_v11  ;;  %v348_v52 = vmul.f32 %v2220_v27, %v321_v40  ;;  %v349_v53 = vmul.f32 %v2220_v27, %v322_v41 }
  0x27   : > { %v1064_v51 = vrot.slane %v1063_v43, 4  ;;  %v2316_v56 = vrot.slane %v613_v31, 4  ;;  %v350_v60 = vmul.f32 %v2220_v27, %v323_v45  ;;  %v351_v61 = vmul.f32 %v2220_v27, %v324_v47 }
  0x28   : > { %v2312_v50 = vsel %vm2241_vm10, %v536_v42, %v540_v30  ;;  %v2322_v1 = vrot.slane %v616_v38, 5  ;;  %v352_v16 = vmul.f32 %v2220_v27, %v325_v48  ;;  %v353_v17 = vmul.f32 %v2220_v27, %v326_v49 }
  0x29   : > { %v1759_v59 = vcombine.low %v2281_v14, %v2312_v50  ;;  %v2326_v8 = vsel %vm2241_vm10, %v1064_v51, %v1068_v44  ;;  %vm368_vm12 = vcmp.ge.f32.partialorder %v348_v52, 0.0  ;;  %vm369_vm13 = vcmp.ge.f32.partialorder %v349_v53, 0.0 }
  0x2a   : > { %vm370_vm14 = vcmp.ge.f32.partialorder %v350_v60, 0.0  ;;  %vm371_vm15 = vcmp.ge.f32.partialorder %v351_v61, 0.0  ;;  %vm372_vm1 = vcmp.ge.f32.partialorder %v352_v16, 0.0  ;;  %vm373_vm2 = vcmp.ge.f32.partialorder %v353_v17, 0.0 }
  0x2b   : > { %1932 = vmatprep.mubr.msk.bf16.mxu1 %vm647_vm11, %v1759_v59  ;;  %v388_v22 = vmul.f32 0.2, %v348_v52  ;;  %v389_v23 = vmul.f32 0.2, %v349_v53  ;;  %v390_v24 = vmul.f32 0.2, %v350_v60  ;;  %v300_v28 = vunpack.c.l.bf16 %v2331_v18 }
  0x2c   : > { %v391_v25 = vmul.f32 0.2, %v351_v61  ;;  %v392_v29 = vmul.f32 0.2, %v352_v16  ;;  %v393_v30 = vmul.f32 0.2, %v353_v17  ;;  %v301_v33 = vunpack.c.l.bf16 %v281_v21 }
  0x2d   : > { %v408_v31 = vsel %vm368_vm12, %v348_v52, %v388_v22  ;;  %v409_v34 = vsel %vm369_vm13, %v349_v53, %v389_v23  ;;  %v410_v35 = vsel %vm370_vm14, %v350_v60, %v390_v24  ;;  %v327_v60 = vsub.f32 %v300_v28, %v2195_v11 }
  0x2e   : > { %v411_v36 = vsel %vm371_vm15, %v351_v61, %v391_v25  ;;  %v2340_v37 = vsel %vm427_vm0, %v408_v31, 0.0  ;;  %v412_v38 = vsel %vm372_vm1, %v352_v16, %v392_v29  ;;  %v413_v39 = vsel %vm373_vm2, %v353_v17, %v393_v30 }
  0x2f   : > { %v444_v40 = vsel %vm434_vm3, %v409_v34, 0.0  ;;  %v2346_v41 = vsel %vm427_vm0, %v410_v35, 0.0  ;;  %v446_v42 = vsel %vm434_vm3, %v411_v36, 0.0  ;;  %v2352_v43 = vsel %vm427_vm0, %v412_v38, 0.0 }
  0x30   : > { %v448_v44 = vsel %vm434_vm3, %v413_v39, 0.0  ;;  %v2358_v45 = vpack.c.bf16 %v2340_v37, %v2340_v37  ;;  %v2360_v47 = vpack.c.bf16 %v444_v40, %v444_v40  ;;  %v2364_v48 = vpack.c.bf16 %v2346_v41, %v2346_v41  ;;  %v283_v39 = vld [vmem:[%s2204_s12 + $0x34] sm:$0x1]  ;;  %s268_s12 = scalar_lea.vmem %s2640_s6, %s2650_s22 }
  0x31   : > { %v2366_v49 = vpack.c.bf16 %v446_v42, %v446_v42  ;;  %v2370_v51 = vpack.c.bf16 %v2352_v43, %v2352_v43  ;;  %v2372_v52 = vpack.c.bf16 %v448_v44, %v448_v44  ;;  %vm812_vm4 = vcmask 1042432  }
  0x32   : > { %v543_v53 = vshrl.u32 %v2358_v45, 16  ;;  %v546_v59 = vshll.u32 %v2358_v45, 16  ;;  %v552_v61 = vshll.u32 %v2360_v47, 16  ;;  %v557_v16 = vshrl.u32 %v2364_v48, 16 }
  0x33   : > { %v560_v17 = vshll.u32 %v2364_v48, 16  ;;  %v566_v21 = vshll.u32 %v2366_v49, 16  ;;  %v571_v24 = vshrl.u32 %v2370_v51, 16  ;;  %v574_v25 = vshll.u32 %v2370_v51, 16 }
  0x34   : > { %v545_v22 = vrot.slane %v543_v53, 4  ;;  %v548_v23 = vrot.slane %v546_v59, 5  ;;  %v554_v29 = vrot.slane %v552_v61, 5  ;;  %v559_v30 = vrot.slane %v557_v16, 4 }
  0x35   : > { %v562_v31 = vrot.slane %v560_v17, 5  ;;  %v568_v28 = vrot.slane %v566_v21, 5  ;;  %v573_v35 = vrot.slane %v571_v24, 4  ;;  %v576_v36 = vrot.slane %v574_v25, 5 }
  0x36   : > { %v549_v34 = vor.u32 %v548_v23, %v545_v22  ;;  %v580_v38 = vshll.u32 %v2372_v52, 16  ;;  %v825_v42 = vrot.slane %v2360_v47, 5  ;;  %v829_v44 = vrot.slane %v2366_v49, 5 }
  0x37   : > { %v563_v40 = vor.u32 %v562_v31, %v559_v30  ;;  %v833_v53 = vrot.slane %v2372_v52, 5  ;;  %v577_v19 = vor.u32 %v576_v36, %v573_v35  ;;  %v328_v61 = vsub.f32 %v301_v33, %v2195_v11 }
  0x38   : > { %v550_v59 = vrot.slane %v549_v34, 4  ;;  %v582_v3 = vrot.slane %v580_v38, 5  ;;  %v354_v17 = vmul.f32 %v2220_v27, %v327_v60  ;;  %v302_v21 = vunpack.c.h.bf16 %v2331_v18  ;;  %v2421_v34 = vld [vmem:[%s2635_s1 + $0x30] sm:$0xff]  }
  0x39   : > { %v564_v16 = vrot.slane %v563_v40, 4  ;;  %v303_v22 = vunpack.c.l.bf16 %v283_v39  ;;  %v578_v24 = vrot.slane %v577_v19, 4  ;;  %v355_v47 = vmul.f32 %v2220_v27, %v328_v61  ;;  %v2406_v19 = vld [vmem:[%s2635_s1 + $0x10] sm:$0xff]  }
  0x3a   : > { %v555_v23 = vsel %vm2241_vm10, %v550_v59, %v554_v29  ;;  %vm813_vm5 = vcmask 1046532   ;;  %vm374_vm6 = vcmp.ge.f32.partialorder %v354_v17, 0.0  ;;  %v394_v33 = vmul.f32 0.2, %v354_v17 }
  0x3b   : > { %v569_v49 = vsel %vm2241_vm10, %v564_v16, %v568_v28  ;;  %v1811_v25 = vcombine.low %v2312_v50, %v555_v23  ;;  %v2399_v60 = vsel %vm2241_vm10, %v578_v24, %v582_v3  ;;  %vm375_vm7 = vcmp.ge.f32.partialorder %v355_v47, 0.0  ;;  %vm2414_vm8 = vmor %vm812_vm4, %vm813_vm5 }
  0x3c   : > { %v2401_v18 = vcombine.low %v555_v23, %v569_v49  ;;  %v395_v30 = vmul.f32 0.2, %v355_v47  ;;  %v1812_v29 = vcombine.low %v569_v49, %v2399_v60  ;;  %v414_v50 = vsel %vm374_vm6, %v354_v17, %v394_v33 }
  0x3d   : > { %1972 = vmatprep.mubr.msk.bf16.mxu0 %vm647_vm11, %v1811_v25  ;;  %v329_v31 = vsub.f32 %v302_v21, %v2195_v11  ;;  %v330_v28 = vsub.f32 %v303_v22, %v2195_v11  ;;  %v2427_v36 = vsel %vm427_vm0, %v414_v50, 0.0  ;;  %v1778_v11 = vrot.slane %v2263_v63, 9 }
  0x3e   : > { %1933 = vmatmul.mubr.msk.bf16.vlgmr.msra.gmra.mrb[0].mxu1 %vm647_vm11, %v2401_v18  ;;  %v415_v35 = vsel %vm375_vm7, %v355_v47, %v395_v30  ;;  %v1779_v38 = vrot.slane %v2358_v45, 9  ;;  %1973 = vmatmul.mubr.msk.bf16.vlgmr.msra.gmra.mrb[0].mxu0 %vm647_vm11, %v1812_v29  ;;  %v1870_v40 = vpack.c.bf16 %v2427_v36, %v2427_v36  ;;  %v1780_v45 = vrot.slane %v2364_v48, 9 }
  0x3f   : > { %1941 = vmatpush3.bf16.msra.mxu1 %v2181_v7  ;;  %v450_v39 = vsel %vm434_vm3, %v415_v35, 0.0  ;;  %v356_v59 = vmul.f32 %v2220_v27, %v329_v31  ;;  %v357_v61 = vmul.f32 %v2220_v27, %v330_v28  ;;  %1981 = vmatpush3.bf16.msra.mxu0 %v2190_v10  ;;  %v2444_v7 = vsel %vm2414_vm8, %v1778_v11, %v821_v32 }
  0x40   : > { %v1871_v16 = vpack.c.bf16 %v450_v39, %v450_v39  ;;  %v2448_v63 = vsel %vm2414_vm8, %v1779_v38, %v825_v42  ;;  %1950 = vmatprep.subr.bf16.mxu1 %v2406_v19  ;;  %v585_v17 = vshrl.u32 %v1870_v40, 16  ;;  %v588_v21 = vshll.u32 %v1870_v40, 16  ;;  %1990 = vmatprep.subr.bf16.mxu0 %v2421_v34 }
  0x41   : > { %vm376_vm9 = vcmp.ge.f32.partialorder %v356_v59, 0.0  ;;  %vm377_vm12 = vcmp.ge.f32.partialorder %v357_v61, 0.0  ;;  %v619_v10 = vor.u32 %v2322_v1, %v2316_v56  ;;  %v396_v0 = vmul.f32 0.2, %v356_v59 }
  0x42   : > { %v594_v27 = vshll.u32 %v1871_v16, 16  ;;  %v397_v32 = vmul.f32 0.2, %v357_v61  ;;  %v587_v22 = vrot.slane %v585_v17, 4  ;;  %v590_v23 = vrot.slane %v588_v21, 5 }
  0x43   : > { %v2457_v42 = vsel %vm2414_vm8, %v1780_v45, %v829_v44  ;;  %v1781_v48 = vrot.slane %v2370_v51, 9  ;;  %v416_v47 = vsel %vm376_vm9, %v356_v59, %v396_v0  ;;  %v1823_v25 = vcombine.low %v2444_v7, %v2448_v63  ;;  %v2102_v59 = vld [vmem:[%s2635_s1 + $0x38] sm:$0xff]  }
  0x44   : > { %v596_v24 = vrot.slane %v594_v27, 5  ;;  %v417_v49 = vsel %vm377_vm12, %v357_v61, %v397_v32  ;;  %v591_v33 = vor.u32 %v590_v23, %v587_v22  ;;  %v2464_v56 = vsel %vm427_vm0, %v416_v47, 0.0 }
  0x45   : > { %v452_v1 = vsel %vm434_vm3, %v417_v49, 0.0  ;;  %v2472_v44 = vsel %vm2414_vm8, %v1781_v48, %v833_v53  ;;  %v624_v51 = vrot.slane %v622_v46, 5  ;;  %v1872_v30 = vpack.c.bf16 %v2464_v56, %v2464_v56  ;;  %1982 = vmatprep.mubr.msk.bf16.mxu0 %vm647_vm11, %v1823_v25 }
  0x46   : > { %v1873_v29 = vpack.c.bf16 %v452_v1, %v452_v1  ;;  %v592_v6 = vrot.slane %v591_v33, 4  ;;  %v1824_v12 = vcombine.low %v2457_v42, %v2472_v44  ;;  %v1782_v50 = vrot.slane %v1870_v40, 9  ;;  %v2103_v1 = vld [vmem:[%s2635_s1 + $0x18] sm:$0xff]  }
  0x47   : > { %v837_v31 = vrot.slane %v1871_v16, 5  ;;  %v620_v52 = vrot.slane %v619_v10, 4  ;;  %v599_v28 = vshrl.u32 %v1872_v30, 16  ;;  %v602_v35 = vshll.u32 %v1872_v30, 16 }
  0x48   : > { %v608_v53 = vshll.u32 %v1873_v29, 16  ;;  %v2483_v11 = vsel %vm2241_vm10, %v592_v6, %v596_v24  ;;  %v1783_v38 = vrot.slane %v1872_v30, 9  ;;  %v841_v39 = vrot.slane %v1873_v29, 5 }
  0x49   : > { %v838_v46 = vsel %vm2414_vm8, %v1782_v50, %v837_v31  ;;  %v1761_v40 = vcombine.low %v2399_v60, %v2483_v11  ;;  %v601_v61 = vrot.slane %v599_v28, 4  ;;  %v604_v16 = vrot.slane %v602_v35, 5 }
  0x4a   : > { %v460_v45 = vpack.c.bf16 %v2247_v57, %v2237_v54  ;;  %1983 = vmatmul.mubr.msk.bf16.vlgmr.msra.gmra.mrb[0].mxu0 %vm647_vm11, %v1824_v12  ;;  %v842_v17 = vsel %vm2414_vm8, %v1783_v38, %v841_v39  ;;  %v1784_v21 = vrot.slane %v2277_v13, 9  ;;  %v845_v10 = vrot.slane %v2290_v20, 5 }
  0x4b   : > { %v1820_v27 = vrot.slane %v2285_v15, 9  ;;  %1936 = vmatprep.mubr.msk.bf16.mxu1 %vm647_vm11, %v1761_v40  ;;  %v605_v0 = vor.u32 %v604_v16, %v601_v61  ;;  %v610_v60 = vrot.slane %v608_v53, 5  ;;  %1991 = vmatpush3.bf16.msra.mxu0 %v2421_v34  ;;  %v1825_v32 = vcombine.low %v838_v46, %v842_v17 }
  0x4c   : > { %v1171_v57 = vrot.slane %v2295_v26, 5  ;;  %v846_v22 = vsel %vm2414_vm8, %v1784_v21, %v845_v10  ;;  %2000 = vmatprep.subr.bf16.mxu0 %v2102_v59  ;;  %v2507_v13 = vsel %vm2241_vm10, %v620_v52, %v624_v51  ;;  %v1879_v34 = vpack.c.bf16 %v2340_v37, %v2237_v54 }
  0x4d   : > { %v606_v20 = vrot.slane %v605_v0, 4  ;;  %1986 = vmatprep.mubr.msk.bf16.mxu0 %vm647_vm11, %v1825_v32  ;;  %v2647_v48 = vmov 0.0|0.0   ;;  %v1880_v47 = vpack.c.bf16 %v2352_v43, %v2346_v41  ;;  %v1876_v25 = vpack.c.bf16 %v2346_v41, %v2340_v37  ;;  %v2104_v37 = vld [vmem:[%s2635_s1 + $0x40] sm:$0xff]  }
  0x4e   : > { %v1172_v15 = vsel %vm2414_vm8, %v1820_v27, %v1171_v57  ;;  %v1768_v24 = vcombine.low %v2647_v48, %v460_v45  ;;  %v1877_v54 = vpack.c.bf16 %v2427_v36, %v2352_v43  ;;  %v1777_v33 = vrot.slane %v2169_v4, 9 }
  0x4f   : > { %v1826_v23 = vcombine.low %v846_v22, %v1172_v15  ;;  %v611_v26 = vsel %vm2241_vm10, %v606_v20, %v610_v60  ;;  %v467_v41 = vpack.c.bf16 %v2273_v9, %v2259_v62  ;;  %v1878_v4 = vpack.c.bf16 %v2251_v58, %v2464_v56 }
  0x50   : > { %v1762_v49 = vcombine.low %v611_v26, %v2507_v13  ;;  %v818_v5 = vsel %vm2414_vm8, %v1777_v33, %v817_v55  ;;  %v1788_v9 = vcombine.low %v2448_v63, %v2457_v42  ;;  %v1790_v3 = vcombine.low %v842_v17, %v846_v22 }
  0x51   : > { %v1834_v43 = vcombine.low %v467_v41, %v2647_v48  ;;  %v1787_v51 = vcombine.low %v818_v5, %v2444_v7  ;;  %v1881_v7 = vpack.c.bf16 %v2464_v56, %v2427_v36  ;;  %v1853_v63 = vcombine.low %v1172_v15, %v818_v5 }
  0x52   : > { %1937 = vmatmul.mubr.msk.bf16.gmra.mrb[4].mxu1 %vm647_vm11, %v1762_v49  ;;  %1987 = vmatmul.mubr.msk.bf16.gmra.mrb[4].mxu0 %vm647_vm11, %v1826_v23  ;;  %v1813_v42 = vcombine.low %v2483_v11, %v611_v26  ;;  %v1814_v36 = vcombine.low %v2507_v13, %v2326_v8  ;;  %vm1617_vm0 = vcmask 257024   ;;  %vm1555_vm3 = vcmask 261120  }
  0x53   : > { %1942 = vmatprep.mubr.msk.bf16.mxu1 %vm647_vm11, %v1768_v24  ;;  %1992 = vmatprep.mubr.msk.bf16.mxu0 %vm647_vm11, %v1876_v25  ;;  %vm1577_vm10 = vcmask 253952  }
  0x5a   : > { %1943 = vmatmul.mubr.msk.bf16.vlgmr.msra.gmra.mrb[0].mxu1 %vm647_vm11, %v1876_v25  ;;  %1993 = vmatmul.mubr.msk.bf16.vlgmr.msra.gmra.mrb[0].mxu0 %vm647_vm11, %v1877_v54 }
  0x5b   : > { %1951 = vmatpush3.bf16.msra.mxu1 %v2406_v19  ;;  %1946 = vmatprep.mubr.msk.bf16.mxu1 %vm647_vm11, %v1877_v54  ;;  %v1789_v19 = vcombine.low %v2472_v44, %v838_v46 }
  0x5c   : > { %2001 = vmatpush3.bf16.msra.mxu0 %v2102_v59  ;;  %1960 = vmatprep.subr.bf16.mxu1 %v2103_v1 }
  0x5d   : > { %1996 = vmatprep.mubr.msk.bf16.mxu0 %vm647_vm11, %v1878_v4  ;;  %2010 = vmatprep.subr.bf16.mxu0 %v2104_v37 }
  0x62   : > { %1947 = vmatmul.mubr.msk.bf16.gmra.mrb[4].mxu1 %vm647_vm11, %v1878_v4  ;;  %1997 = vmatmul.mubr.msk.bf16.gmra.mrb[4].mxu0 %vm647_vm11, %v1834_v43 }
  0x63   : > { %1952 = vmatprep.mubr.msk.bf16.mxu1 %vm647_vm11, %v1787_v51  ;;  %2002 = vmatprep.mubr.msk.bf16.mxu0 %vm647_vm11, %v2401_v18  ;;  %v2648_v18 = vcombine.low %v2326_v8, %v2281_v14  ;;  %v1882_v14 = vpack.c.bf16 %v2259_v62, %v2251_v58 }
  0x6a   : > { %1953 = vmatmul.mubr.msk.bf16.vlgmr.msra.gmra.mrb[0].mxu1 %vm647_vm11, %v1788_v9  ;;  %2003 = vmatmul.mubr.msk.bf16.vlgmr.msra.gmra.mrb[0].mxu0 %vm647_vm11, %v1761_v40 }
  0x6b   : > { %1961 = vmatpush3.bf16.msra.mxu1 %v2103_v1  ;;  %1956 = vmatprep.mubr.msk.bf16.mxu1 %vm647_vm11, %v1789_v19 }
  0x6c   : > { %2011 = vmatpush3.bf16.msra.mxu0 %v2104_v37  ;;  %2020 = vmatprep.subr.bf16.mxu1 %v2163_v2 }
  0x6d   : > { %2006 = vmatprep.mubr.msk.bf16.mxu0 %vm647_vm11, %v1762_v49 }
  0x72   : > { %1957 = vmatmul.mubr.msk.bf16.gmra.mrb[4].mxu1 %vm647_vm11, %v1790_v3  ;;  %2007 = vmatmul.mubr.msk.bf16.gmra.mrb[4].mxu0 %vm647_vm11, %v2648_v18 }
  0x73   : > { %1962 = vmatprep.mubr.msk.bf16.mxu1 %vm647_vm11, %v1879_v34  ;;  %2012 = vmatprep.mubr.msk.bf16.mxu0 %vm647_vm11, %v1788_v9 }
  0x7a   : > { %1963 = vmatmul.mubr.msk.bf16.vlgmr.msra.gmra.mrb[0].mxu1 %vm647_vm11, %v1880_v47  ;;  %2013 = vmatmul.mubr.msk.bf16.vlgmr.msra.gmra.mrb[0].mxu0 %vm647_vm11, %v1789_v19 }
  0x7b   : > { %2021 = vmatpush3.bf16.msra.mxu1 %v2163_v2  ;;  %1966 = vmatprep.mubr.msk.bf16.mxu1 %vm647_vm11, %v1881_v7 }
  0x7c   : > { %2016 = vmatprep.mubr.msk.bf16.mxu0 %vm647_vm11, %v1790_v3 }
  0x82   : > { %1967 = vmatmul.mubr.msk.bf16.gmra.mrb[4].mxu1 %vm647_vm11, %v1882_v14  ;;  %2017 = vmatmul.mubr.msk.bf16.gmra.mrb[4].mxu0 %vm647_vm11, %v1853_v63 }
  0x83   : > { %1976 = vmatprep.mubr.msk.bf16.mxu1 %vm647_vm11, %v1813_v42 }
  0x8e   : > { %1977 = vmatmul.mubr.msk.bf16.vlgmr.msra.gmra.mrb[4].mxu1 %vm647_vm11, %v1814_v36 }
 0x14d   : > { %v1964_v2 = vpop.f32.mrb[0].mxu1  ;;  %v2014_v56 = vpop.f32.mrb[0].mxu0 }
 0x14e   : > { %v1014_v44 = vpop.f32.mrb[1].mxu1  ;;  %v2022_v30 = vadd.f32 %v2014_v56, %v1964_v2  ;;  %v1516_v58 = vpop.f32.mrb[1].mxu0 }
 0x14f   : > { %v1965_v62 = vpop.f32.mrb[2].mxu1  ;;  %v2023_v29 = vadd.f32 %v1516_v58, %v1014_v44  ;;  %v2015_v6 = vpop.f32.mrb[2].mxu0 }
 0x150   : > { %v1017_v8 = vpop.f32.mrb[3].mxu1  ;;  %v1611_v12 = vpack.c.bf16 %v2022_v30, %v2022_v30  ;;  %v2024_v50 = vadd.f32 %v2015_v6, %v1965_v62  ;;  %v1519_v31 = vpop.f32.mrb[3].mxu0  ;;  %v1581_v53 = vmul.f32 %v2022_v30, %v2022_v30  ;;  %v1559_v61 = vsel %vm1555_vm3, %v2022_v30, 0.0 }
 0x151   : > { %v1579_v52 = vmul.f32 %v2023_v29, %v2023_v29  ;;  %v1609_v28 = vpack.c.bf16 %v2023_v29, %v2023_v29  ;;  %v2025_v35 = vadd.f32 %v1519_v31, %v1017_v8  ;;  %v1556_v46 = vsel %vm1555_vm3, %v2023_v29, 0.0 }
 0x152   : > { %1620 = vst.msk [vmem:[%s2589_s30 + $0x8] sm:$0xf] %vm1617_vm0, %v1611_v12  ;;  %v1612_v11 = vpack.c.bf16 %v2024_v50, %v2024_v50  ;;  %v1582_v45 = vmul.f32 %v2024_v50, %v2024_v50  ;;  %v1590_v60 = vsel %vm1555_vm3, %v1581_v53, 0.0  ;;  %v1561_v32 = vsel %vm1555_vm3, %v2024_v50, 0.0 }
 0x153   : > { %1618 = vst.msk [vmem:[%s2589_s30] sm:$0xf] %vm1617_vm0, %v1609_v28  ;;  %v1557_v38 = vsel %vm1555_vm3, %v2025_v35, 0.0  ;;  %v1580_v39 = vmul.f32 %v2025_v35, %v2025_v35  ;;  %v1610_v59 = vpack.c.bf16 %v2025_v35, %v2025_v35  ;;  %v1587_v16 = vsel %vm1555_vm3, %v1579_v52, 0.0 }
 0x154   : > { %1621 = vst.msk [vmem:[%s2589_s30 + $0xc] sm:$0xf] %vm1617_vm0, %v1612_v11  ;;  %v1558_v40 = vadd.f32 %v1557_v38, %v1556_v46  ;;  %v1592_v15 = vsel %vm1555_vm3, %v1582_v45, 0.0 }
 0x155   : > { %v1588_v17 = vsel %vm1555_vm3, %v1580_v39, 0.0  ;;  %1619 = vst.msk [vmem:[%s2589_s30 + $0x4] sm:$0xf] %vm1617_vm0, %v1610_v59  ;;  %v2018_v21 = vpop.f32.mrb[4].mxu0 }
 0x156   : > { %v1560_v10 = vadd.f32 %v1559_v61, %v1558_v40  ;;  %v1589_v27 = vadd.f32 %v1588_v17, %v1587_v16  ;;  %v1532_v0 = vpop.f32.mrb[5].mxu0 }
 0x157   : > { %v2019_v57 = vpop.f32.mrb[6].mxu0 }
 0x158   : > { %v1591_v22 = vadd.f32 %v1590_v60, %v1589_v27  ;;  %v1562_v13 = vadd.f32 %v1561_v32, %v1560_v10  ;;  %v1535_v20 = vpop.f32.mrb[7].mxu0 }
 0x15a   : > { %v1593_v23 = vadd.f32 %v1592_v15, %v1591_v22 }
 0x161   : > { %v1978_v34 = vpop.f32.mrb[4].mxu1 }
 0x162   : > { %v2026_v26 = vadd.f32 %v2018_v21, %v1978_v34  ;;  %v1146_v48 = vpop.f32.mrb[5].mxu1 }
 0x163   : > { %v2027_v24 = vadd.f32 %v1532_v0, %v1146_v48  ;;  %v1979_v47 = vpop.f32.mrb[6].mxu1 }
 0x164   : > { %v1615_v49 = vpack.c.bf16 %v2026_v26, %v2026_v26  ;;  %v2028_v25 = vadd.f32 %v2019_v57, %v1979_v47  ;;  %v1149_v54 = vpop.f32.mrb[7].mxu1  ;;  %v1585_v41 = vmul.f32 %v2026_v26, %v2026_v26  ;;  %v1567_v7 = vsel %vm1555_vm3, %v2026_v26, 0.0 }
 0x165   : > { %v1563_v55 = vsel %vm1555_vm3, %v2027_v24, 0.0  ;;  %v1583_v33 = vmul.f32 %v2027_v24, %v2027_v24  ;;  %v1613_v1 = vpack.c.bf16 %v2027_v24, %v2027_v24  ;;  %v2029_v37 = vadd.f32 %v1535_v20, %v1149_v54 }
 0x166   : > { %1624 = vst.msk [vmem:[%s2589_s30 + $0x18] sm:$0xf] %vm1617_vm0, %v1615_v49  ;;  %v1564_v4 = vadd.f32 %v1563_v55, %v1562_v13  ;;  %v1616_v43 = vpack.c.bf16 %v2028_v25, %v2028_v25  ;;  %v1586_v14 = vmul.f32 %v2028_v25, %v2028_v25  ;;  %v1598_v2 = vsel %vm1555_vm3, %v1585_v41, 0.0 }
 0x167   : > { %v1594_v5 = vsel %vm1555_vm3, %v1583_v33, 0.0  ;;  %1622 = vst.msk [vmem:[%s2589_s30 + $0x10] sm:$0xf] %vm1617_vm0, %v1613_v1  ;;  %v1565_v51 = vsel %vm1555_vm3, %v2029_v37, 0.0  ;;  %v1584_v9 = vmul.f32 %v2029_v37, %v2029_v37  ;;  %v1614_v18 = vpack.c.bf16 %v2029_v37, %v2029_v37 }
 0x168   : > { %v1595_v19 = vadd.f32 %v1594_v5, %v1593_v23  ;;  %v1566_v3 = vadd.f32 %v1565_v51, %v1564_v4  ;;  %1625 = vst.msk [vmem:[%s2589_s30 + $0x1c] sm:$0xf] %vm1617_vm0, %v1616_v43  ;;  %v1569_v56 = vsel %vm1555_vm3, %v2028_v25, 0.0  ;;  %v1600_v58 = vsel %vm1555_vm3, %v1586_v14, 0.0 }
 0x169   : > { %v1596_v63 = vsel %vm1555_vm3, %v1584_v9, 0.0  ;;  %1623 = vst.msk [vmem:[%s2589_s30 + $0x14] sm:$0xf] %vm1617_vm0, %v1614_v18 }
 0x16a   : > { %v1568_v42 = vadd.f32 %v1567_v7, %v1566_v3  ;;  %v1597_v36 = vadd.f32 %v1596_v63, %v1595_v19 }
 0x16c   : > { %v1570_v44 = vadd.f32 %v1569_v56, %v1568_v42  ;;  %v1599_v30 = vadd.f32 %v1598_v2, %v1597_v36 }
 0x16e   : > { %v1571_v62 = vrot.slane %v1570_v44, 4  ;;  %v1601_v29 = vadd.f32 %v1600_v58, %v1599_v30 }
 0x170   : > { %v1572_v6 = vadd.f32 %v1571_v62, %v1570_v44  ;;  %v1602_v8 = vrot.slane %v1601_v29, 4 }
 0x172   : > { %v1573_v12 = vrot.slane %v1572_v6, 2  ;;  %v1603_v50 = vadd.f32 %v1602_v8, %v1601_v29 }
 0x174   : > { %v1574_v31 = vadd.f32 %v1573_v12, %v1572_v6  ;;  %v1604_v52 = vrot.slane %v1603_v50, 2 }
 0x176   : > { %v1575_v28 = vrot.slane %v1574_v31, 1  ;;  %v1605_v35 = vadd.f32 %v1604_v52, %v1603_v50 }
 0x178   : > { %v1576_v53 = vadd.f32 %v1575_v28, %v1574_v31  ;;  %v1606_v11 = vrot.slane %v1605_v35, 1 }
 0x17a   : > { %1578 = vst.msk [vmem:[%s265_s9] sm:$0x1] %vm1577_vm10, %v1576_v53  ;;  %v1607_v46 = vadd.f32 %v1606_v11, %v1605_v35 }
 0x17c   : > { %1608 = vst.msk [vmem:[%s268_s12] sm:$0x1] %vm1577_vm10, %v1607_v46 }
 0x17d PF: > { %s17_s21 = sadd.s32 1, %s2111_s21  }
 0x17e   : > { %p14_p4 = scmp.ge.s32.totalorder %s17_s21, 4  }
 0x180   :  { %16 = sbr.rel (!%p14_p4) target bundleno = 1 (0x1), region = 98 }

// kernel: dcgan_generator_forward.7
= control target key start
LH: loop header
LB: loop body
LE: loop exit
PB: predicated region body
PF: predicated region fallthrough
CT: control target
= control target key end

     0   :  { %s1891_s15 = smov 0   ;;  %s2729_s0 = inlined_call_operand.vmem [shape: bf16[2,18,18,8], index: 0, kind: input, shape index: {}]   ;;  %s2730_s1 = inlined_call_operand.vmem [shape: bf16[9,3,8], index: 1, kind: input, shape index: {}]   ;;  %s2731_s2 = inlined_call_operand.vmem [shape: f32[1,8], index: 2, kind: input, shape index: {}]   ;;  %s2732_s3 = inlined_call_operand.vmem [shape: f32[1,8], index: 3, kind: input, shape index: {}]   ;;  %s2733_s4 = inlined_call_operand.vmem [shape: f32[2,3,256], index: 4, kind: output, shape index: {}]  }
   0x1 LB: > { %s1537_s16 = sadd.s32 4294967295, %s1862_s15   ;;  %p1541_p0 = scmp.ge.s32.totalorder %s1862_s15, 1  ;;  %s1862_s15 = sphi %s1891_s15, %s14_s15  }
   0x2   : > { %p162_p1 = scmp.lt.s32.totalorder %s1862_s15, 3 }
   0x4   : > { %p163_p2 = pnand %p1541_p0, %p162_p1 }
   0x6   : > { %166 = sbr.rel (%p163_p2) target bundleno = 607 (0x25f), region = 36 }
   0xd   : > { %p188_p3 = scmp.lt.s32.totalorder %s1537_s16, 1  ;;  %v483_v0 = vlaneseq  ;;  %vm791_vm0 = vcmask 64512   ;;  %v1902_v1 = vld [vmem:[%s2730_s1 + $0x6] sm:$0x3]  ;;  %v1913_v3 = vld [vmem:[%s2730_s1 + $0x2] sm:$0x3] }
   0xe   : > { %1677 = vmatprep.mubr.msk.bf16.mxu0 %vm791_vm0, %v1902_v1  ;;  %v2734_v4 = vmov 0   ;;  %1623 = vmatprep.mubr.msk.bf16.mxu1 %vm791_vm0, %v1913_v3  ;;  %v1932_v7 = vld [vmem:[%s2731_s2] ss:$0 sm:$0xff]  ;;  %vm596_vm3 = vsmask.f32 7424  ;;  %vm992_vm4 = vcmask 1046528  }
   0xf   : > { %s2766_s16 = smov (!%p188_p3, %s1537_s16), 1  ;;  %v1906_v2 = vshrl.u32 %v483_v0, 7  ;;  %v1916_v5 = vrot.slane %v2734_v4, 1  ;;  %v1948_v18 = vld [vmem:[%s2732_s3] ss:$0 sm:$0xff] }
  0x10   : > { %s1841_s21 = smul.u32 216, %s2766_s16  ;;  %s1566_s19 = sshll.u32 %s2766_s16, 3 }
  0x11   : > { %2746 = vst [vmem:[#allocation2_spill] sm:$0xff] %v1916_v5  ;;  %v1922_v6 = vadd.s32 16, %v1906_v2  ;;  %vm487_vm1 = vcmp.ge.s32.totalorder %v1906_v2, 1  ;;  %v1941_v11 = vsel %vm791_vm0, %v1916_v5, 0  ;;  %s197_s22 = scalar_lea.vmem %s2733_s4, %s1566_s19 }
  0x12   : > { %s1927_s24 = scalar_lea.vmem %s2729_s0, %s1841_s21 }
  0x13   : > { %v226_v8 = vld [vmem:[%s1927_s24 + $0x6c] sm:$0xff]   ;;  %v1602_v10 = vld [vmem:[%s1927_s24 + $0x60] sm:$0xff]   ;;  %vm498_vm2 = vcmp.le.s32.totalorder %v1922_v6, 16  ;;  %v225_v16 = vld [vmem:[%s1927_s24 + $0x68] sm:$0x1] }
  0x14   : > { %v202_v9 = vld [vmem:[%s1927_s24 + $0xc] sm:$0xff]   ;;  %v280_v12 = vunpack.c.l.bf16 %v226_v8  ;;  %v281_v13 = vunpack.c.h.bf16 %v226_v8  ;;  %v1603_v17 = vld [vmem:[%s1927_s24 + $0x78] sm:$0xff]   ;;  %v1581_v19 = vunpack.c.l.bf16 %v1602_v10  ;;  %v1582_v20 = vunpack.c.h.bf16 %v1602_v10  ;;  %v228_v52 = vld [vmem:[%s1927_s24 + $0x74] sm:$0x1] }
  0x15   : > { %v256_v14 = vunpack.c.l.bf16 %v202_v9  ;;  %v257_v15 = vunpack.c.h.bf16 %v202_v9  ;;  %v279_v21 = vunpack.c.l.bf16 %v225_v16  ;;  %v1585_v22 = vunpack.c.l.bf16 %v1603_v17  ;;  %v1599_v39 = vld [vmem:[%s1927_s24 + $0x18] sm:$0xff]  }
  0x16   : > { %v341_v23 = vsub.f32 %v280_v12, %v1932_v7  ;;  %v342_v24 = vsub.f32 %v281_v13, %v1932_v7  ;;  %v338_v27 = vsub.f32 %v1581_v19, %v1932_v7  ;;  %v339_v28 = vsub.f32 %v1582_v20, %v1932_v7 }
  0x17   : > { %v317_v25 = vsub.f32 %v256_v14, %v1932_v7  ;;  %v318_v26 = vsub.f32 %v257_v15, %v1932_v7  ;;  %v340_v29 = vsub.f32 %v279_v21, %v1932_v7  ;;  %v1586_v30 = vunpack.c.h.bf16 %v1603_v17  ;;  %v204_v17 = vld [vmem:[%s1927_s24 + $0x14] sm:$0x1] }
  0x18   : > { %v402_v31 = vmul.f32 %v1948_v18, %v341_v23  ;;  %v403_v32 = vmul.f32 %v1948_v18, %v342_v24  ;;  %v399_v35 = vmul.f32 %v1948_v18, %v338_v27  ;;  %v400_v36 = vmul.f32 %v1948_v18, %v339_v28  ;;  %v232_v27 = vld [vmem:[%s1927_s24 + $0x84] sm:$0xff]  }
  0x19   : > { %v378_v33 = vmul.f32 %v1948_v18, %v317_v25  ;;  %v379_v34 = vmul.f32 %v1948_v18, %v318_v26  ;;  %v401_v37 = vmul.f32 %v1948_v18, %v340_v29  ;;  %v344_v38 = vsub.f32 %v1585_v22, %v1932_v7 }
  0x1a   : > { %v456_v40 = vmax.f32 %v402_v31, 0.0  ;;  %v457_v41 = vmax.f32 %v403_v32, 0.0  ;;  %v453_v44 = vmax.f32 %v399_v35, 0.0  ;;  %v454_v45 = vmax.f32 %v400_v36, 0.0 }
  0x1b   : > { %v432_v42 = vmax.f32 %v378_v33, 0.0  ;;  %v433_v43 = vmax.f32 %v379_v34, 0.0  ;;  %v455_v46 = vmax.f32 %v401_v37, 0.0  ;;  %v345_v47 = vsub.f32 %v1586_v30, %v1932_v7 }
  0x1c   : > { %v532_v48 = vsel %vm487_vm1, %v456_v40, 0.0  ;;  %v405_v50 = vmul.f32 %v1948_v18, %v344_v38  ;;  %v1569_v51 = vunpack.c.l.bf16 %v1599_v39  ;;  %v529_v55 = vsel %vm487_vm1, %v453_v44, 0.0  ;;  %v208_v40 = vld [vmem:[%s1927_s24 + $0x24] sm:$0xff]   ;;  %v231_v44 = vld [vmem:[%s1927_s24 + $0x80] sm:$0x1] }
  0x1d   : > { %v508_v49 = vsel %vm487_vm1, %v432_v42, 0.0  ;;  %v1973_v53 = vpack.c.bf16 %v457_v41, %v532_v48  ;;  %v531_v56 = vsel %vm498_vm2, %v455_v46, 0.0  ;;  %v1981_v57 = vpack.c.bf16 %v454_v45, %v529_v55 }
  0x1e   : > { %v1975_v54 = vpack.c.bf16 %v433_v43, %v508_v49  ;;  %v1983_v58 = vpack.c.bf16 %v531_v56, %v531_v56  ;;  %v406_v59 = vmul.f32 %v1948_v18, %v345_v47  ;;  %v459_v60 = vmax.f32 %v405_v50, 0.0 }
  0x1f   : > { %1801 = vmatprep.subr.msk.bf16.mxu0 %vm791_vm0, %v1973_v53  ;;  %v1570_v62 = vunpack.c.h.bf16 %v1599_v39  ;;  %v320_v63 = vsub.f32 %v1569_v51, %v1932_v7  ;;  %v282_v0 = vunpack.c.l.bf16 %v228_v52  ;;  %v694_v8 = vshrl.u32 %v1981_v57, 16 }
  0x20   : > { %v1990_v61 = vsel %vm791_vm0, %v1975_v54, 0  ;;  %v696_v9 = vshll.u32 %v1981_v57, 16  ;;  %v701_v10 = vshll.u32 %v1983_v58, 16  ;;  %v460_v12 = vmax.f32 %v406_v59, 0.0 }
  0x21   : > { %1662 = vmatpush3.bf16.xpose.msra.mxu0 %v1990_v61  ;;  %v535_v13 = vsel %vm487_vm1, %v459_v60, 0.0  ;;  %v321_v14 = vsub.f32 %v1570_v62, %v1932_v7  ;;  %v381_v15 = vmul.f32 %v1948_v18, %v320_v63  ;;  %v343_v16 = vsub.f32 %v282_v0, %v1932_v7 }
  0x22   : > { %v698_v19 = vrot.slane %v696_v9, 1  ;;  %v703_v20 = vrot.slane %v701_v10, 1  ;;  %v2003_v21 = vpack.c.bf16 %v460_v12, %v535_v13  ;;  %v706_v22 = vshrl.u32 %v1973_v53, 16 }
  0x23   : > { %v382_v23 = vmul.f32 %v1948_v18, %v321_v14  ;;  %v435_v24 = vmax.f32 %v381_v15, 0.0  ;;  %v404_v25 = vmul.f32 %v1948_v18, %v343_v16  ;;  %v708_v26 = vshll.u32 %v1973_v53, 16 }
  0x24   : > { %v699_v28 = vor.u32 %v698_v19, %v694_v8  ;;  %1802 = vmatprep.subr.msk.bf16.mxu0 %vm791_vm0, %v2003_v21  ;;  %v258_v29 = vunpack.c.l.bf16 %v204_v17  ;;  %v610_v30 = vshrl.u32 %v1975_v54, 16  ;;  %v612_v31 = vshll.u32 %v1975_v54, 16  ;;  %v207_v17 = vld [vmem:[%s1927_s24 + $0x20] sm:$0x1] }
  0x25   : > { %v436_v32 = vmax.f32 %v382_v23, 0.0  ;;  %v511_v33 = vsel %vm487_vm1, %v435_v24, 0.0  ;;  %v458_v34 = vmax.f32 %v404_v25, 0.0  ;;  %v710_v35 = vrot.slane %v708_v26, 1 }
  0x26   : > { %v2017_v36 = vsel %vm596_vm3, %v699_v28, %v703_v20  ;;  %v319_v37 = vsub.f32 %v258_v29, %v1932_v7  ;;  %v614_v38 = vrot.slane %v612_v31, 1  ;;  %v286_v39 = vunpack.c.l.bf16 %v232_v27 }
  0x27   : > { %1777 = vmatprep.subr.msk.bf16.mxu1 %vm791_vm0, %v2017_v36  ;;  %v2023_v41 = vpack.c.bf16 %v436_v32, %v511_v33  ;;  %v534_v42 = vsel %vm498_vm2, %v458_v34, 0.0  ;;  %v711_v43 = vor.u32 %v710_v35, %v706_v22  ;;  %v287_v48 = vunpack.c.h.bf16 %v232_v27  ;;  %v1604_v32 = vld [vmem:[%s1927_s24 + $0x90] sm:$0xff]  }
  0x28   : > { %1608 = vmatpush3.bf16.xpose.msra.mxu1 %v1941_v11  ;;  %v2029_v45 = vpack.c.bf16 %v534_v42, %v534_v42  ;;  %v380_v46 = vmul.f32 %v1948_v18, %v319_v37  ;;  %v615_v47 = vor.u32 %v614_v38, %v610_v30  ;;  %v347_v50 = vsub.f32 %v286_v39, %v1932_v7 }
  0x29   : > { %v2034_v49 = vsel %vm791_vm0, %v2023_v41, 0  ;;  %v262_v51 = vunpack.c.l.bf16 %v208_v40  ;;  %v263_v52 = vunpack.c.h.bf16 %v208_v40  ;;  %v348_v56 = vsub.f32 %v287_v48, %v1932_v7 }
  0x2a   : > { %1664 = vmatpush3.bf16.xpose.msra.mxu0 %v2034_v49  ;;  %v713_v55 = vshll.u32 %v2029_v45, 16  ;;  %v434_v11 = vmax.f32 %v380_v46, 0.0  ;;  %v285_v59 = vunpack.c.l.bf16 %v231_v44  ;;  %v408_v60 = vmul.f32 %v1948_v18, %v347_v50 }
  0x2b   : > { %v323_v62 = vsub.f32 %v262_v51, %v1932_v7  ;;  %v324_v63 = vsub.f32 %v263_v52, %v1932_v7  ;;  %v718_v0 = vshrl.u32 %v2003_v21, 16  ;;  %v409_v10 = vmul.f32 %v1948_v18, %v348_v56  ;;  %v234_v51 = vld [vmem:[%s1927_s24 + $0x8c] sm:$0x1] }
  0x2c   : > { %v715_v8 = vrot.slane %v713_v55, 1  ;;  %v510_v9 = vsel %vm498_vm2, %v434_v11, 0.0  ;;  %v346_v12 = vsub.f32 %v285_v59, %v1932_v7  ;;  %v462_v14 = vmax.f32 %v408_v60, 0.0 }
  0x2d   : > { %v2048_v13 = vpack.c.bf16 %v510_v9, %v510_v9  ;;  %v384_v15 = vmul.f32 %v1948_v18, %v323_v62  ;;  %v385_v16 = vmul.f32 %v1948_v18, %v324_v63  ;;  %v463_v20 = vmax.f32 %v409_v10, 0.0 }
  0x2e   : > { %v2054_v19 = vsel %vm596_vm3, %v711_v43, %v715_v8  ;;  %v407_v22 = vmul.f32 %v1948_v18, %v346_v12  ;;  %v720_v23 = vshll.u32 %v2003_v21, 16  ;;  %v538_v25 = vsel %vm487_vm1, %v462_v14, 0.0  ;;  %v1600_v43 = vld [vmem:[%s1927_s24 + $0x30] sm:$0xff]  }
  0x2f   : > { %1778 = vmatprep.subr.msk.bf16.mxu1 %vm791_vm0, %v2054_v19  ;;  %v617_v24 = vshll.u32 %v2048_v13, 16  ;;  %v438_v26 = vmax.f32 %v384_v15, 0.0  ;;  %v439_v27 = vmax.f32 %v385_v16, 0.0  ;;  %v2063_v28 = vpack.c.bf16 %v463_v20, %v538_v25 }
  0x30   : > { %v461_v29 = vmax.f32 %v407_v22, 0.0  ;;  %v722_v30 = vrot.slane %v720_v23, 1  ;;  %v261_v31 = vunpack.c.l.bf16 %v207_v17  ;;  %v622_v35 = vshrl.u32 %v2023_v41, 16  ;;  %v210_v23 = vld [vmem:[%s1927_s24 + $0x2c] sm:$0x1] }
  0x31   : > { %v619_v33 = vrot.slane %v617_v24, 1  ;;  %v514_v34 = vsel %vm487_vm1, %v438_v26, 0.0  ;;  %v624_v37 = vshll.u32 %v2023_v41, 16  ;;  %1803 = vmatprep.subr.msk.bf16.mxu0 %vm791_vm0, %v2063_v28  ;;  %v1589_v50 = vunpack.c.l.bf16 %v1604_v32 }
  0x32   : > { %v2072_v38 = vpack.c.bf16 %v439_v27, %v514_v34  ;;  %v537_v39 = vsel %vm498_vm2, %v461_v29, 0.0  ;;  %v723_v40 = vor.u32 %v722_v30, %v718_v0  ;;  %v322_v42 = vsub.f32 %v261_v31, %v1932_v7 }
  0x33   : > { %v620_v44 = vsel %vm596_vm3, %v615_v47, %v619_v33  ;;  %v2079_v46 = vpack.c.bf16 %v537_v39, %v537_v39  ;;  %v626_v48 = vrot.slane %v624_v37, 1  ;;  %v1590_v56 = vunpack.c.h.bf16 %v1604_v32 }
  0x34   : > { %2747 = vst [vmem:[#allocation3_spill] sm:$0xff] %v2072_v38  ;;  %v2083_v52 = vsel %vm791_vm0, %v620_v44, 0  ;;  %v2087_v55 = vsel %vm791_vm0, %v2072_v38, 0  ;;  %v383_v11 = vmul.f32 %v1948_v18, %v322_v42  ;;  %v350_v60 = vsub.f32 %v1589_v50, %v1932_v7  ;;  %v238_v44 = vld [vmem:[%s1927_s24 + $0x9c] sm:$0xff]  }
  0x35   : > { %1610 = vmatpush3.bf16.xpose.msra.mxu1 %v2083_v52  ;;  %1666 = vmatpush3.bf16.xpose.msra.mxu0 %v2087_v55  ;;  %v725_v47 = vshll.u32 %v2079_v46, 16  ;;  %v627_v59 = vor.u32 %v626_v48, %v622_v35  ;;  %v1573_v62 = vunpack.c.l.bf16 %v1600_v43  ;;  %v351_v0 = vsub.f32 %v1590_v56, %v1932_v7 }
  0x36   : > { %v437_v63 = vmax.f32 %v383_v11, 0.0  ;;  %v1574_v8 = vunpack.c.h.bf16 %v1600_v43  ;;  %v288_v9 = vunpack.c.l.bf16 %v234_v51  ;;  %v411_v12 = vmul.f32 %v1948_v18, %v350_v60 }
  0x37   : > { %v727_v10 = vrot.slane %v725_v47, 1  ;;  %v326_v14 = vsub.f32 %v1573_v62, %v1932_v7  ;;  %v730_v15 = vshrl.u32 %v2063_v28, 16  ;;  %v412_v17 = vmul.f32 %v1948_v18, %v351_v0 }
  0x38   : > { %v513_v16 = vsel %vm498_vm2, %v437_v63, 0.0  ;;  %v327_v20 = vsub.f32 %v1574_v8, %v1932_v7  ;;  %v349_v22 = vsub.f32 %v288_v9, %v1932_v7  ;;  %v465_v26 = vmax.f32 %v411_v12, 0.0  ;;  %v214_v63 = vld [vmem:[%s1927_s24 + $0x3c] sm:$0xff]   ;;  %v237_v12 = vld [vmem:[%s1927_s24 + $0x98] sm:$0x1] }
  0x39   : > { %v2105_v24 = vsel %vm596_vm3, %v723_v40, %v727_v10  ;;  %v2107_v25 = vpack.c.bf16 %v513_v16, %v513_v16  ;;  %v387_v27 = vmul.f32 %v1948_v18, %v326_v14  ;;  %v466_v29 = vmax.f32 %v412_v17, 0.0 }
  0x3a   : > { %1779 = vmatprep.subr.msk.bf16.mxu1 %vm791_vm0, %v2105_v24  ;;  %v388_v30 = vmul.f32 %v1948_v18, %v327_v20  ;;  %v410_v31 = vmul.f32 %v1948_v18, %v349_v22  ;;  %v732_v32 = vshll.u32 %v2063_v28, 16  ;;  %v541_v34 = vsel %vm487_vm1, %v465_v26, 0.0 }
  0x3b   : > { %2748 = vst [vmem:[#allocation4_spill] sm:$0xff] %v2107_v25  ;;  %v629_v33 = vshll.u32 %v2107_v25, 16  ;;  %v441_v35 = vmax.f32 %v387_v27, 0.0  ;;  %v264_v37 = vunpack.c.l.bf16 %v210_v23  ;;  %v2118_v39 = vpack.c.bf16 %v466_v29, %v541_v34 }
  0x3c   : > { %v442_v40 = vmax.f32 %v388_v30, 0.0  ;;  %v464_v42 = vmax.f32 %v410_v31, 0.0  ;;  %v734_v43 = vrot.slane %v732_v32, 1  ;;  %v634_v11 = vshrl.u32 %v2072_v38, 16 }
  0x3d   : > { %v631_v48 = vrot.slane %v629_v33, 1  ;;  %v517_v50 = vsel %vm487_vm1, %v441_v35, 0.0  ;;  %v325_v51 = vsub.f32 %v264_v37, %v1932_v7  ;;  %1804 = vmatprep.subr.msk.bf16.mxu0 %vm791_vm0, %v2118_v39  ;;  %v636_v62 = vshll.u32 %v2072_v38, 16 }
  0x3e   : > { %v2127_v56 = vpack.c.bf16 %v442_v40, %v517_v50  ;;  %v540_v47 = vsel %vm498_vm2, %v464_v42, 0.0  ;;  %v735_v60 = vor.u32 %v734_v43, %v730_v15  ;;  %v292_v10 = vunpack.c.l.bf16 %v238_v44  ;;  %v213_v43 = vld [vmem:[%s1927_s24 + $0x38] sm:$0x1] }
  0x3f   : > { %v632_v0 = vsel %vm596_vm3, %v627_v59, %v631_v48  ;;  %v2134_v8 = vpack.c.bf16 %v540_v47, %v540_v47  ;;  %v386_v9 = vmul.f32 %v1948_v18, %v325_v51  ;;  %v638_v17 = vrot.slane %v636_v62, 1 }
  0x40   : > { %v2139_v14 = vsel %vm791_vm0, %v632_v0, 0  ;;  %v2143_v16 = vsel %vm791_vm0, %v2127_v56, 0  ;;  %v293_v15 = vunpack.c.h.bf16 %v238_v44  ;;  %v353_v22 = vsub.f32 %v292_v10, %v1932_v7 }
  0x41   : > { %2749 = vst [vmem:[#allocation5_spill] sm:$0xff] %v2134_v8  ;;  %1612 = vmatpush3.bf16.xpose.msra.mxu1 %v2139_v14  ;;  %1668 = vmatpush3.bf16.xpose.msra.mxu0 %v2143_v16  ;;  %v737_v59 = vshll.u32 %v2134_v8, 16  ;;  %v440_v20 = vmax.f32 %v386_v9, 0.0  ;;  %v268_v23 = vunpack.c.l.bf16 %v214_v63  ;;  %v639_v26 = vor.u32 %v638_v17, %v634_v11 }
  0x42   : > { %v354_v27 = vsub.f32 %v293_v15, %v1932_v7  ;;  %v269_v29 = vunpack.c.h.bf16 %v214_v63  ;;  %v291_v30 = vunpack.c.l.bf16 %v237_v12  ;;  %v414_v33 = vmul.f32 %v1948_v18, %v353_v22 }
  0x43   : > { %v739_v31 = vrot.slane %v737_v59, 1  ;;  %v516_v32 = vsel %vm498_vm2, %v440_v20, 0.0  ;;  %v329_v34 = vsub.f32 %v268_v23, %v1932_v7  ;;  %v742_v51 = vshrl.u32 %v2118_v39, 16 }
  0x44   : > { %v2154_v35 = vpack.c.bf16 %v516_v32, %v516_v32  ;;  %v415_v37 = vmul.f32 %v1948_v18, %v354_v27  ;;  %v330_v40 = vsub.f32 %v269_v29, %v1932_v7  ;;  %v352_v42 = vsub.f32 %v291_v30, %v1932_v7  ;;  %v1605_v29 = vld [vmem:[%s1927_s24 + $0xa8] sm:$0xff]  }
  0x45   : > { %v2161_v44 = vsel %vm596_vm3, %v735_v60, %v739_v31  ;;  %v468_v48 = vmax.f32 %v414_v33, 0.0  ;;  %v390_v50 = vmul.f32 %v1948_v18, %v329_v34  ;;  %v744_v9 = vshll.u32 %v2118_v39, 16  ;;  %v1601_v34 = vld [vmem:[%s1927_s24 + $0x48] sm:$0xff]  }
  0x46   : > { %2750 = vst [vmem:[#allocation6_spill] sm:$0xff] %v2154_v35  ;;  %1780 = vmatprep.subr.msk.bf16.mxu1 %vm791_vm0, %v2161_v44  ;;  %v641_v11 = vshll.u32 %v2154_v35, 16  ;;  %v469_v47 = vmax.f32 %v415_v37, 0.0  ;;  %v391_v62 = vmul.f32 %v1948_v18, %v330_v40  ;;  %v413_v63 = vmul.f32 %v1948_v18, %v352_v42 }
  0x47   : > { %v544_v60 = vsel %vm487_vm1, %v468_v48, 0.0  ;;  %v444_v0 = vmax.f32 %v390_v50, 0.0  ;;  %v267_v10 = vunpack.c.l.bf16 %v213_v43  ;;  %v746_v22 = vrot.slane %v744_v9, 1 }
  0x48   : > { %v643_v12 = vrot.slane %v641_v11, 1  ;;  %v2173_v17 = vpack.c.bf16 %v469_v47, %v544_v60  ;;  %v445_v15 = vmax.f32 %v391_v62, 0.0  ;;  %v467_v59 = vmax.f32 %v413_v63, 0.0 }
  0x49   : > { %v520_v20 = vsel %vm487_vm1, %v444_v0, 0.0  ;;  %v328_v23 = vsub.f32 %v267_v10, %v1932_v7  ;;  %v646_v27 = vshrl.u32 %v2127_v56, 16  ;;  %v648_v33 = vshll.u32 %v2127_v56, 16 }
  0x4a   : > { %v644_v30 = vsel %vm596_vm3, %v639_v26, %v643_v12  ;;  %1805 = vmatprep.subr.msk.bf16.mxu0 %vm791_vm0, %v2173_v17  ;;  %v2183_v31 = vpack.c.bf16 %v445_v15, %v520_v20  ;;  %v543_v32 = vsel %vm498_vm2, %v467_v59, 0.0  ;;  %v747_v42 = vor.u32 %v746_v22, %v742_v51  ;;  %v240_v26 = vld [vmem:[%s1927_s24 + $0xa4] sm:$0x1] }
  0x4b   : > { %v2190_v37 = vsel %vm791_vm0, %v644_v30, 0  ;;  %v2192_v40 = vpack.c.bf16 %v543_v32, %v543_v32  ;;  %v389_v43 = vmul.f32 %v1948_v18, %v328_v23  ;;  %v650_v50 = vrot.slane %v648_v33, 1  ;;  %v216_v32 = vld [vmem:[%s1927_s24 + $0x44] sm:$0x1] }
  0x4c   : > { %1614 = vmatpush3.bf16.xpose.msra.mxu1 %v2190_v37  ;;  %v2199_v48 = vsel %vm791_vm0, %v2183_v31, 0  ;;  %v1593_v11 = vunpack.c.l.bf16 %v1605_v29  ;;  %v1594_v47 = vunpack.c.h.bf16 %v1605_v29  ;;  %v1577_v60 = vunpack.c.l.bf16 %v1601_v34 }
  0x4d   : > { %2751 = vst [vmem:[#allocation7_spill] sm:$0xff] %v2192_v40  ;;  %1670 = vmatpush3.bf16.xpose.msra.mxu0 %v2199_v48  ;;  %v749_v62 = vshll.u32 %v2192_v40, 16  ;;  %v443_v63 = vmax.f32 %v389_v43, 0.0  ;;  %v1578_v51 = vunpack.c.h.bf16 %v1601_v34  ;;  %v651_v0 = vor.u32 %v650_v50, %v646_v27 }
  0x4e   : > { %v356_v9 = vsub.f32 %v1593_v11, %v1932_v7  ;;  %v357_v10 = vsub.f32 %v1594_v47, %v1932_v7  ;;  %v294_v12 = vunpack.c.l.bf16 %v240_v26  ;;  %v332_v20 = vsub.f32 %v1577_v60, %v1932_v7 }
  0x4f   : > { %v751_v15 = vrot.slane %v749_v62, 1  ;;  %v519_v59 = vsel %vm498_vm2, %v443_v63, 0.0  ;;  %v333_v22 = vsub.f32 %v1578_v51, %v1932_v7  ;;  %v754_v26 = vshrl.u32 %v2173_v17, 16 }
  0x50   : > { %v2209_v23 = vpack.c.bf16 %v519_v59, %v519_v59  ;;  %v417_v29 = vmul.f32 %v1948_v18, %v356_v9  ;;  %v418_v30 = vmul.f32 %v1948_v18, %v357_v10  ;;  %v355_v27 = vsub.f32 %v294_v12, %v1932_v7 }
  0x51   : > { %v2216_v33 = vsel %vm596_vm3, %v747_v42, %v751_v15  ;;  %v393_v34 = vmul.f32 %v1948_v18, %v332_v20  ;;  %v394_v43 = vmul.f32 %v1948_v18, %v333_v22  ;;  %v756_v42 = vshll.u32 %v2173_v17, 16 }
  0x52   : > { %1781 = vmatprep.subr.msk.bf16.mxu1 %vm791_vm0, %v2216_v33  ;;  %v653_v50 = vshll.u32 %v2209_v23, 16  ;;  %v471_v11 = vmax.f32 %v417_v29, 0.0  ;;  %v472_v47 = vmax.f32 %v418_v30, 0.0  ;;  %v416_v62 = vmul.f32 %v1948_v18, %v355_v27  ;;  %v244_v30 = vld [vmem:[%s1927_s24 + $0xb4] sm:$0xff]  }
  0x53   : > { %v447_v63 = vmax.f32 %v393_v34, 0.0  ;;  %v448_v60 = vmax.f32 %v394_v43, 0.0  ;;  %v270_v51 = vunpack.c.l.bf16 %v216_v32  ;;  %v658_v15 = vshrl.u32 %v2183_v31, 16 }
  0x54   : > { %v655_v9 = vrot.slane %v653_v50, 1  ;;  %v547_v10 = vsel %vm487_vm1, %v471_v11, 0.0  ;;  %v470_v12 = vmax.f32 %v416_v62, 0.0  ;;  %v758_v22 = vrot.slane %v756_v42, 1  ;;  %v220_v50 = vld [vmem:[%s1927_s24 + $0x54] sm:$0xff]  }
  0x55   : > { %v2229_v59 = vpack.c.bf16 %v472_v47, %v547_v10  ;;  %v523_v20 = vsel %vm487_vm1, %v447_v63, 0.0  ;;  %v331_v29 = vsub.f32 %v270_v51, %v1932_v7  ;;  %v660_v43 = vshll.u32 %v2183_v31, 16 }
  0x56   : > { %v656_v27 = vsel %vm596_vm3, %v651_v0, %v655_v9  ;;  %v2236_v32 = vpack.c.bf16 %v448_v60, %v523_v20  ;;  %v546_v34 = vsel %vm498_vm2, %v470_v12, 0.0  ;;  %v759_v62 = vor.u32 %v758_v22, %v754_v26  ;;  %v243_v0 = vld [vmem:[%s1927_s24 + $0xb0] sm:$0x1] }
  0x57   : > { %v2243_v11 = vsel %vm791_vm0, %v656_v27, 0  ;;  %1806 = vmatprep.subr.msk.bf16.mxu0 %vm791_vm0, %v2229_v59  ;;  %v2247_v47 = vpack.c.bf16 %v546_v34, %v546_v34  ;;  %v392_v63 = vmul.f32 %v1948_v18, %v331_v29  ;;  %v662_v42 = vrot.slane %v660_v43, 1 }
  0x58   : > { %1616 = vmatpush3.bf16.xpose.msra.mxu1 %v2243_v11  ;;  %v2254_v60 = vsel %vm791_vm0, %v2236_v32, 0  ;;  %v298_v51 = vunpack.c.l.bf16 %v244_v30  ;;  %v299_v9 = vunpack.c.h.bf16 %v244_v30  ;;  %v274_v20 = vunpack.c.l.bf16 %v220_v50 }
  0x59   : > { %2752 = vst [vmem:[#allocation8_spill] sm:$0xff] %v2247_v47  ;;  %1672 = vmatpush3.bf16.xpose.msra.mxu0 %v2254_v60  ;;  %v761_v10 = vshll.u32 %v2247_v47, 16  ;;  %v446_v12 = vmax.f32 %v392_v63, 0.0  ;;  %v275_v26 = vunpack.c.h.bf16 %v220_v50  ;;  %v297_v27 = vunpack.c.l.bf16 %v243_v0 }
  0x5a   : > { %v359_v22 = vsub.f32 %v298_v51, %v1932_v7  ;;  %v360_v29 = vsub.f32 %v299_v9, %v1932_v7  ;;  %v335_v43 = vsub.f32 %v274_v20, %v1932_v7  ;;  %v219_v51 = vld [vmem:[%s1927_s24 + $0x50] sm:$0x1]  ;;  %v663_v0 = vor.u32 %v662_v42, %v658_v15 }
  0x5b   : > { %v763_v34 = vrot.slane %v761_v10, 1  ;;  %v522_v4 = vsel %vm498_vm2, %v446_v12, 0.0  ;;  %v336_v30 = vsub.f32 %v275_v26, %v1932_v7  ;;  %v358_v50 = vsub.f32 %v297_v27, %v1932_v7 }
  0x5c   : > { %v2264_v5 = vpack.c.bf16 %v522_v4, %v522_v4  ;;  %v420_v47 = vmul.f32 %v1948_v18, %v359_v22  ;;  %v421_v63 = vmul.f32 %v1948_v18, %v360_v29  ;;  %v396_v10 = vmul.f32 %v1948_v18, %v335_v43 }
  0x5d   : > { %v2271_v9 = vsel %vm596_vm3, %v759_v62, %v763_v34  ;;  %v397_v12 = vmul.f32 %v1948_v18, %v336_v30  ;;  %v419_v22 = vmul.f32 %v1948_v18, %v358_v50  ;;  %v768_v62 = vshll.u32 %v2229_v59, 16 }
  0x5e   : > { %1782 = vmatprep.subr.msk.bf16.mxu1 %vm791_vm0, %v2271_v9  ;;  %v665_v4 = vshll.u32 %v2264_v5, 16  ;;  %v474_v20 = vmax.f32 %v420_v47, 0.0  ;;  %v475_v26 = vmax.f32 %v421_v63, 0.0  ;;  %v450_v29 = vmax.f32 %v396_v10, 0.0  ;;  %v1606_v10 = vld [vmem:[%s1927_s24 + $0xc0] sm:$0xff]  }
  0x5f   : > { %v451_v27 = vmax.f32 %v397_v12, 0.0  ;;  %v273_v15 = vunpack.c.l.bf16 %v219_v51  ;;  %v473_v43 = vmax.f32 %v419_v22, 0.0  ;;  %v766_v30 = vshrl.u32 %v2229_v59, 16 }
  0x60   : > { %v667_v42 = vrot.slane %v665_v4, 1  ;;  %v550_v34 = vsel %vm487_vm1, %v474_v20, 0.0  ;;  %v526_v47 = vsel %vm487_vm1, %v450_v29, 0.0  ;;  %v770_v63 = vrot.slane %v768_v62, 1  ;;  %v246_v20 = vld [vmem:[%s1927_s24 + $0xbc] sm:$0x1] }
  0x61   : > { %v2283_v40 = vpack.c.bf16 %v475_v26, %v550_v34  ;;  %v334_v50 = vsub.f32 %v273_v15, %v1932_v7  ;;  %v2290_v35 = vpack.c.bf16 %v451_v27, %v526_v47  ;;  %v549_v51 = vsel %vm498_vm2, %v473_v43, 0.0 }
  0x62   : > { %v668_v12 = vsel %vm596_vm3, %v663_v0, %v667_v42  ;;  %v672_v4 = vshll.u32 %v2236_v32, 16  ;;  %v2301_v22 = vpack.c.bf16 %v549_v51, %v549_v51  ;;  %v670_v0 = vshrl.u32 %v2236_v32, 16  ;;  %v222_v51 = vld [vmem:[%s1927_s24 + $0x5c] sm:$0x1] }
  0x63   : > { %v2297_v26 = vsel %vm791_vm0, %v668_v12, 0  ;;  %1807 = vmatprep.subr.msk.bf16.mxu0 %vm791_vm0, %v2283_v40  ;;  %v395_v29 = vmul.f32 %v1948_v18, %v334_v50  ;;  %v2308_v27 = vsel %vm791_vm0, %v2290_v35, 0  ;;  %v771_v62 = vor.u32 %v770_v63, %v766_v30 }
  0x64   : > { %2753 = vst [vmem:[#allocation9_spill] sm:$0xff] %v2301_v22  ;;  %1618 = vmatpush3.bf16.xpose.msra.mxu1 %v2297_v26  ;;  %2754 = vst [vmem:[#allocation10_spill] sm:$0xff] %v2308_v27  ;;  %v1597_v15 = vunpack.c.l.bf16 %v1606_v10  ;;  %v1598_v42 = vunpack.c.h.bf16 %v1606_v10  ;;  %1674 = vmatpush3.bf16.xpose.msra.mxu0 %v2308_v27  ;;  %v773_v34 = vshll.u32 %v2301_v22, 16  ;;  %v674_v47 = vrot.slane %v672_v4, 1 }
  0x65   : > { %v449_v43 = vmax.f32 %v395_v29, 0.0  ;;  %v300_v12 = vunpack.c.l.bf16 %v246_v20  ;;  %v780_v63 = vshll.u32 %v2283_v40, 16  ;;  %v276_v20 = vunpack.c.l.bf16 %v222_v51 }
  0x66   : > { %v362_v50 = vsub.f32 %v1597_v15, %v1932_v7  ;;  %v363_v38 = vsub.f32 %v1598_v42, %v1932_v7  ;;  %v775_v8 = vrot.slane %v773_v34, 1  ;;  %v675_v15 = vor.u32 %v674_v47, %v670_v0 }
  0x67   : > { %v525_v25 = vsel %vm498_vm2, %v449_v43, 0.0  ;;  %v361_v30 = vsub.f32 %v300_v12, %v1932_v7  ;;  %v782_v0 = vrot.slane %v780_v63, 1  ;;  %v682_v63 = vshrl.u32 %v2290_v35, 16 }
  0x68   : > { %v2319_v10 = vpack.c.bf16 %v525_v25, %v525_v25  ;;  %v423_v22 = vmul.f32 %v1948_v18, %v362_v50  ;;  %v424_v4 = vmul.f32 %v1948_v18, %v363_v38  ;;  %v2324_v29 = vsel %vm596_vm3, %v771_v62, %v775_v8 }
  0x69   : > { %v422_v42 = vmul.f32 %v1948_v18, %v361_v30  ;;  %1783 = vmatprep.subr.msk.bf16.mxu1 %vm791_vm0, %v2324_v29  ;;  %v337_v25 = vsub.f32 %v276_v20, %v1932_v7  ;;  %v778_v50 = vshrl.u32 %v2283_v40, 16  ;;  %v684_v38 = vshll.u32 %v2290_v35, 16 }
  0x6a   : > { %v677_v34 = vshll.u32 %v2319_v10, 16  ;;  %v477_v43 = vmax.f32 %v423_v22, 0.0  ;;  %v478_v12 = vmax.f32 %v424_v4, 0.0  ;;  %v2340_v22 = vsel %vm791_vm0, %v1981_v57, 0 }
  0x6b   : > { %v476_v27 = vmax.f32 %v422_v42, 0.0  ;;  %v398_v62 = vmul.f32 %v1948_v18, %v337_v25 }
  0x6c   : > { %v679_v51 = vrot.slane %v677_v34, 1  ;;  %v553_v8 = vsel %vm487_vm1, %v477_v43, 0.0  ;;  %v686_v34 = vrot.slane %v684_v38, 1  ;;  %v783_v43 = vor.u32 %v782_v0, %v778_v50  ;;  %v2368_v50 = vld [vmem:[%s2730_s1 + $0x8] sm:$0x3] }
  0x6d   : > { %v2336_v47 = vpack.c.bf16 %v478_v12, %v553_v8  ;;  %v552_v30 = vsel %vm498_vm2, %v476_v27, 0.0  ;;  %v452_v42 = vmax.f32 %v398_v62, 0.0 }
  0x6e   : > { %v680_v4 = vsel %vm596_vm3, %v675_v15, %v679_v51  ;;  %v2345_v20 = vpack.c.bf16 %v552_v30, %v552_v30  ;;  %v687_v51 = vor.u32 %v686_v34, %v682_v63  ;;  %v1009_v63 = vrot.slane %v2264_v5, 1 }
  0x6f   : > { %v2348_v2 = vsel %vm791_vm0, %v680_v4, 0  ;;  %1808 = vmatprep.subr.msk.bf16.mxu0 %vm791_vm0, %v2336_v47  ;;  %v528_v15 = vsel %vm498_vm2, %v452_v42, 0.0  ;;  %v1005_v4 = vrot.slane %v2127_v56, 1  ;;  %v1008_v42 = vrot.slane %v2183_v31, 1  ;;  %v2399_v56 = vld [vmem:[%s2730_s1] sm:$0x3] }
  0x70   : > { %1620 = vmatpush3.bf16.xpose.msra.mxu1 %v2348_v2  ;;  %1676 = vmatpush3.bf16.xpose.msra.mxu0 %v2340_v22  ;;  %v785_v27 = vshll.u32 %v2345_v20, 16  ;;  %v574_v12 = vpack.c.bf16 %v528_v15, %v528_v15  ;;  %v1014_v31 = vrot.slane %v2290_v35, 1  ;;  %v1865_v15 = vmov 0.0|0.0   ;;  %v249_v35 = vld [vmem:[%s1927_s24 + $0xc8] sm:$0x1] }
  0x71   : > { %1809 = vmatprep.subr.msk.bf16.mxu0 %vm791_vm0, %v2054_v19  ;;  %v2392_v34 = vsel %vm992_vm4, %v1008_v42, %v1009_v63  ;;  %v1021_v42 = vrot.slane %v2029_v45, 1  ;;  %v2465_v63 = vsel %vm791_vm0, %v2017_v36, 0  ;;  %v1023_v45 = vrot.slane %v2003_v21, 1 }
  0x72   : > { %v787_v25 = vrot.slane %v785_v27, 1  ;;  %v689_v8 = vshll.u32 %v574_v12, 16  ;;  %v1012_v27 = vrot.slane %v2319_v10, 1 }
  0x74   : > { %v2361_v62 = vsel %vm596_vm3, %v783_v43, %v787_v25  ;;  %v691_v38 = vrot.slane %v689_v8, 1  ;;  %v1011_v43 = vrot.slane %v2236_v32, 1  ;;  %v303_v32 = vunpack.c.l.bf16 %v249_v35 }
  0x75   : > { %1784 = vmatprep.subr.msk.bf16.mxu1 %vm791_vm0, %v2361_v62 }
  0x76   : > { %v692_v0 = vsel %vm596_vm3, %v687_v51, %v691_v38  ;;  %v2406_v5 = vsel %vm992_vm4, %v1011_v43, %v1012_v27  ;;  %v364_v10 = vsub.f32 %v303_v32, %v1932_v7  ;;  %v1188_v51 = vshrl.u32 %v2336_v47, 16  ;;  %v2487_v32 = vld [vmem:[%s2730_s1 + $0xa] sm:$0x3] }
  0x77   : > { %1678 = vmatmul.mubr.msk.bf16.vlgmr.msra.gmra.mrb[0].mxu0 %vm791_vm0, %v1902_v1  ;;  %v2374_v30 = vsel %vm791_vm0, %v692_v0, 0  ;;  %v1006_v1 = vrot.slane %v2209_v23, 1  ;;  %v1015_v23 = vrot.slane %v574_v12, 1  ;;  %v996_v27 = vrot.slane %v1975_v54, 1 }
  0x78   : > { %1680 = vmatpush3.bf16.xpose.msra.mxu0 %v2083_v52  ;;  %1695 = vmatprep.mubr.msk.bf16.mxu0 %vm791_vm0, %v2368_v50  ;;  %v425_v12 = vmul.f32 %v1948_v18, %v364_v10  ;;  %v1190_v18 = vshll.u32 %v2336_v47, 16  ;;  %v1017_v54 = vrot.slane %v1981_v57, 1 }
  0x79   : > { %1622 = vmatpush3.bf16.xpose.msra.mxu1 %v2374_v30  ;;  %1810 = vmatprep.subr.msk.bf16.mxu0 %vm791_vm0, %v2105_v24  ;;  %v2388_v52 = vsel %vm992_vm4, %v1005_v4, %v1006_v1  ;;  %v1020_v1 = vrot.slane %v1973_v53, 1 }
  0x7a   : > { %1785 = vmatprep.subr.msk.bf16.mxu1 %vm791_vm0, %v1981_v57  ;;  %v1192_v8 = vrot.slane %v1190_v18, 1  ;;  %v2757_v18 = vld [vmem:[#allocation5_spill] sm:$0xff] }
  0x7b   : > { %v2468_v43 = vsel %vm992_vm4, %v1020_v1, %v1021_v42  ;;  %v2759_v1 = vld [vmem:[#allocation6_spill] sm:$0xff] }
  0x7c   : > { %v1193_v38 = vor.u32 %v1192_v8, %v1188_v51  ;;  %v1027_v51 = vrot.slane %v2757_v18, 1  ;;  %v1003_v42 = vrot.slane %v2759_v1, 1  ;;  %v1252_v1 = vrot.slane %v2336_v47, 1 }
  0x80   : > { %1624 = vmatmul.mubr.msk.bf16.vlgmr.msra.gmra.mrb[0].mxu1 %vm791_vm0, %v1913_v3  ;;  %1682 = vmatpush3.bf16.xpose.msra.mxu0 %v2139_v14  ;;  %v2416_v3 = vsel %vm992_vm4, %v1014_v31, %v1015_v23  ;;  %v997_v31 = vrot.slane %v2048_v13, 1  ;;  %v1024_v23 = vrot.slane %v2079_v46, 1  ;;  %v1018_v13 = vrot.slane %v1983_v58, 1  ;;  %v2756_v58 = vld [vmem:[#allocation10_spill] sm:$0xff] }
  0x81   : > { %1626 = vmatpush3.bf16.xpose.msra.mxu1 %v1865_v15  ;;  %1811 = vmatprep.subr.msk.bf16.mxu0 %vm791_vm0, %v2161_v44  ;;  %v2505_v46 = vrot.slane %v1865_v15, 1  ;;  %v2758_v15 = vld [vmem:[#allocation3_spill] sm:$0xff] }
  0x82   : > { %1786 = vmatprep.subr.msk.bf16.mxu1 %vm791_vm0, %v1973_v53  ;;  %1641 = vmatprep.mubr.msk.bf16.mxu1 %vm791_vm0, %v2399_v56  ;;  %v998_v36 = vsel %vm992_vm4, %v996_v27, %v997_v31  ;;  %v2490_v10 = vsel %vm992_vm4, %v1023_v45, %v1024_v23  ;;  %v2497_v57 = vsel %vm992_vm4, %v1017_v54, %v1018_v13  ;;  %v1550_v27 = vld [vmem:[%s2730_s1 + $0x4] sm:$0x3]  ;;  %v2760_v45 = vld [vmem:[#allocation7_spill] sm:$0xff]  ;;  %v1032_v13 = vrot.slane %v2173_v17, 1 }
  0x83   : > { %v1050_v35 = vsel %vm791_vm0, %v998_v36, 0  ;;  %v1029_v36 = vrot.slane %v2118_v39, 1  ;;  %v1030_v23 = vrot.slane %v2760_v45, 1 }
  0x88   : > { %1684 = vmatpush3.bf16.xpose.msra.mxu0 %v2190_v37 }
  0x89   : > { %1628 = vmatpush3.bf16.xpose.msra.mxu1 %v1990_v61  ;;  %1812 = vmatprep.subr.msk.bf16.mxu0 %vm791_vm0, %v2216_v33  ;;  %v479_v61 = vmax.f32 %v425_v12, 0.0  ;;  %v999_v12 = vrot.slane %v2023_v41, 1 }
  0x8a   : > { %1787 = vmatprep.subr.msk.bf16.mxu1 %vm791_vm0, %v2003_v21 }
  0x8b   : > { %v555_v25 = vsel %vm498_vm2, %v479_v61, 0.0  ;;  %v2755_v61 = vld [vmem:[#allocation4_spill] sm:$0xff] }
  0x8c   : > { %v2441_v7 = vpack.c.bf16 %v555_v25, %v555_v25  ;;  %v1000_v25 = vrot.slane %v2755_v61, 1 }
  0x8e   : > { %v1195_v6 = vshll.u32 %v2441_v7, 16  ;;  %v1001_v41 = vsel %vm992_vm4, %v999_v12, %v1000_v25  ;;  %v2761_v12 = vld [vmem:[#allocation8_spill] sm:$0xff]  ;;  %v2551_v25 = vsel %vm791_vm0, %v2388_v52, 0  ;;  %v2566_v52 = vsel %vm791_vm0, %v2392_v34, 0 }
  0x8f   : > { %v2513_v8 = vsel %vm791_vm0, %v1001_v41, 0  ;;  %v1033_v61 = vrot.slane %v2761_v12, 1  ;;  %v2581_v34 = vsel %vm791_vm0, %v2406_v5, 0  ;;  %v2596_v5 = vsel %vm791_vm0, %v2416_v3, 0  ;;  %v1560_v3 = vld [vmem:[%s2730_s1 + $0xe] sm:$0x3] }
  0x90   : > { %1686 = vmatpush3.bf16.xpose.msra.mxu0 %v2243_v11  ;;  %v1197_v0 = vrot.slane %v1195_v6, 1  ;;  %v1047_v6 = vsel %vm791_vm0, %v2505_v46, 0 }
  0x91   : > { %1630 = vmatpush3.bf16.xpose.msra.mxu1 %v2034_v49  ;;  %1813 = vmatprep.subr.msk.bf16.mxu0 %vm791_vm0, %v2271_v9  ;;  %v2554_v41 = vsel %vm992_vm4, %v1032_v13, %v1033_v61 }
  0x92   : > { %1788 = vmatprep.subr.msk.bf16.mxu1 %vm791_vm0, %v2063_v28  ;;  %v2453_v4 = vsel %vm596_vm3, %v1193_v38, %v1197_v0  ;;  %v1002_v0 = vrot.slane %v2758_v15, 1  ;;  %v1039_v15 = vrot.slane %v2345_v20, 1  ;;  %v1253_v20 = vrot.slane %v2441_v7, 1 }
  0x93   : > { %v2609_v7 = vsel %vm791_vm0, %v2497_v57, 0 }
  0x94   : > { %v1004_v31 = vsel %vm992_vm4, %v1002_v0, %v1003_v42  ;;  %v2599_v42 = vsel %vm992_vm4, %v1252_v1, %v1253_v20 }
  0x95   : > { %v2537_v54 = vsel %vm791_vm0, %v1004_v31, 0 }
  0x98   : > { %1688 = vmatpush3.bf16.xpose.msra.mxu0 %v2297_v26 }
  0x99   : > { %1632 = vmatpush3.bf16.xpose.msra.mxu1 %v2087_v55  ;;  %1814 = vmatprep.subr.msk.bf16.mxu0 %vm791_vm0, %v2324_v29 }
  0x9a   : > { %1789 = vmatprep.subr.msk.bf16.mxu1 %vm791_vm0, %v2118_v39 }
  0xa0   : > { %1690 = vmatpush3.bf16.xpose.msra.mxu0 %v2348_v2 }
  0xa1   : > { %1634 = vmatpush3.bf16.xpose.msra.mxu1 %v2143_v16  ;;  %1815 = vmatprep.subr.msk.bf16.mxu0 %vm791_vm0, %v2361_v62 }
  0xa2   : > { %1790 = vmatprep.subr.msk.bf16.mxu1 %vm791_vm0, %v2173_v17 }
  0xa8   : > { %1692 = vmatpush3.bf16.xpose.msra.mxu0 %v2374_v30 }
  0xa9   : > { %1636 = vmatpush3.bf16.xpose.msra.mxu1 %v2199_v48  ;;  %1816 = vmatprep.subr.msk.bf16.mxu0 %vm791_vm0, %v2453_v4 }
  0xaa   : > { %1791 = vmatprep.subr.msk.bf16.mxu1 %vm791_vm0, %v2229_v59 }
  0xb0   : > { %1694 = vmatpush3.bf16.xpose.msra.mxu0 %v2465_v63 }
  0xb1   : > { %1638 = vmatpush3.bf16.xpose.msra.mxu1 %v2254_v60  ;;  %1817 = vmatprep.subr.msk.bf16.mxu0 %vm791_vm0, %v2468_v43 }
  0xb2   : > { %1792 = vmatprep.subr.msk.bf16.mxu1 %vm791_vm0, %v2283_v40 }
  0xb7   : > { %1696 = vmatmul.mubr.msk.bf16.vlgmr.msra.gmra.mrb[0].mxu0 %vm791_vm0, %v2368_v50  ;;  %v1026_v50 = vrot.slane %v2063_v28, 1 }
  0xb8   : > { %1698 = vmatpush3.bf16.xpose.msra.mxu0 %v1050_v35  ;;  %1713 = vmatprep.mubr.msk.bf16.mxu0 %vm791_vm0, %v2487_v32 }
  0xb9   : > { %1640 = vmatpush3.bf16.xpose.msra.mxu1 %v2756_v58  ;;  %1818 = vmatprep.subr.msk.bf16.mxu0 %vm791_vm0, %v2490_v10  ;;  %v2518_v38 = vsel %vm992_vm4, %v1026_v50, %v1027_v51  ;;  %v2762_v50 = vld [vmem:[#allocation9_spill] sm:$0xff] }
  0xba   : > { %1793 = vmatprep.subr.msk.bf16.mxu1 %vm791_vm0, %v2497_v57  ;;  %v1036_v18 = vrot.slane %v2762_v50, 1 }
  0xc0   : > { %1642 = vmatmul.mubr.msk.bf16.vlgmr.msra.gmra.mrb[0].mxu1 %vm791_vm0, %v2399_v56  ;;  %1700 = vmatpush3.bf16.xpose.msra.mxu0 %v2513_v8  ;;  %v2540_v56 = vsel %vm992_vm4, %v1029_v36, %v1030_v23 }
  0xc1   : > { %1644 = vmatpush3.bf16.xpose.msra.mxu1 %v1047_v6  ;;  %1819 = vmatprep.subr.msk.bf16.mxu0 %vm791_vm0, %v2518_v38  ;;  %v1038_v6 = vrot.slane %v2283_v40, 1 }
  0xc2   : > { %1794 = vmatprep.subr.msk.bf16.mxu1 %vm791_vm0, %v2468_v43  ;;  %1659 = vmatprep.mubr.msk.bf16.mxu1 %vm791_vm0, %v1550_v27 }
  0xc3   : > { %v2584_v0 = vsel %vm992_vm4, %v1038_v6, %v1039_v15 }
  0xc8   : > { %1702 = vmatpush3.bf16.xpose.msra.mxu0 %v2537_v54 }
  0xc9   : > { %1646 = vmatpush3.bf16.xpose.msra.mxu1 %v1050_v35  ;;  %1820 = vmatprep.subr.msk.bf16.mxu0 %vm791_vm0, %v2540_v56  ;;  %v1035_v35 = vrot.slane %v2229_v59, 1 }
  0xca   : > { %1795 = vmatprep.subr.msk.bf16.mxu1 %vm791_vm0, %v2490_v10 }
  0xcb   : > { %v2569_v51 = vsel %vm992_vm4, %v1035_v35, %v1036_v18 }
  0xd0   : > { %1704 = vmatpush3.bf16.xpose.msra.mxu0 %v2551_v25 }
  0xd1   : > { %1648 = vmatpush3.bf16.xpose.msra.mxu1 %v2513_v8  ;;  %1821 = vmatprep.subr.msk.bf16.mxu0 %vm791_vm0, %v2554_v41 }
  0xd2   : > { %1796 = vmatprep.subr.msk.bf16.mxu1 %vm791_vm0, %v2518_v38 }
  0xd8   : > { %1706 = vmatpush3.bf16.xpose.msra.mxu0 %v2566_v52 }
  0xd9   : > { %1650 = vmatpush3.bf16.xpose.msra.mxu1 %v2537_v54  ;;  %1822 = vmatprep.subr.msk.bf16.mxu0 %vm791_vm0, %v2569_v51 }
  0xda   : > { %1797 = vmatprep.subr.msk.bf16.mxu1 %vm791_vm0, %v2540_v56 }
  0xe0   : > { %1708 = vmatpush3.bf16.xpose.msra.mxu0 %v2581_v34 }
  0xe1   : > { %1652 = vmatpush3.bf16.xpose.msra.mxu1 %v2551_v25  ;;  %1823 = vmatprep.subr.msk.bf16.mxu0 %vm791_vm0, %v2584_v0 }
  0xe2   : > { %1798 = vmatprep.subr.msk.bf16.mxu1 %vm791_vm0, %v2554_v41 }
  0xe8   : > { %1710 = vmatpush3.bf16.xpose.msra.mxu0 %v2596_v5 }
  0xe9   : > { %1654 = vmatpush3.bf16.xpose.msra.mxu1 %v2566_v52  ;;  %1824 = vmatprep.subr.msk.bf16.mxu0 %vm791_vm0, %v2599_v42 }
  0xea   : > { %1799 = vmatprep.subr.msk.bf16.mxu1 %vm791_vm0, %v2569_v51 }
  0xf0   : > { %1712 = vmatpush3.bf16.xpose.msra.mxu0 %v2609_v7 }
  0xf1   : > { %1656 = vmatpush3.bf16.xpose.msra.mxu1 %v2581_v34  ;;  %1825 = vmatprep.subr.msk.bf16.mxu0 %vm791_vm0, %v2105_v24  ;;  %v2763_v24 = vmov 0  }
  0xf2   : > { %1800 = vmatprep.subr.msk.bf16.mxu1 %vm791_vm0, %v2584_v0 }
  0xf7   : > { %1714 = vmatmul.mubr.msk.bf16.vlgmr.msra.gmra.mrb[0].mxu0 %vm791_vm0, %v2487_v32 }
  0xf8   : > { %1716 = vmatpush3.bf16.xpose.msra.mxu0 %v2139_v14  ;;  %1731 = vmatprep.mubr.msk.bf16.mxu0 %vm791_vm0, %v1560_v3  ;;  %v1562_v14 = vld [vmem:[%s2730_s1 + $0x10] sm:$0x3] }
  0xf9   : > { %1658 = vmatpush3.bf16.xpose.msra.mxu1 %v2596_v5  ;;  %1826 = vmatprep.subr.msk.bf16.mxu0 %vm791_vm0, %v2161_v44  ;;  %v917_v44 = vsel %vm791_vm0, %v2283_v40, 0  ;;  %v1558_v40 = vld [vmem:[%s2730_s1 + $0xc] sm:$0x3] }
  0xfa   : > { %1314 = vmatprep.subr.bf16.mxu1 %v2763_v24 }
 0x100   : > { %1660 = vmatmul.mubr.msk.bf16.vlgmr.msra.gmra.mrb[0].mxu1 %vm791_vm0, %v1550_v27  ;;  %1718 = vmatpush3.bf16.xpose.msra.mxu0 %v2190_v37  ;;  %v1143_v37 = vsel %vm791_vm0, %v2336_v47, 0 }
 0x101   : > { %1315 = vmatpush1.bf16.xpose.msra.mxu1 %v2034_v49  ;;  %1827 = vmatprep.subr.msk.bf16.mxu0 %vm791_vm0, %v2216_v33  ;;  %v2764_v49 = vld [vmem:[#allocation2_spill] sm:$0xff] }
 0x102   : > { %1316 = vmatprep.subr.bf16.mxu1 %v2763_v24  ;;  %1346 = vmatprep.mubr.bf16.mxu1 %v2763_v24 }
 0x108   : > { %1720 = vmatpush3.bf16.xpose.msra.mxu0 %v2243_v11 }
 0x109   : > { %1317 = vmatpush1.bf16.xpose.msra.mxu1 %v2087_v55  ;;  %1828 = vmatprep.subr.msk.bf16.mxu0 %vm791_vm0, %v2271_v9  ;;  %v823_v55 = vsel %vm791_vm0, %v2054_v19, 0  ;;  %v907_v19 = vsel %vm791_vm0, %v2003_v21, 0  ;;  %v911_v21 = vsel %vm791_vm0, %v2118_v39, 0  ;;  %v915_v39 = vsel %vm791_vm0, %v2229_v59, 0 }
 0x10a   : > { %1318 = vmatprep.subr.bf16.mxu1 %v2763_v24 }
 0x110   : > { %1722 = vmatpush3.bf16.xpose.msra.mxu0 %v2297_v26 }
 0x111   : > { %1319 = vmatpush1.bf16.xpose.msra.mxu1 %v2143_v16  ;;  %1829 = vmatprep.subr.msk.bf16.mxu0 %vm791_vm0, %v2324_v29  ;;  %v905_v16 = vsel %vm791_vm0, %v1973_v53, 0  ;;  %v909_v53 = vsel %vm791_vm0, %v2063_v28, 0  ;;  %v913_v28 = vsel %vm791_vm0, %v2173_v17, 0  ;;  %v1074_v17 = vsel %vm791_vm0, %v2468_v43, 0 }
 0x112   : > { %1320 = vmatprep.subr.bf16.mxu1 %v2763_v24 }
 0x118   : > { %1724 = vmatpush3.bf16.xpose.msra.mxu0 %v2348_v2 }
 0x119   : > { %1321 = vmatpush1.bf16.xpose.msra.mxu1 %v2199_v48  ;;  %1830 = vmatprep.subr.msk.bf16.mxu0 %vm791_vm0, %v2361_v62 }
 0x11a   : > { %1322 = vmatprep.subr.bf16.mxu1 %v2763_v24 }
 0x120   : > { %1726 = vmatpush3.bf16.xpose.msra.mxu0 %v2374_v30 }
 0x121   : > { %1323 = vmatpush1.bf16.xpose.msra.mxu1 %v2254_v60  ;;  %1831 = vmatprep.subr.msk.bf16.mxu0 %vm791_vm0, %v2453_v4 }
 0x122   : > { %1324 = vmatprep.subr.bf16.mxu1 %v2763_v24 }
 0x128   : > { %1728 = vmatpush3.bf16.xpose.msra.mxu0 %v2465_v63 }
 0x129   : > { %1325 = vmatpush1.bf16.xpose.msra.mxu1 %v2756_v58  ;;  %1832 = vmatprep.subr.msk.bf16.mxu0 %vm791_vm0, %v2764_v49 }
 0x12a   : > { %1326 = vmatprep.subr.bf16.mxu1 %v2763_v24 }
 0x130   : > { %1730 = vmatpush3.bf16.xpose.msra.mxu0 %v823_v55 }
 0x131   : > { %1327 = vmatpush1.bf16.xpose.msra.mxu1 %v2340_v22  ;;  %1833 = vmatprep.subr.msk.bf16.mxu0 %vm791_vm0, %v2490_v10 }
 0x132   : > { %1328 = vmatprep.subr.bf16.mxu1 %v2763_v24 }
 0x137   : > { %1732 = vmatmul.mubr.msk.bf16.vlgmr.msra.gmra.mrb[4].mxu0 %vm791_vm0, %v1560_v3 }
 0x138   : > { %1734 = vmatpush3.bf16.xpose.msra.mxu0 %v2513_v8  ;;  %1749 = vmatprep.mubr.msk.bf16.mxu0 %vm791_vm0, %v1562_v14 }
 0x139   : > { %1329 = vmatpush1.bf16.xpose.msra.mxu1 %v905_v16  ;;  %1834 = vmatprep.subr.msk.bf16.mxu0 %vm791_vm0, %v2518_v38 }
 0x13a   : > { %1330 = vmatprep.subr.bf16.mxu1 %v2763_v24 }
 0x140   : > { %1736 = vmatpush3.bf16.xpose.msra.mxu0 %v2537_v54 }
 0x141   : > { %1331 = vmatpush1.bf16.xpose.msra.mxu1 %v907_v19  ;;  %1835 = vmatprep.subr.msk.bf16.mxu0 %vm791_vm0, %v2540_v56 }
 0x142   : > { %1332 = vmatprep.subr.bf16.mxu1 %v2763_v24 }
 0x148   : > { %1738 = vmatpush3.bf16.xpose.msra.mxu0 %v2551_v25 }
 0x149   : > { %1333 = vmatpush1.bf16.xpose.msra.mxu1 %v909_v53  ;;  %1836 = vmatprep.subr.msk.bf16.mxu0 %vm791_vm0, %v2554_v41 }
 0x14a   : > { %1334 = vmatprep.subr.bf16.mxu1 %v2763_v24 }
 0x150   : > { %1740 = vmatpush3.bf16.xpose.msra.mxu0 %v2566_v52 }
 0x151   : > { %1335 = vmatpush1.bf16.xpose.msra.mxu1 %v911_v21  ;;  %1837 = vmatprep.subr.msk.bf16.mxu0 %vm791_vm0, %v2569_v51 }
 0x152   : > { %1336 = vmatprep.subr.bf16.mxu1 %v2763_v24 }
 0x158   : > { %1742 = vmatpush3.bf16.xpose.msra.mxu0 %v2581_v34 }
 0x159   : > { %1337 = vmatpush1.bf16.xpose.msra.mxu1 %v913_v28  ;;  %1838 = vmatprep.subr.msk.bf16.mxu0 %vm791_vm0, %v2584_v0 }
 0x15a   : > { %1338 = vmatprep.subr.bf16.mxu1 %v2763_v24 }
 0x160   : > { %1744 = vmatpush3.bf16.xpose.msra.mxu0 %v2596_v5 }
 0x161   : > { %1339 = vmatpush1.bf16.xpose.msra.mxu1 %v915_v39  ;;  %1839 = vmatprep.subr.msk.bf16.mxu0 %vm791_vm0, %v2599_v42 }
 0x162   : > { %1340 = vmatprep.subr.bf16.mxu1 %v2763_v24 }
 0x168   : > { %1746 = vmatpush3.bf16.xpose.msra.mxu0 %v2609_v7 }
 0x169   : > { %1341 = vmatpush1.bf16.xpose.msra.mxu1 %v917_v44  ;;  %1840 = vmatprep.subr.msk.bf16.mxu0 %vm791_vm0, %v2505_v46 }
 0x16a   : > { %1342 = vmatprep.subr.bf16.mxu1 %v2763_v24 }
 0x170   : > { %1748 = vmatpush3.bf16.xpose.msra.mxu0 %v1074_v17 }
 0x171   : > { %1343 = vmatpush1.bf16.xpose.msra.mxu1 %v1143_v37 }
 0x177   : > { %1750 = vmatmul.mubr.msk.bf16.vlgmr.msra.gmra.mrb[4].mxu0 %vm791_vm0, %v1562_v14 }
 0x178   : > { %1559 = vmatmul.mubr.msk.bf16.vlgmr.msra.gmra.mrb[4].mxu1 %vm791_vm0, %v1558_v40 }
 0x1ca   : > { %v1297_v48 = vpop.f32.mrb[0].mxu0 }
 0x1cb   : > { %v1299_v33 = vpop.f32.mrb[1].mxu0 }
 0x1cc   : > { %v1301_v59 = vpop.f32.mrb[2].mxu0 }
 0x1cd   : > { %v1302_v11 = vpop.f32.mrb[3].mxu0 }
 0x1d3   : > { %v1128_v60 = vpop.f32.mrb[0].mxu1 }
 0x1d4   : > { %v1751_v9 = vadd.f32 %v1297_v48, %v1128_v60  ;;  %v1130_v26 = vpop.f32.mrb[1].mxu1 }
 0x1d5   : > { %v1754_v29 = vadd.f32 %v1299_v33, %v1130_v26  ;;  %v1132_v22 = vpop.f32.mrb[2].mxu1 }
 0x1d6   : > { %v1133_v47 = vpop.f32.mrb[3].mxu1 }
 0x24a   : > { %v1466_v2 = vpop.f32.mrb[4].mxu0 }
 0x24b   : > { %v1348_v62 = vpop.f32.mrb[4].mxu1  ;;  %v1468_v30 = vpop.f32.mrb[5].mxu0 }
 0x24c   : > { %v1752_v4 = vadd.f32 %v1751_v9, %v1348_v62  ;;  %v1350_v63 = vpop.f32.mrb[5].mxu1  ;;  %v1470_v43 = vpop.f32.mrb[6].mxu0 }
 0x24d   : > { %v1755_v32 = vadd.f32 %v1754_v29, %v1350_v63  ;;  %v1352_v10 = vpop.f32.mrb[6].mxu1  ;;  %v1471_v57 = vpop.f32.mrb[7].mxu0 }
 0x24e   : > { %v1753_v58 = vadd.f32 %v1752_v4, %v1466_v2  ;;  %v1353_v46 = vpop.f32.mrb[7].mxu1 }
 0x24f   : > { %v1756_v8 = vadd.f32 %v1755_v32, %v1468_v30 }
 0x250   : > { %1852 = vtanh.f32 %v1753_v58 }
 0x251   : > { %1854 = vtanh.f32 %v1756_v8 }
 0x25a   : > { %v1853_v38 = vpop.eup %1852 }
 0x25b   : > { %v1855_v27 = vpop.eup %1854 }
 0x25c   : > { %v1479_v31 = vcombine.low %v1853_v38, %v1855_v27 }
 0x25e   : > { %1481 = vst [vmem:[%s197_s22] sm:$0x77] %v1479_v31 }
 0x25f PF: > { %s14_s15 = sadd.s32 1, %s1862_s15  }
 0x260   : > { %p11_p4 = scmp.ge.s32.totalorder %s14_s15, 4  }
 0x262   :  { %13 = sbr.rel (!%p11_p4) target bundleno = 1 (0x1), region = 74 }

</bundles_post_ra>
